<compile_context>
chip_gen: v7x
topology: tpu7x:2x2x1
jax: 0.10.0
libtpu: 0.0.40
codegen_flags: <defaults>
</compile_context>

<pallas_src>
import functools
import math

import jax
import jax.numpy as jnp
from jax.experimental import pallas as pl
from jax.experimental.pallas import tpu as pltpu


_MXU_DTYPE = jnp.bfloat16        # matmul operand dtype (f32 accumulation)
_ACT_DTYPE = jnp.bfloat16        # activation storage dtype between kernels

_M_ALIGNS = (8,)                 # sublane alignment for M tiles
_LANE_ALIGNS = (256, 128)        # prefer 256 (v6e/v7x MXU width), fall back 128


def _default_vmem_limit():
    """Generation-aware scoped-VMEM budget: v7x has 64 MiB physical per core,
    v5e/v6e have 128 MiB.  Conservative 32 MiB fallback if the query fails."""
    try:
        info = pltpu.get_tpu_info()
        cap = int(getattr(info, "vmem_capacity_bytes", 0) or 0)
        if cap:
            if cap <= 80 * 1024 * 1024:
                return 48 * 1024 * 1024       # v7x-class (64 MiB physical)
            return 64 * 1024 * 1024           # v5e / v6e (128 MiB physical)
    except Exception:
        pass
    return 32 * 1024 * 1024


_VMEM_LIMIT = _default_vmem_limit()


def _pick_tile(dim, preferred, aligns):
    """Largest tile <= preferred that divides dim and is a multiple of one of
    `aligns` (tried in order); falls back to the full dim (always legal)."""
    if dim <= preferred:
        return dim
    for align in aligns:
        t = (preferred // align) * align
        while t >= align:
            if dim % t == 0:
                return t
            t -= align
    return dim


# ----------------------------- elementwise math -----------------------------

def _erf(x):
    # erf via Abramowitz–Stegun 7.1.26 (max abs err ~1.5e-7); the divide goes
    # through pl.reciprocal -> EUP slot (frees the VALU, matters most on v5e).
    a1, a2, a3, a4, a5 = 0.254829592, -0.284496736, 1.421413741, -1.453152027, 1.061405429
    p = 0.3275911
    sgn = jnp.where(x >= 0.0, 1.0, -1.0)
    ax = jnp.abs(x)
    t = pl.reciprocal(1.0 + p * ax, approx=True)
    poly = ((((a5 * t + a4) * t + a3) * t + a2) * t + a1) * t
    return sgn * (1.0 - poly * jnp.exp(-ax * ax))


def _gelu(y):
    # exact (erf-based) GELU, matching torch.nn.GELU() default; f32 VPU math
    return 0.5 * y * (1.0 + _erf(y * (1.0 / math.sqrt(2.0))))


def _epilogue(y, activation, out_scale):
    if activation == "gelu":
        y = _gelu(y)
    if out_scale != 1.0:
        y = y * out_scale
    return y


# ----------------------------- Pallas kernels -------------------------------

def _linear_kernel(x_ref, w_ref, b_ref, o_ref, *, activation, out_scale):
    """y = epilogue(x @ w + b); whole K resident, weight panel reused over M."""
    x = x_ref[...]
    w = w_ref[...]
    if x.dtype != w.dtype:                     # keep MXU operands in bf16
        x = x.astype(w.dtype)
    y = jnp.dot(x, w, preferred_element_type=jnp.float32)
    y = y + b_ref[...].astype(jnp.float32)
    y = _epilogue(y, activation, out_scale)
    o_ref[...] = y.astype(o_ref.dtype)


def linear(x, w, b, *, activation=None, out_scale=1.0, out_dtype=None,
           tm=512, tn=768):
    """x:[M,K] @ w:[K,N] + b:[N].  Grid is (N//tn, M//tm) with N OUTER so the
    (K, tn) weight column-panel stays VMEM-resident across all M tiles."""
    M, K = x.shape
    N = w.shape[1]
    out_dtype = out_dtype or x.dtype
    tm = _pick_tile(M, tm, _M_ALIGNS)
    tn = _pick_tile(N, tn, _LANE_ALIGNS)
    grid = (N // tn, M // tm)
    return pl.pallas_call(
        functools.partial(_linear_kernel, activation=activation, out_scale=out_scale),
        grid=grid,
        in_specs=[pl.BlockSpec((tm, K), lambda j, i: (i, 0)),
                  pl.BlockSpec((K, tn), lambda j, i: (0, j)),
                  pl.BlockSpec((1, tn), lambda j, i: (0, j))],
        out_specs=pl.BlockSpec((tm, tn), lambda j, i: (i, j)),
        out_shape=jax.ShapeDtypeStruct((M, N), out_dtype),
        compiler_params=pltpu.CompilerParams(
            dimension_semantics=("parallel", "parallel"),
            vmem_limit_bytes=_VMEM_LIMIT),
    )(x, w, b.reshape(1, N))


def _ln_linear_kernel(x_ref, g_ref, beta_ref, w_ref, b_ref, o_ref, h_ref, *,
                      eps, activation, out_scale):
    """y = epilogue(LayerNorm(x) @ w + b) with the normalized bf16 activations
    cached in VMEM and reused across the N (column) grid axis."""
    @pl.when(pl.program_id(1) == 0)
    def _normalize():
        x = x_ref[...].astype(jnp.float32)
        mean = jnp.mean(x, axis=-1, keepdims=True)
        var = jnp.mean(jnp.square(x - mean), axis=-1, keepdims=True)
        inv = jax.lax.rsqrt(var + eps)
        h = (x - mean) * inv * g_ref[...].astype(jnp.float32) \
            + beta_ref[...].astype(jnp.float32)
        h_ref[...] = h.astype(h_ref.dtype)

    y = jnp.dot(h_ref[...], w_ref[...], preferred_element_type=jnp.float32)
    y = y + b_ref[...].astype(jnp.float32)
    y = _epilogue(y, activation, out_scale)
    o_ref[...] = y.astype(o_ref.dtype)


def ln_linear(x, g, beta, w, b, *, eps=1e-5, activation=None, out_scale=1.0,
              out_dtype=None, tm=512, tn=512):
    """Fused LayerNorm -> Linear.  K (= normalized dim) kept whole: LN needs
    the full row and ViT's K is at most 4*E so it always fits a tile."""
    M, K = x.shape
    N = w.shape[1]
    out_dtype = out_dtype or x.dtype
    tm = _pick_tile(M, tm, _M_ALIGNS)
    tn = _pick_tile(N, tn, _LANE_ALIGNS)
    grid = (M // tm, N // tn)
    return pl.pallas_call(
        functools.partial(_ln_linear_kernel, eps=eps, activation=activation,
                          out_scale=out_scale),
        grid=grid,
        in_specs=[pl.BlockSpec((tm, K), lambda i, j: (i, 0)),
                  pl.BlockSpec((1, K), lambda i, j: (0, 0)),
                  pl.BlockSpec((1, K), lambda i, j: (0, 0)),
                  pl.BlockSpec((K, tn), lambda i, j: (0, j)),
                  pl.BlockSpec((1, tn), lambda i, j: (0, j))],
        out_specs=pl.BlockSpec((tm, tn), lambda i, j: (i, j)),
        out_shape=jax.ShapeDtypeStruct((M, N), out_dtype),
        scratch_shapes=[pltpu.VMEM((tm, K), _MXU_DTYPE)],
        compiler_params=pltpu.CompilerParams(
            # j carries the cached-h dependency -> must not be core-split
            dimension_semantics=("parallel", "arbitrary"),
            vmem_limit_bytes=_VMEM_LIMIT),
    )(x, g.reshape(1, K), beta.reshape(1, K), w, b.reshape(1, N))


def _ln_linear_heads_kernel(x_ref, g_ref, beta_ref, w_ref, b_ref, o_ref, h_ref,
                            *, eps):
    """qkv projection: LayerNorm(x) @ w_h + b_h for one head, head-major output.
    Normalized activations cached across the head grid axis."""
    @pl.when(pl.program_id(1) == 0)
    def _normalize():
        x = x_ref[...].astype(jnp.float32)
        mean = jnp.mean(x, axis=-1, keepdims=True)
        var = jnp.mean(jnp.square(x - mean), axis=-1, keepdims=True)
        inv = jax.lax.rsqrt(var + eps)
        h = (x - mean) * inv * g_ref[...].astype(jnp.float32) \
            + beta_ref[...].astype(jnp.float32)
        h_ref[...] = h.astype(h_ref.dtype)

    y = jnp.dot(h_ref[...], w_ref[0], preferred_element_type=jnp.float32)
    y = y + b_ref[0].astype(jnp.float32)
    o_ref[0] = y.astype(o_ref.dtype)


def ln_linear_heads(x, g, beta, w, b, *, eps=1e-5, out_dtype=None, tm=512):
    """Fused LayerNorm -> qkv projection with head-major output.

    w: [H, K, 3D] (per-head q|k|v column groups, attention scale pre-folded
    into the q columns at init), b: [H, 1, 3D].  Output: [H, M, 3D] so the
    attention kernel's BlockSpec delivers per-(batch, head) slabs via DMA —
    no XLA 5-D transposes, no in-kernel head concatenate."""
    M, K = x.shape
    H, _, C = w.shape
    out_dtype = out_dtype or x.dtype
    tm = _pick_tile(M, tm, _M_ALIGNS)
    grid = (M // tm, H)
    return pl.pallas_call(
        functools.partial(_ln_linear_heads_kernel, eps=eps),
        grid=grid,
        in_specs=[pl.BlockSpec((tm, K), lambda i, j: (i, 0)),
                  pl.BlockSpec((1, K), lambda i, j: (0, 0)),
                  pl.BlockSpec((1, K), lambda i, j: (0, 0)),
                  pl.BlockSpec((1, K, C), lambda i, j: (j, 0, 0)),
                  pl.BlockSpec((1, 1, C), lambda i, j: (j, 0, 0))],
        out_specs=pl.BlockSpec((1, tm, C), lambda i, j: (j, i, 0)),
        out_shape=jax.ShapeDtypeStruct((H, M, C), out_dtype),
        scratch_shapes=[pltpu.VMEM((tm, K), _MXU_DTYPE)],
        compiler_params=pltpu.CompilerParams(
            dimension_semantics=("parallel", "arbitrary"),
            vmem_limit_bytes=_VMEM_LIMIT),
    )(x, g.reshape(1, K), beta.reshape(1, K), w, b)


def _attn_proj_kernel(qkv_ref, w_ref, b_ref, o_ref, acc_ref, *, head_dim):
    """Fused attention + output projection for one (batch, head) grid point.

    qkv_ref: [1, 1, N, 3D] per-head slab (q already carries the 1/sqrt(D)
             scale, folded into the qkv weights at init).
    w_ref:   [1, D, E] this head's rows of the proj weight.
    o_ref:   [1, N, E] dense (128-lane-multiple) output, written once per
             batch with proj bias + residual doubling in the epilogue.
    acc_ref: [N, E] f32 scratch accumulating the per-head proj contributions
             across the head (reduction) grid axis.
    """
    h = pl.program_id(1)

    @pl.when(h == 0)
    def _init():
        acc_ref[...] = jnp.zeros_like(acc_ref)

    D = head_dim
    qkv = qkv_ref[0, 0]                                          # [N, 3D]
    q = qkv[:, :D]
    k = qkv[:, D:2 * D]
    v = qkv[:, 2 * D:3 * D]
    # scores = q @ k^T  (contract the head dim of both; no transpose in VMEM)
    s = jax.lax.dot_general(q, k, (((1,), (1,)), ((), ())),
                            preferred_element_type=jnp.float32)  # [N, N]
    m = jnp.max(s, axis=-1, keepdims=True)
    p = jnp.exp(s - m)
    l = jnp.sum(p, axis=-1, keepdims=True)
    o = jnp.dot(p.astype(v.dtype), v, preferred_element_type=jnp.float32)
    # normalize AFTER attn@v: [N,D]-sized EUP reciprocal instead of an [N,N] divide
    o = o * pl.reciprocal(l, approx=True)
    # this head's contribution to the output projection, accumulated over heads
    acc_ref[...] += jnp.dot(o.astype(w_ref.dtype), w_ref[0],
                            preferred_element_type=jnp.float32)

    @pl.when(h == pl.num_programs(1) - 1)
    def _finalize():
        y = acc_ref[...] + b_ref[...].astype(jnp.float32)
        # Block: x = atten(...); x = x + drop_path(x) == 2x  (drop_path = Id)
        o_ref[0] = (2.0 * y).astype(o_ref.dtype)


def attention_proj(qkv, proj_w, proj_b, *, out_dtype):
    """qkv: [H, B, N, 3D] head-major; returns 2*(attention_out @ W_proj + b)
    as [B, N, E] with heads handled on a reduction grid axis."""
    H, B, N, C = qkv.shape
    D = C // 3
    E = proj_w.shape[-1]
    return pl.pallas_call(
        functools.partial(_attn_proj_kernel, head_dim=D),
        grid=(B, H),
        in_specs=[pl.BlockSpec((1, 1, N, C), lambda b, h: (h, b, 0, 0)),
                  pl.BlockSpec((1, D, E), lambda b, h: (h, 0, 0)),
                  pl.BlockSpec((1, E), lambda b, h: (0, 0))],
        out_specs=pl.BlockSpec((1, N, E), lambda b, h: (b, 0, 0)),
        out_shape=jax.ShapeDtypeStruct((B, N, E), out_dtype),
        scratch_shapes=[pltpu.VMEM((N, E), jnp.float32)],
        compiler_params=pltpu.CompilerParams(
            dimension_semantics=("parallel", "arbitrary"),
            vmem_limit_bytes=_VMEM_LIMIT),
    )(qkv, proj_w, proj_b.reshape(1, E))


def _patch_embed_kernel(x_ref, w_ref, b_ref, g_ref, beta_ref, cls_ref, pos_ref,
                        o_ref, *, eps):
    """One image: LN(patches @ W + b), prepend class token, add pos embedding.
    Single dense [N, E] store — no standalone concat/add HBM round trip."""
    x = x_ref[0]
    if x.dtype != w_ref.dtype:
        x = x.astype(w_ref.dtype)
    y = jnp.dot(x, w_ref[...], preferred_element_type=jnp.float32)
    y = y + b_ref[...].astype(jnp.float32)
    mean = jnp.mean(y, axis=-1, keepdims=True)
    var = jnp.mean(jnp.square(y - mean), axis=-1, keepdims=True)
    inv = jax.lax.rsqrt(var + eps)
    emb = (y - mean) * inv * g_ref[...].astype(jnp.float32) \
        + beta_ref[...].astype(jnp.float32)                      # [P, E]
    cls_row = cls_ref[0].astype(jnp.float32)                     # [1, E]
    seq = jnp.concatenate([cls_row, emb], axis=0)                # [P+1, E]
    seq = seq + pos_ref[0].astype(jnp.float32)
    o_ref[0] = seq.astype(o_ref.dtype)


def patch_embed(patches, w, b, g, beta, cls_tok, pos, *, eps=1e-5,
                out_dtype=_ACT_DTYPE):
    """patches: [B, P, K] -> fused (linear + LN + cls concat + pos add) -> [B, P+1, E]."""
    B, P, K = patches.shape
    E = w.shape[1]
    return pl.pallas_call(
        functools.partial(_patch_embed_kernel, eps=eps),
        grid=(B,),
        in_specs=[pl.BlockSpec((1, P, K), lambda bb: (bb, 0, 0)),
                  pl.BlockSpec((K, E), lambda bb: (0, 0)),
                  pl.BlockSpec((1, E), lambda bb: (0, 0)),
                  pl.BlockSpec((1, E), lambda bb: (0, 0)),
                  pl.BlockSpec((1, E), lambda bb: (0, 0)),
                  pl.BlockSpec((1, 1, E), lambda bb: (0, 0, 0)),
                  pl.BlockSpec((1, P + 1, E), lambda bb: (0, 0, 0))],
        out_specs=pl.BlockSpec((1, P + 1, E), lambda bb: (bb, 0, 0)),
        out_shape=jax.ShapeDtypeStruct((B, P + 1, E), out_dtype),
        compiler_params=pltpu.CompilerParams(
            dimension_semantics=("parallel",),
            vmem_limit_bytes=_VMEM_LIMIT),
    )(patches, w, b.reshape(1, E), g.reshape(1, E), beta.reshape(1, E),
      cls_tok.reshape(1, 1, E), pos)


# ----------------------------- parameter init -------------------------------

def init_vit_params(key, *, img_size, patch_size, in_channel, embed_size, depth,
                    num_heads, mlp_ratio, num_classes):
    E = embed_size
    H = num_heads
    D = E // num_heads
    hidden = int(E * mlp_ratio)
    num_patches = (img_size // patch_size) ** 2
    scale = (E / num_heads) ** (-0.5)        # qk_scale=None -> head_dim**-0.5
    head_pad = ((max(num_classes, 1) + 127) // 128) * 128   # lane-pad the head

    keys = jax.random.split(key, 4 + depth)
    k_conv, k_cls, k_pos, k_head = keys[0], keys[1], keys[2], keys[3]

    # Conv2d: kaiming_normal_(mode='fan_out'), bias 0; matmul weights -> bf16
    fan_out = E * patch_size * patch_size
    head_w = 0.01 * jax.random.normal(k_head, (E, num_classes), jnp.float32)
    head_w = jnp.pad(head_w, ((0, 0), (0, head_pad - num_classes)))
    params = {
        "patch_w": (jax.random.normal(
            k_conv, (in_channel * patch_size * patch_size, E), jnp.float32)
            * math.sqrt(2.0 / fan_out)).astype(_MXU_DTYPE),
        "patch_b": jnp.zeros((E,), jnp.float32),
        "pe_ln_g": jnp.ones((E,), jnp.float32),
        "pe_ln_b": jnp.zeros((E,), jnp.float32),
        # trunc_normal_(std=0.02)
        "class_token": 0.02 * jax.random.truncated_normal(
            k_cls, -2.0, 2.0, (1, 1, E), jnp.float32),
        "pos_embed": 0.02 * jax.random.truncated_normal(
            k_pos, -2.0, 2.0, (1, num_patches + 1, E), jnp.float32),
        "norm_g": jnp.ones((E,), jnp.float32),
        "norm_b": jnp.zeros((E,), jnp.float32),
        # Linear: normal(0, 0.01), bias 0; padded columns are zero (sliced off)
        "head_w": head_w.astype(_MXU_DTYPE),
        "head_b": jnp.zeros((head_pad,), jnp.float32),
    }

    blocks = []
    for d in range(depth):
        kb = jax.random.split(keys[4 + d], 4)
        # qkv weight stored head-major: [H, E, 3D] with per-head (q|k|v) column
        # groups; the attention scale is folded into the q columns so the
        # kernel never multiplies the [N, N] score matrix.
        qkv_w = 0.01 * jax.random.normal(kb[0], (H, E, 3 * D), jnp.float32)
        qkv_w = qkv_w.at[:, :, :D].multiply(scale)
        # bias init is 0 (torch); a nonzero q-bias would carry the same scale.
        qkv_b = jnp.zeros((H, 1, 3 * D), jnp.float32)
        blocks.append(dict(
            ln1_g=jnp.ones((E,), jnp.float32), ln1_b=jnp.zeros((E,), jnp.float32),
            qkv_w=qkv_w.astype(_MXU_DTYPE),
            qkv_b=qkv_b,
            # proj weight grouped by head rows: [H, D, E]
            proj_w=(0.01 * jax.random.normal(kb[1], (H, D, E), jnp.float32)).astype(_MXU_DTYPE),
            proj_b=jnp.zeros((E,), jnp.float32),
            ln2_g=jnp.ones((E,), jnp.float32), ln2_b=jnp.zeros((E,), jnp.float32),
            fc1_w=(0.01 * jax.random.normal(kb[2], (E, hidden), jnp.float32)).astype(_MXU_DTYPE),
            fc1_b=jnp.zeros((hidden,), jnp.float32),
            fc2_w=(0.01 * jax.random.normal(kb[3], (hidden, E), jnp.float32)).astype(_MXU_DTYPE),
            fc2_b=jnp.zeros((E,), jnp.float32),
        ))
    params["blocks"] = blocks
    return params


# --------------------------------- forward ----------------------------------

def vit_forward(params, x, *, patch_size, num_heads, num_classes):
    B, C, Himg, Wimg = x.shape
    p = patch_size
    Hp, Wp = Himg // p, Wimg // p
    P = Hp * Wp
    E = params["pe_ln_g"].shape[-1]

    # --- PatchEmbedding: Conv2d(kernel=stride=p) == patchify + linear; LN,
    # class-token concat and position-embedding add fused into one kernel ---
    # patch vector ordered (c, ph, pw) to match torch conv-weight flattening.
    patches = x.reshape(B, C, Hp, p, Wp, p).transpose(0, 2, 4, 1, 3, 5)
    patches = patches.reshape(B, P, C * p * p).astype(_MXU_DTYPE)
    seq = patch_embed(patches, params["patch_w"], params["patch_b"],
                      params["pe_ln_g"], params["pe_ln_b"],
                      params["class_token"], params["pos_embed"],
                      out_dtype=_ACT_DTYPE)                      # [B, P+1, E]
    # (drop_out1 rate 0.0 -> identity)

    N = P + 1
    M = B * N

    for blk in params["blocks"]:
        # --- Attention sub-block: LN1 fused into the qkv matmul which writes
        # head-major [H, M, 3D]; attention + proj + bias + residual doubling
        # (x + drop_path(x) == 2x, faithful to the reference Block) fused into
        # a single (B, H)-grid kernel with a dense [N, E] output store. ---
        qkv = ln_linear_heads(seq.reshape(M, E), blk["ln1_g"], blk["ln1_b"],
                              blk["qkv_w"], blk["qkv_b"], out_dtype=_ACT_DTYPE)
        qkv = qkv.reshape(num_heads, B, N, qkv.shape[-1])        # free reshape
        y = attention_proj(qkv, blk["proj_w"], blk["proj_b"],
                           out_dtype=_ACT_DTYPE)                 # [B, N, E]

        # --- MLP sub-block: LN2 + GELU fused into fc1 (normalized activations
        # cached in VMEM); bias + residual doubling fused into fc2 epilogue. ---
        m = ln_linear(y.reshape(M, E), blk["ln2_g"], blk["ln2_b"],
                      blk["fc1_w"], blk["fc1_b"], activation="gelu",
                      out_dtype=_ACT_DTYPE)
        seq = linear(m, blk["fc2_w"], blk["fc2_b"], out_scale=2.0,
                     out_dtype=_ACT_DTYPE).reshape(B, N, E)

    # --- final norm + head on the class token only (LN is per-token so
    # LN(x)[:, 0] == LN(x[:, 0])); head weights are lane-padded to 128 cols
    # for dense stores, the real logits are sliced out here. ---
    cls_out = seq[:, 0]                                          # pre_logic = Identity
    logits = ln_linear(cls_out, params["norm_g"], params["norm_b"],
                       params["head_w"], params["head_b"], out_dtype=jnp.float32)
    return logits[:, :num_classes]


# ----------------------------------- main ------------------------------------

if __name__ == "__main__":
    # small ViT config consistent with the module's structure; embed_size kept
    # at 128 so every activation's lane dim is a multiple of 128 (dense vregs,
    # unmasked stores).  Note: at this toy scale (N=17, B=2) kernels are
    # launch-overhead bound; the tiling/fusions above target real ViT sizes.
    img_size, patch_size, in_channel = 32, 8, 3
    embed_size, depth, num_heads, num_classes = 128, 2, 4, 10

    key = jax.random.PRNGKey(0)
    kp, kx = jax.random.split(key)
    params = init_vit_params(
        kp, img_size=img_size, patch_size=patch_size, in_channel=in_channel,
        embed_size=embed_size, depth=depth, num_heads=num_heads,
        mlp_ratio=4.0, num_classes=num_classes)

    x = jax.random.normal(kx, (2, in_channel, img_size, img_size), jnp.float32)

    fwd = jax.jit(functools.partial(
        vit_forward, patch_size=patch_size, num_heads=num_heads,
        num_classes=num_classes))
    logits = fwd(params, x)
    jax.block_until_ready(logits)
    assert logits.shape == (2, num_classes)
    assert bool(jnp.all(jnp.isfinite(logits)))
    print("KERNEL_OK")
</pallas_src>

<mosaic_0001>
module attributes {stable_mosaic.version = 11 : i64} {
  func.func @_patch_embed_kernel(%arg0: i32, %arg1: memref<1x16x192xbf16, #tpu.memory_space<vmem>>, %arg2: memref<192x128xbf16, #tpu.memory_space<vmem>>, %arg3: memref<1x128xf32, #tpu.memory_space<vmem>>, %arg4: memref<1x128xf32, #tpu.memory_space<vmem>>, %arg5: memref<1x128xf32, #tpu.memory_space<vmem>>, %arg6: memref<1x1x128xf32, #tpu.memory_space<vmem>>, %arg7: memref<1x17x128xf32, #tpu.memory_space<vmem>>, %arg8: memref<1x17x128xbf16, #tpu.memory_space<vmem>>) attributes {dimension_semantics = [#tpu.dimension_semantics<parallel>], iteration_bounds = array<i64: 2>, scalar_prefetch = 0 : i64, scratch_operands = 0 : i64, tpu.core_type = #tpu.core_type<tc>, window_params = [{transform_indices = @transform_0, window_bounds = array<i64: 1, 16, 192>}, {pipeline_mode = #tpu.pipeline_mode<synchronous>, transform_indices = @transform_1, window_bounds = array<i64: 192, 128>}, {pipeline_mode = #tpu.pipeline_mode<synchronous>, transform_indices = @transform_2, window_bounds = array<i64: 1, 128>}, {pipeline_mode = #tpu.pipeline_mode<synchronous>, transform_indices = @transform_3, window_bounds = array<i64: 1, 128>}, {pipeline_mode = #tpu.pipeline_mode<synchronous>, transform_indices = @transform_4, window_bounds = array<i64: 1, 128>}, {pipeline_mode = #tpu.pipeline_mode<synchronous>, transform_indices = @transform_5, window_bounds = array<i64: 1, 1, 128>}, {pipeline_mode = #tpu.pipeline_mode<synchronous>, transform_indices = @transform_6, window_bounds = array<i64: 1, 17, 128>}, {transform_indices = @transform_7, window_bounds = array<i64: 1, 17, 128>}]} {
    %c0 = arith.constant 0 : index
    %c0_0 = arith.constant 0 : index
    %c0_1 = arith.constant 0 : index
    %0 = vector.load %arg1[%c0, %c0_0, %c0_1] : memref<1x16x192xbf16, #tpu.memory_space<vmem>>, vector<1x16x192xbf16>
    %1 = vector.shape_cast %0 : vector<1x16x192xbf16> to vector<16x192xbf16>
    %c0_2 = arith.constant 0 : index
    %c0_3 = arith.constant 0 : index
    %2 = vector.load %arg2[%c0_2, %c0_3] : memref<192x128xbf16, #tpu.memory_space<vmem>>, vector<192x128xbf16>
    %cst = arith.constant dense<0.000000e+00> : vector<16x128xf32>
    %3 = tpu.matmul %1, %2, %cst {dimension_numbers = #tpu.dot_dimension_numbers<[1], [0], [0], [1], [0, 0, 1, 1], [], []>} : vector<16x192xbf16>, vector<192x128xbf16>, vector<16x128xf32> -> vector<16x128xf32>
    %c0_4 = arith.constant 0 : index
    %c0_5 = arith.constant 0 : index
    %4 = vector.load %arg3[%c0_4, %c0_5] : memref<1x128xf32, #tpu.memory_space<vmem>>, vector<1x128xf32>
    %5 = vector.broadcast %4 : vector<1x128xf32> to vector<16x128xf32>
    %6 = arith.addf %3, %5 : vector<16x128xf32>
    %cst_6 = arith.constant dense<0.000000e+00> : vector<16xf32>
    %7 = vector.multi_reduction <add>, %6, %cst_6 [1] : vector<16x128xf32> to vector<16xf32>
    %8 = vector.shape_cast %7 : vector<16xf32> to vector<16x1xf32>
    %cst_7 = arith.constant 1.280000e+02 : f32
    %9 = vector.broadcast %cst_7 : f32 to vector<16x1xf32>
    %10 = arith.divf %8, %9 : vector<16x1xf32>
    %11 = vector.broadcast %10 : vector<16x1xf32> to vector<16x128xf32>
    %12 = arith.subf %6, %11 : vector<16x128xf32>
    %13 = arith.mulf %12, %12 : vector<16x128xf32>
    %cst_8 = arith.constant dense<0.000000e+00> : vector<16xf32>
    %14 = vector.multi_reduction <add>, %13, %cst_8 [1] : vector<16x128xf32> to vector<16xf32>
    %15 = vector.shape_cast %14 : vector<16xf32> to vector<16x1xf32>
    %cst_9 = arith.constant 1.280000e+02 : f32
    %16 = vector.broadcast %cst_9 : f32 to vector<16x1xf32>
    %17 = arith.divf %15, %16 : vector<16x1xf32>
    %cst_10 = arith.constant 9.99999974E-6 : f32
    %18 = vector.broadcast %cst_10 : f32 to vector<16x1xf32>
    %19 = arith.addf %17, %18 : vector<16x1xf32>
    %20 = math.rsqrt %19 : vector<16x1xf32>
    %21 = vector.broadcast %10 : vector<16x1xf32> to vector<16x128xf32>
    %22 = arith.subf %6, %21 : vector<16x128xf32>
    %23 = vector.broadcast %20 : vector<16x1xf32> to vector<16x128xf32>
    %24 = arith.mulf %22, %23 : vector<16x128xf32>
    %c0_11 = arith.constant 0 : index
    %c0_12 = arith.constant 0 : index
    %25 = vector.load %arg4[%c0_11, %c0_12] : memref<1x128xf32, #tpu.memory_space<vmem>>, vector<1x128xf32>
    %26 = vector.broadcast %25 : vector<1x128xf32> to vector<16x128xf32>
    %27 = arith.mulf %24, %26 : vector<16x128xf32>
    %c0_13 = arith.constant 0 : index
    %c0_14 = arith.constant 0 : index
    %28 = vector.load %arg5[%c0_13, %c0_14] : memref<1x128xf32, #tpu.memory_space<vmem>>, vector<1x128xf32>
    %29 = vector.broadcast %28 : vector<1x128xf32> to vector<16x128xf32>
    %30 = arith.addf %27, %29 : vector<16x128xf32>
    %c0_15 = arith.constant 0 : index
    %c0_16 = arith.constant 0 : index
    %c0_17 = arith.constant 0 : index
    %31 = vector.load %arg6[%c0_15, %c0_16, %c0_17] : memref<1x1x128xf32, #tpu.memory_space<vmem>>, vector<1x1x128xf32>
    %32 = vector.shape_cast %31 : vector<1x1x128xf32> to vector<1x128xf32>
    %33 = tpu.concatenate %32, %30 in 0 : vector<1x128xf32>, vector<16x128xf32> -> vector<17x128xf32>
    %c0_18 = arith.constant 0 : index
    %c0_19 = arith.constant 0 : index
    %c0_20 = arith.constant 0 : index
    %34 = vector.load %arg7[%c0_18, %c0_19, %c0_20] : memref<1x17x128xf32, #tpu.memory_space<vmem>>, vector<1x17x128xf32>
    %35 = vector.shape_cast %34 : vector<1x17x128xf32> to vector<17x128xf32>
    %36 = arith.addf %33, %35 : vector<17x128xf32>
    %37 = arith.truncf %36 : vector<17x128xf32> to vector<17x128xbf16>
    %c0_21 = arith.constant 0 : index
    %c0_22 = arith.constant 0 : index
    %c0_23 = arith.constant 0 : index
    %38 = vector.load %arg8[%c0_21, %c0_22, %c0_23] : memref<1x17x128xbf16, #tpu.memory_space<vmem>>, vector<1x17x128xbf16>
    %39 = vector.shape_cast %38 : vector<1x17x128xbf16> to vector<17x128xbf16>
    %40 = vector.shape_cast %37 : vector<17x128xbf16> to vector<1x17x128xbf16>
    tpu.vector_store %arg8[%c0_21, %c0_22, %c0_23], %40 {strides = array<i32>} : memref<1x17x128xbf16, #tpu.memory_space<vmem>>, vector<1x17x128xbf16>,
    return
  }
  func.func @transform_0(%arg0: i32) -> (i32, i32, i32) {
    %c0_i32 = arith.constant 0 : i32
    %c0_i32_0 = arith.constant 0 : i32
    %c0_i32_1 = arith.constant 0 : i32
    return %arg0, %c0_i32, %c0_i32_0 : i32, i32, i32
  }
  func.func @transform_1(%arg0: i32) -> (i32, i32) {
    %c0_i32 = arith.constant 0 : i32
    %c0_i32_0 = arith.constant 0 : i32
    %c0_i32_1 = arith.constant 0 : i32
    return %c0_i32, %c0_i32_0 : i32, i32
  }
  func.func @transform_2(%arg0: i32) -> (i32, i32) {
    %c0_i32 = arith.constant 0 : i32
    %c0_i32_0 = arith.constant 0 : i32
    %c0_i32_1 = arith.constant 0 : i32
    return %c0_i32, %c0_i32_0 : i32, i32
  }
  func.func @transform_3(%arg0: i32) -> (i32, i32) {
    %c0_i32 = arith.constant 0 : i32
    %c0_i32_0 = arith.constant 0 : i32
    %c0_i32_1 = arith.constant 0 : i32
    return %c0_i32, %c0_i32_0 : i32, i32
  }
  func.func @transform_4(%arg0: i32) -> (i32, i32) {
    %c0_i32 = arith.constant 0 : i32
    %c0_i32_0 = arith.constant 0 : i32
    %c0_i32_1 = arith.constant 0 : i32
    return %c0_i32, %c0_i32_0 : i32, i32
  }
  func.func @transform_5(%arg0: i32) -> (i32, i32, i32) {
    %c0_i32 = arith.constant 0 : i32
    %c0_i32_0 = arith.constant 0 : i32
    %c0_i32_1 = arith.constant 0 : i32
    %c0_i32_2 = arith.constant 0 : i32
    return %c0_i32, %c0_i32_0, %c0_i32_1 : i32, i32, i32
  }
  func.func @transform_6(%arg0: i32) -> (i32, i32, i32) {
    %c0_i32 = arith.constant 0 : i32
    %c0_i32_0 = arith.constant 0 : i32
    %c0_i32_1 = arith.constant 0 : i32
    %c0_i32_2 = arith.constant 0 : i32
    return %c0_i32, %c0_i32_0, %c0_i32_1 : i32, i32, i32
  }
  func.func @transform_7(%arg0: i32) -> (i32, i32, i32) {
    %c0_i32 = arith.constant 0 : i32
    %c0_i32_0 = arith.constant 0 : i32
    %c0_i32_1 = arith.constant 0 : i32
    return %arg0, %c0_i32, %c0_i32_0 : i32, i32, i32
  }
}

module attributes {stable_mosaic.version = 11 : i64} {
  func.func @_ln_linear_heads_kernel(%arg0: i32, %arg1: i32, %arg2: memref<34x128xbf16, #tpu.memory_space<vmem>>, %arg3: memref<1x128xf32, #tpu.memory_space<vmem>>, %arg4: memref<1x128xf32, #tpu.memory_space<vmem>>, %arg5: memref<1x128x96xbf16, #tpu.memory_space<vmem>>, %arg6: memref<1x1x96xf32, #tpu.memory_space<vmem>>, %arg7: memref<1x34x96xbf16, #tpu.memory_space<vmem>>, %arg8: memref<34x128xbf16, #tpu.memory_space<vmem>>) attributes {dimension_semantics = [#tpu.dimension_semantics<parallel>, #tpu.dimension_semantics<arbitrary>], iteration_bounds = array<i64: 1, 4>, scalar_prefetch = 0 : i64, scratch_operands = 1 : i64, tpu.core_type = #tpu.core_type<tc>, window_params = [{transform_indices = @transform_0, window_bounds = array<i64: 34, 128>}, {pipeline_mode = #tpu.pipeline_mode<synchronous>, transform_indices = @transform_1, window_bounds = array<i64: 1, 128>}, {pipeline_mode = #tpu.pipeline_mode<synchronous>, transform_indices = @transform_2, window_bounds = array<i64: 1, 128>}, {transform_indices = @transform_3, window_bounds = array<i64: 1, 128, 96>}, {transform_indices = @transform_4, window_bounds = array<i64: 1, 1, 96>}, {transform_indices = @transform_5, window_bounds = array<i64: 1, 34, 96>}]} {
    %c0_i32 = arith.constant 0 : i32
    %0 = arith.cmpi eq, %arg1, %c0_i32 : i32
    %1 = arith.extui %0 : i1 to i32
    %c0_i32_0 = arith.constant 0 : i32
    %2 = arith.cmpi ne, %1, %c0_i32_0 : i32
    scf.if %2 {
      %c0_11 = arith.constant 0 : index
      %c0_12 = arith.constant 0 : index
      %15 = vector.load %arg2[%c0_11, %c0_12] : memref<34x128xbf16, #tpu.memory_space<vmem>>, vector<34x128xbf16>
      %16 = arith.extf %15 : vector<34x128xbf16> to vector<34x128xf32>
      %cst_13 = arith.constant dense<0.000000e+00> : vector<34xf32>
      %17 = vector.multi_reduction <add>, %16, %cst_13 [1] : vector<34x128xf32> to vector<34xf32>
      %18 = vector.shape_cast %17 : vector<34xf32> to vector<34x1xf32>
      %cst_14 = arith.constant 1.280000e+02 : f32
      %19 = vector.broadcast %cst_14 : f32 to vector<34x1xf32>
      %20 = arith.divf %18, %19 : vector<34x1xf32>
      %21 = vector.broadcast %20 : vector<34x1xf32> to vector<34x128xf32>
      %22 = arith.subf %16, %21 : vector<34x128xf32>
      %23 = arith.mulf %22, %22 : vector<34x128xf32>
      %cst_15 = arith.constant dense<0.000000e+00> : vector<34xf32>
      %24 = vector.multi_reduction <add>, %23, %cst_15 [1] : vector<34x128xf32> to vector<34xf32>
      %25 = vector.shape_cast %24 : vector<34xf32> to vector<34x1xf32>
      %cst_16 = arith.constant 1.280000e+02 : f32
      %26 = vector.broadcast %cst_16 : f32 to vector<34x1xf32>
      %27 = arith.divf %25, %26 : vector<34x1xf32>
      %cst_17 = arith.constant 9.99999974E-6 : f32
      %28 = vector.broadcast %cst_17 : f32 to vector<34x1xf32>
      %29 = arith.addf %27, %28 : vector<34x1xf32>
      %30 = math.rsqrt %29 : vector<34x1xf32>
      %31 = vector.broadcast %20 : vector<34x1xf32> to vector<34x128xf32>
      %32 = arith.subf %16, %31 : vector<34x128xf32>
      %33 = vector.broadcast %30 : vector<34x1xf32> to vector<34x128xf32>
      %34 = arith.mulf %32, %33 : vector<34x128xf32>
      %c0_18 = arith.constant 0 : index
      %c0_19 = arith.constant 0 : index
      %35 = vector.load %arg3[%c0_18, %c0_19] : memref<1x128xf32, #tpu.memory_space<vmem>>, vector<1x128xf32>
      %36 = vector.broadcast %35 : vector<1x128xf32> to vector<34x128xf32>
      %37 = arith.mulf %34, %36 : vector<34x128xf32>
      %c0_20 = arith.constant 0 : index
      %c0_21 = arith.constant 0 : index
      %38 = vector.load %arg4[%c0_20, %c0_21] : memref<1x128xf32, #tpu.memory_space<vmem>>, vector<1x128xf32>
      %39 = vector.broadcast %38 : vector<1x128xf32> to vector<34x128xf32>
      %40 = arith.addf %37, %39 : vector<34x128xf32>
      %41 = arith.truncf %40 : vector<34x128xf32> to vector<34x128xbf16>
      %c0_22 = arith.constant 0 : index
      %c0_23 = arith.constant 0 : index
      %42 = vector.load %arg8[%c0_22, %c0_23] : memref<34x128xbf16, #tpu.memory_space<vmem>>, vector<34x128xbf16>
      tpu.vector_store %arg8[%c0_22, %c0_23], %41 {strides = array<i32>} : memref<34x128xbf16, #tpu.memory_space<vmem>>, vector<34x128xbf16>,
    } else {
    }
    %c0 = arith.constant 0 : index
    %c0_1 = arith.constant 0 : index
    %3 = vector.load %arg8[%c0, %c0_1] : memref<34x128xbf16, #tpu.memory_space<vmem>>, vector<34x128xbf16>
    %c0_2 = arith.constant 0 : index
    %c0_3 = arith.constant 0 : index
    %c0_4 = arith.constant 0 : index
    %4 = vector.load %arg5[%c0_2, %c0_3, %c0_4] : memref<1x128x96xbf16, #tpu.memory_space<vmem>>, vector<1x128x96xbf16>
    %5 = vector.shape_cast %4 : vector<1x128x96xbf16> to vector<128x96xbf16>
    %cst = arith.constant dense<0.000000e+00> : vector<34x96xf32>
    %6 = tpu.matmul %3, %5, %cst {dimension_numbers = #tpu.dot_dimension_numbers<[1], [0], [0], [1], [0, 0, 1, 1], [], []>} : vector<34x128xbf16>, vector<128x96xbf16>, vector<34x96xf32> -> vector<34x96xf32>
    %c0_5 = arith.constant 0 : index
    %c0_6 = arith.constant 0 : index
    %c0_7 = arith.constant 0 : index
    %7 = vector.load %arg6[%c0_5, %c0_6, %c0_7] : memref<1x1x96xf32, #tpu.memory_space<vmem>>, vector<1x1x96xf32>
    %8 = vector.shape_cast %7 : vector<1x1x96xf32> to vector<1x96xf32>
    %9 = vector.broadcast %8 : vector<1x96xf32> to vector<34x96xf32>
    %10 = arith.addf %6, %9 : vector<34x96xf32>
    %11 = arith.truncf %10 : vector<34x96xf32> to vector<34x96xbf16>
    %c0_8 = arith.constant 0 : index
    %c0_9 = arith.constant 0 : index
    %c0_10 = arith.constant 0 : index
    %12 = vector.load %arg7[%c0_8, %c0_9, %c0_10] : memref<1x34x96xbf16, #tpu.memory_space<vmem>>, vector<1x34x96xbf16>
    %13 = vector.shape_cast %12 : vector<1x34x96xbf16> to vector<34x96xbf16>
    %14 = vector.shape_cast %11 : vector<34x96xbf16> to vector<1x34x96xbf16>
    tpu.vector_store %arg7[%c0_8, %c0_9, %c0_10], %14 {strides = array<i32>} : memref<1x34x96xbf16, #tpu.memory_space<vmem>>, vector<1x34x96xbf16>,
    return
  }
  func.func @transform_0(%arg0: i32, %arg1: i32) -> (i32, i32) {
    %c0_i32 = arith.constant 0 : i32
    %c0_i32_0 = arith.constant 0 : i32
    return %arg0, %c0_i32 : i32, i32
  }
  func.func @transform_1(%arg0: i32, %arg1: i32) -> (i32, i32) {
    %c0_i32 = arith.constant 0 : i32
    %c0_i32_0 = arith.constant 0 : i32
    %c0_i32_1 = arith.constant 0 : i32
    return %c0_i32, %c0_i32_0 : i32, i32
  }
  func.func @transform_2(%arg0: i32, %arg1: i32) -> (i32, i32) {
    %c0_i32 = arith.constant 0 : i32
    %c0_i32_0 = arith.constant 0 : i32
    %c0_i32_1 = arith.constant 0 : i32
    return %c0_i32, %c0_i32_0 : i32, i32
  }
  func.func @transform_3(%arg0: i32, %arg1: i32) -> (i32, i32, i32) {
    %c0_i32 = arith.constant 0 : i32
    %c0_i32_0 = arith.constant 0 : i32
    %c0_i32_1 = arith.constant 0 : i32
    return %arg1, %c0_i32, %c0_i32_0 : i32, i32, i32
  }
  func.func @transform_4(%arg0: i32, %arg1: i32) -> (i32, i32, i32) {
    %c0_i32 = arith.constant 0 : i32
    %c0_i32_0 = arith.constant 0 : i32
    %c0_i32_1 = arith.constant 0 : i32
    return %arg1, %c0_i32, %c0_i32_0 : i32, i32, i32
  }
  func.func @transform_5(%arg0: i32, %arg1: i32) -> (i32, i32, i32) {
    %c0_i32 = arith.constant 0 : i32
    %c0_i32_0 = arith.constant 0 : i32
    return %arg1, %arg0, %c0_i32 : i32, i32, i32
  }
}

module attributes {stable_mosaic.version = 11 : i64} {
  func.func @_attn_proj_kernel(%arg0: i32, %arg1: i32, %arg2: memref<1x1x17x96xbf16, #tpu.memory_space<vmem>>, %arg3: memref<1x32x128xbf16, #tpu.memory_space<vmem>>, %arg4: memref<1x128xf32, #tpu.memory_space<vmem>>, %arg5: memref<1x17x128xbf16, #tpu.memory_space<vmem>>, %arg6: memref<17x128xf32, #tpu.memory_space<vmem>>) attributes {dimension_semantics = [#tpu.dimension_semantics<parallel>, #tpu.dimension_semantics<arbitrary>], iteration_bounds = array<i64: 2, 4>, scalar_prefetch = 0 : i64, scratch_operands = 1 : i64, tpu.core_type = #tpu.core_type<tc>, window_params = [{transform_indices = @transform_0, window_bounds = array<i64: 1, 1, 17, 96>}, {transform_indices = @transform_1, window_bounds = array<i64: 1, 32, 128>}, {pipeline_mode = #tpu.pipeline_mode<synchronous>, transform_indices = @transform_2, window_bounds = array<i64: 1, 128>}, {transform_indices = @transform_3, window_bounds = array<i64: 1, 17, 128>}]} {
    %c0_i32 = arith.constant 0 : i32
    %0 = arith.cmpi eq, %arg1, %c0_i32 : i32
    %1 = arith.extui %0 : i1 to i32
    %c0_i32_0 = arith.constant 0 : i32
    %2 = arith.cmpi ne, %1, %c0_i32_0 : i32
    scf.if %2 {
      %cst_16 = arith.constant 0.000000e+00 : f32
      %31 = vector.broadcast %cst_16 : f32 to vector<17x128xf32>
      %c0_17 = arith.constant 0 : index
      %c0_18 = arith.constant 0 : index
      %32 = vector.load %arg6[%c0_17, %c0_18] : memref<17x128xf32, #tpu.memory_space<vmem>>, vector<17x128xf32>
      tpu.vector_store %arg6[%c0_17, %c0_18], %31 {strides = array<i32>} : memref<17x128xf32, #tpu.memory_space<vmem>>, vector<17x128xf32>,
    } else {
    }
    %c0 = arith.constant 0 : index
    %c0_1 = arith.constant 0 : index
    %c0_2 = arith.constant 0 : index
    %c0_3 = arith.constant 0 : index
    %3 = vector.load %arg2[%c0, %c0_1, %c0_2, %c0_3] : memref<1x1x17x96xbf16, #tpu.memory_space<vmem>>, vector<1x1x17x96xbf16>
    %4 = vector.shape_cast %3 : vector<1x1x17x96xbf16> to vector<17x96xbf16>
    %5 = vector.extract_strided_slice %4 {offsets = [0, 0], sizes = [17, 32], strides = [1, 1]} : vector<17x96xbf16> to vector<17x32xbf16>
    %6 = vector.extract_strided_slice %4 {offsets = [0, 32], sizes = [17, 32], strides = [1, 1]} : vector<17x96xbf16> to vector<17x32xbf16>
    %7 = vector.extract_strided_slice %4 {offsets = [0, 64], sizes = [17, 32], strides = [1, 1]} : vector<17x96xbf16> to vector<17x32xbf16>
    %cst = arith.constant dense<0.000000e+00> : vector<17x17xf32>
    %8 = tpu.matmul %5, %6, %cst {dimension_numbers = #tpu.dot_dimension_numbers<[1], [1], [0], [0], [0, 0, 1, 0], [], []>} : vector<17x32xbf16>, vector<17x32xbf16>, vector<17x17xf32> -> vector<17x17xf32>
    %cst_4 = arith.constant dense<0xFF800000> : vector<17xf32>
    %9 = vector.multi_reduction <maximumf>, %8, %cst_4 [1] : vector<17x17xf32> to vector<17xf32>
    %10 = vector.shape_cast %9 : vector<17xf32> to vector<17x1xf32>
    %11 = vector.broadcast %10 : vector<17x1xf32> to vector<17x17xf32>
    %12 = arith.subf %8, %11 : vector<17x17xf32>
    %13 = math.exp %12 : vector<17x17xf32>
    %cst_5 = arith.constant dense<0.000000e+00> : vector<17xf32>
    %14 = vector.multi_reduction <add>, %13, %cst_5 [1] : vector<17x17xf32> to vector<17xf32>
    %15 = vector.shape_cast %14 : vector<17xf32> to vector<17x1xf32>
    %16 = arith.truncf %13 : vector<17x17xf32> to vector<17x17xbf16>
    %cst_6 = arith.constant dense<0.000000e+00> : vector<17x32xf32>
    %17 = tpu.matmul %16, %7, %cst_6 {dimension_numbers = #tpu.dot_dimension_numbers<[1], [0], [0], [1], [0, 0, 1, 1], [], []>} : vector<17x17xbf16>, vector<17x32xbf16>, vector<17x32xf32> -> vector<17x32xf32>
    %18 = tpu.reciprocal %15 {approx = true} : vector<17x1xf32> -> vector<17x1xf32>
    %19 = vector.broadcast %18 : vector<17x1xf32> to vector<17x32xf32>
    %20 = arith.mulf %17, %19 : vector<17x32xf32>
    %c0_7 = arith.constant 0 : index
    %c0_8 = arith.constant 0 : index
    %21 = vector.load %arg6[%c0_7, %c0_8] : memref<17x128xf32, #tpu.memory_space<vmem>>, vector<17x128xf32>
    %22 = arith.truncf %20 : vector<17x32xf32> to vector<17x32xbf16>
    %c0_9 = arith.constant 0 : index
    %c0_10 = arith.constant 0 : index
    %c0_11 = arith.constant 0 : index
    %23 = vector.load %arg3[%c0_9, %c0_10, %c0_11] : memref<1x32x128xbf16, #tpu.memory_space<vmem>>, vector<1x32x128xbf16>
    %24 = vector.shape_cast %23 : vector<1x32x128xbf16> to vector<32x128xbf16>
    %cst_12 = arith.constant dense<0.000000e+00> : vector<17x128xf32>
    %25 = tpu.matmul %22, %24, %cst_12 {dimension_numbers = #tpu.dot_dimension_numbers<[1], [0], [0], [1], [0, 0, 1, 1], [], []>} : vector<17x32xbf16>, vector<32x128xbf16>, vector<17x128xf32> -> vector<17x128xf32>
    %26 = arith.addf %21, %25 : vector<17x128xf32>
    %c0_13 = arith.constant 0 : index
    %c0_14 = arith.constant 0 : index
    %27 = vector.load %arg6[%c0_13, %c0_14] : memref<17x128xf32, #tpu.memory_space<vmem>>, vector<17x128xf32>
    tpu.vector_store %arg6[%c0_13, %c0_14], %26 {strides = array<i32>} : memref<17x128xf32, #tpu.memory_space<vmem>>, vector<17x128xf32>,
    %c3_i32 = arith.constant 3 : i32
    %28 = arith.cmpi eq, %arg1, %c3_i32 : i32
    %29 = arith.extui %28 : i1 to i32
    %c0_i32_15 = arith.constant 0 : i32
    %30 = arith.cmpi ne, %29, %c0_i32_15 : i32
    scf.if %30 {
      %c0_16 = arith.constant 0 : index
      %c0_17 = arith.constant 0 : index
      %31 = vector.load %arg6[%c0_16, %c0_17] : memref<17x128xf32, #tpu.memory_space<vmem>>, vector<17x128xf32>
      %c0_18 = arith.constant 0 : index
      %c0_19 = arith.constant 0 : index
      %32 = vector.load %arg4[%c0_18, %c0_19] : memref<1x128xf32, #tpu.memory_space<vmem>>, vector<1x128xf32>
      %33 = vector.broadcast %32 : vector<1x128xf32> to vector<17x128xf32>
      %34 = arith.addf %31, %33 : vector<17x128xf32>
      %cst_20 = arith.constant 2.000000e+00 : f32
      %35 = vector.broadcast %cst_20 : f32 to vector<17x128xf32>
      %36 = arith.mulf %35, %34 : vector<17x128xf32>
      %37 = arith.truncf %36 : vector<17x128xf32> to vector<17x128xbf16>
      %c0_21 = arith.constant 0 : index
      %c0_22 = arith.constant 0 : index
      %c0_23 = arith.constant 0 : index
      %38 = vector.load %arg5[%c0_21, %c0_22, %c0_23] : memref<1x17x128xbf16, #tpu.memory_space<vmem>>, vector<1x17x128xbf16>
      %39 = vector.shape_cast %38 : vector<1x17x128xbf16> to vector<17x128xbf16>
      %40 = vector.shape_cast %37 : vector<17x128xbf16> to vector<1x17x128xbf16>
      tpu.vector_store %arg5[%c0_21, %c0_22, %c0_23], %40 {strides = array<i32>} : memref<1x17x128xbf16, #tpu.memory_space<vmem>>, vector<1x17x128xbf16>,
    } else {
    }
    return
  }
  func.func @transform_0(%arg0: i32, %arg1: i32) -> (i32, i32, i32, i32) {
    %c0_i32 = arith.constant 0 : i32
    %c0_i32_0 = arith.constant 0 : i32
    %c0_i32_1 = arith.constant 0 : i32
    return %arg1, %arg0, %c0_i32, %c0_i32_0 : i32, i32, i32, i32
  }
  func.func @transform_1(%arg0: i32, %arg1: i32) -> (i32, i32, i32) {
    %c0_i32 = arith.constant 0 : i32
    %c0_i32_0 = arith.constant 0 : i32
    %c0_i32_1 = arith.constant 0 : i32
    return %arg1, %c0_i32, %c0_i32_0 : i32, i32, i32
  }
  func.func @transform_2(%arg0: i32, %arg1: i32) -> (i32, i32) {
    %c0_i32 = arith.constant 0 : i32
    %c0_i32_0 = arith.constant 0 : i32
    %c0_i32_1 = arith.constant 0 : i32
    return %c0_i32, %c0_i32_0 : i32, i32
  }
  func.func @transform_3(%arg0: i32, %arg1: i32) -> (i32, i32, i32) {
    %c0_i32 = arith.constant 0 : i32
    %c0_i32_0 = arith.constant 0 : i32
    %c0_i32_1 = arith.constant 0 : i32
    return %arg0, %c0_i32, %c0_i32_0 : i32, i32, i32
  }
}

module attributes {stable_mosaic.version = 11 : i64} {
  func.func @_ln_linear_kernel(%arg0: i32, %arg1: i32, %arg2: memref<34x128xbf16, #tpu.memory_space<vmem>>, %arg3: memref<1x128xf32, #tpu.memory_space<vmem>>, %arg4: memref<1x128xf32, #tpu.memory_space<vmem>>, %arg5: memref<128x512xbf16, #tpu.memory_space<vmem>>, %arg6: memref<1x512xf32, #tpu.memory_space<vmem>>, %arg7: memref<34x512xbf16, #tpu.memory_space<vmem>>, %arg8: memref<34x128xbf16, #tpu.memory_space<vmem>>) attributes {dimension_semantics = [#tpu.dimension_semantics<parallel>, #tpu.dimension_semantics<arbitrary>], iteration_bounds = array<i64: 1, 1>, scalar_prefetch = 0 : i64, scratch_operands = 1 : i64, tpu.core_type = #tpu.core_type<tc>, window_params = [{transform_indices = @transform_0, window_bounds = array<i64: 34, 128>}, {pipeline_mode = #tpu.pipeline_mode<synchronous>, transform_indices = @transform_1, window_bounds = array<i64: 1, 128>}, {pipeline_mode = #tpu.pipeline_mode<synchronous>, transform_indices = @transform_2, window_bounds = array<i64: 1, 128>}, {transform_indices = @transform_3, window_bounds = array<i64: 128, 512>}, {transform_indices = @transform_4, window_bounds = array<i64: 1, 512>}, {transform_indices = @transform_5, window_bounds = array<i64: 34, 512>}]} {
    %c0_i32 = arith.constant 0 : i32
    %0 = arith.cmpi eq, %arg1, %c0_i32 : i32
    %1 = arith.extui %0 : i1 to i32
    %c0_i32_0 = arith.constant 0 : i32
    %2 = arith.cmpi ne, %1, %c0_i32_0 : i32
    scf.if %2 {
      %c0_23 = arith.constant 0 : index
      %c0_24 = arith.constant 0 : index
      %51 = vector.load %arg2[%c0_23, %c0_24] : memref<34x128xbf16, #tpu.memory_space<vmem>>, vector<34x128xbf16>
      %52 = arith.extf %51 : vector<34x128xbf16> to vector<34x128xf32>
      %cst_25 = arith.constant dense<0.000000e+00> : vector<34xf32>
      %53 = vector.multi_reduction <add>, %52, %cst_25 [1] : vector<34x128xf32> to vector<34xf32>
      %54 = vector.shape_cast %53 : vector<34xf32> to vector<34x1xf32>
      %cst_26 = arith.constant 1.280000e+02 : f32
      %55 = vector.broadcast %cst_26 : f32 to vector<34x1xf32>
      %56 = arith.divf %54, %55 : vector<34x1xf32>
      %57 = vector.broadcast %56 : vector<34x1xf32> to vector<34x128xf32>
      %58 = arith.subf %52, %57 : vector<34x128xf32>
      %59 = arith.mulf %58, %58 : vector<34x128xf32>
      %cst_27 = arith.constant dense<0.000000e+00> : vector<34xf32>
      %60 = vector.multi_reduction <add>, %59, %cst_27 [1] : vector<34x128xf32> to vector<34xf32>
      %61 = vector.shape_cast %60 : vector<34xf32> to vector<34x1xf32>
      %cst_28 = arith.constant 1.280000e+02 : f32
      %62 = vector.broadcast %cst_28 : f32 to vector<34x1xf32>
      %63 = arith.divf %61, %62 : vector<34x1xf32>
      %cst_29 = arith.constant 9.99999974E-6 : f32
      %64 = vector.broadcast %cst_29 : f32 to vector<34x1xf32>
      %65 = arith.addf %63, %64 : vector<34x1xf32>
      %66 = math.rsqrt %65 : vector<34x1xf32>
      %67 = vector.broadcast %56 : vector<34x1xf32> to vector<34x128xf32>
      %68 = arith.subf %52, %67 : vector<34x128xf32>
      %69 = vector.broadcast %66 : vector<34x1xf32> to vector<34x128xf32>
      %70 = arith.mulf %68, %69 : vector<34x128xf32>
      %c0_30 = arith.constant 0 : index
      %c0_31 = arith.constant 0 : index
      %71 = vector.load %arg3[%c0_30, %c0_31] : memref<1x128xf32, #tpu.memory_space<vmem>>, vector<1x128xf32>
      %72 = vector.broadcast %71 : vector<1x128xf32> to vector<34x128xf32>
      %73 = arith.mulf %70, %72 : vector<34x128xf32>
      %c0_32 = arith.constant 0 : index
      %c0_33 = arith.constant 0 : index
      %74 = vector.load %arg4[%c0_32, %c0_33] : memref<1x128xf32, #tpu.memory_space<vmem>>, vector<1x128xf32>
      %75 = vector.broadcast %74 : vector<1x128xf32> to vector<34x128xf32>
      %76 = arith.addf %73, %75 : vector<34x128xf32>
      %77 = arith.truncf %76 : vector<34x128xf32> to vector<34x128xbf16>
      %c0_34 = arith.constant 0 : index
      %c0_35 = arith.constant 0 : index
      %78 = vector.load %arg8[%c0_34, %c0_35] : memref<34x128xbf16, #tpu.memory_space<vmem>>, vector<34x128xbf16>
      tpu.vector_store %arg8[%c0_34, %c0_35], %77 {strides = array<i32>} : memref<34x128xbf16, #tpu.memory_space<vmem>>, vector<34x128xbf16>,
    } else {
    }
    %c0 = arith.constant 0 : index
    %c0_1 = arith.constant 0 : index
    %3 = vector.load %arg8[%c0, %c0_1] : memref<34x128xbf16, #tpu.memory_space<vmem>>, vector<34x128xbf16>
    %c0_2 = arith.constant 0 : index
    %c0_3 = arith.constant 0 : index
    %4 = vector.load %arg5[%c0_2, %c0_3] : memref<128x512xbf16, #tpu.memory_space<vmem>>, vector<128x512xbf16>
    %cst = arith.constant dense<0.000000e+00> : vector<34x512xf32>
    %5 = tpu.matmul %3, %4, %cst {dimension_numbers = #tpu.dot_dimension_numbers<[1], [0], [0], [1], [0, 0, 1, 1], [], []>} : vector<34x128xbf16>, vector<128x512xbf16>, vector<34x512xf32> -> vector<34x512xf32>
    %c0_4 = arith.constant 0 : index
    %c0_5 = arith.constant 0 : index
    %6 = vector.load %arg6[%c0_4, %c0_5] : memref<1x512xf32, #tpu.memory_space<vmem>>, vector<1x512xf32>
    %7 = vector.broadcast %6 : vector<1x512xf32> to vector<34x512xf32>
    %8 = arith.addf %5, %7 : vector<34x512xf32>
    %cst_6 = arith.constant 5.000000e-01 : f32
    %9 = vector.broadcast %cst_6 : f32 to vector<34x512xf32>
    %10 = arith.mulf %9, %8 : vector<34x512xf32>
    %cst_7 = arith.constant 0.707106769 : f32
    %11 = vector.broadcast %cst_7 : f32 to vector<34x512xf32>
    %12 = arith.mulf %8, %11 : vector<34x512xf32>
    %cst_8 = arith.constant 0.000000e+00 : f32
    %13 = vector.broadcast %cst_8 : f32 to vector<34x512xf32>
    %14 = arith.cmpf oge, %12, %13 : vector<34x512xf32>
    %cst_9 = arith.constant 1.000000e+00 : f32
    %cst_10 = arith.constant -1.000000e+00 : f32
    %15 = vector.broadcast %cst_9 : f32 to vector<34x512xf32>
    %16 = vector.broadcast %cst_10 : f32 to vector<34x512xf32>
    %17 = arith.select %14, %15, %16 : vector<34x512xi1>, vector<34x512xf32>
    %18 = math.absf %12 : vector<34x512xf32>
    %cst_11 = arith.constant 0.327591091 : f32
    %19 = vector.broadcast %cst_11 : f32 to vector<34x512xf32>
    %20 = arith.mulf %19, %18 : vector<34x512xf32>
    %cst_12 = arith.constant 1.000000e+00 : f32
    %21 = vector.broadcast %cst_12 : f32 to vector<34x512xf32>
    %22 = arith.addf %21, %20 : vector<34x512xf32>
    %23 = tpu.reciprocal %22 {approx = true} : vector<34x512xf32> -> vector<34x512xf32>
    %cst_13 = arith.constant 1.06140542 : f32
    %24 = vector.broadcast %cst_13 : f32 to vector<34x512xf32>
    %25 = arith.mulf %24, %23 : vector<34x512xf32>
    %cst_14 = arith.constant -1.45315206 : f32
    %26 = vector.broadcast %cst_14 : f32 to vector<34x512xf32>
    %27 = arith.addf %25, %26 : vector<34x512xf32>
    %28 = arith.mulf %27, %23 : vector<34x512xf32>
    %cst_15 = arith.constant 1.42141378 : f32
    %29 = vector.broadcast %cst_15 : f32 to vector<34x512xf32>
    %30 = arith.addf %28, %29 : vector<34x512xf32>
    %31 = arith.mulf %30, %23 : vector<34x512xf32>
    %cst_16 = arith.constant -0.284496725 : f32
    %32 = vector.broadcast %cst_16 : f32 to vector<34x512xf32>
    %33 = arith.addf %31, %32 : vector<34x512xf32>
    %34 = arith.mulf %33, %23 : vector<34x512xf32>
    %cst_17 = arith.constant 0.254829586 : f32
    %35 = vector.broadcast %cst_17 : f32 to vector<34x512xf32>
    %36 = arith.addf %34, %35 : vector<34x512xf32>
    %37 = arith.mulf %36, %23 : vector<34x512xf32>
    %cst_18 = arith.constant 0.000000e+00 : f32
    %38 = vector.broadcast %cst_18 : f32 to vector<34x512xf32>
    %39 = arith.subf %38, %18 : vector<34x512xf32>
    %40 = arith.mulf %39, %18 : vector<34x512xf32>
    %41 = math.exp %40 : vector<34x512xf32>
    %42 = arith.mulf %37, %41 : vector<34x512xf32>
    %cst_19 = arith.constant 1.000000e+00 : f32
    %43 = vector.broadcast %cst_19 : f32 to vector<34x512xf32>
    %44 = arith.subf %43, %42 : vector<34x512xf32>
    %45 = arith.mulf %17, %44 : vector<34x512xf32>
    %cst_20 = arith.constant 1.000000e+00 : f32
    %46 = vector.broadcast %cst_20 : f32 to vector<34x512xf32>
    %47 = arith.addf %46, %45 : vector<34x512xf32>
    %48 = arith.mulf %10, %47 : vector<34x512xf32>
    %49 = arith.truncf %48 : vector<34x512xf32> to vector<34x512xbf16>
    %c0_21 = arith.constant 0 : index
    %c0_22 = arith.constant 0 : index
    %50 = vector.load %arg7[%c0_21, %c0_22] : memref<34x512xbf16, #tpu.memory_space<vmem>>, vector<34x512xbf16>
    tpu.vector_store %arg7[%c0_21, %c0_22], %49 {strides = array<i32>} : memref<34x512xbf16, #tpu.memory_space<vmem>>, vector<34x512xbf16>,
    return
  }
  func.func @transform_0(%arg0: i32, %arg1: i32) -> (i32, i32) {
    %c0_i32 = arith.constant 0 : i32
    %c0_i32_0 = arith.constant 0 : i32
    return %arg0, %c0_i32 : i32, i32
  }
  func.func @transform_1(%arg0: i32, %arg1: i32) -> (i32, i32) {
    %c0_i32 = arith.constant 0 : i32
    %c0_i32_0 = arith.constant 0 : i32
    %c0_i32_1 = arith.constant 0 : i32
    return %c0_i32, %c0_i32_0 : i32, i32
  }
  func.func @transform_2(%arg0: i32, %arg1: i32) -> (i32, i32) {
    %c0_i32 = arith.constant 0 : i32
    %c0_i32_0 = arith.constant 0 : i32
    %c0_i32_1 = arith.constant 0 : i32
    return %c0_i32, %c0_i32_0 : i32, i32
  }
  func.func @transform_3(%arg0: i32, %arg1: i32) -> (i32, i32) {
    %c0_i32 = arith.constant 0 : i32
    %c0_i32_0 = arith.constant 0 : i32
    return %c0_i32, %arg1 : i32, i32
  }
  func.func @transform_4(%arg0: i32, %arg1: i32) -> (i32, i32) {
    %c0_i32 = arith.constant 0 : i32
    %c0_i32_0 = arith.constant 0 : i32
    return %c0_i32, %arg1 : i32, i32
  }
  func.func @transform_5(%arg0: i32, %arg1: i32) -> (i32, i32) {
    %c0_i32 = arith.constant 0 : i32
    return %arg0, %arg1 : i32, i32
  }
}

module attributes {stable_mosaic.version = 11 : i64} {
  func.func @_linear_kernel(%arg0: i32, %arg1: i32, %arg2: memref<34x512xbf16, #tpu.memory_space<vmem>>, %arg3: memref<512x128xbf16, #tpu.memory_space<vmem>>, %arg4: memref<1x128xf32, #tpu.memory_space<vmem>>, %arg5: memref<34x128xbf16, #tpu.memory_space<vmem>>) attributes {dimension_semantics = [#tpu.dimension_semantics<parallel>, #tpu.dimension_semantics<parallel>], iteration_bounds = array<i64: 1, 1>, scalar_prefetch = 0 : i64, scratch_operands = 0 : i64, tpu.core_type = #tpu.core_type<tc>, window_params = [{transform_indices = @transform_0, window_bounds = array<i64: 34, 512>}, {transform_indices = @transform_1, window_bounds = array<i64: 512, 128>}, {transform_indices = @transform_2, window_bounds = array<i64: 1, 128>}, {transform_indices = @transform_3, window_bounds = array<i64: 34, 128>}]} {
    %c0 = arith.constant 0 : index
    %c0_0 = arith.constant 0 : index
    %0 = vector.load %arg2[%c0, %c0_0] : memref<34x512xbf16, #tpu.memory_space<vmem>>, vector<34x512xbf16>
    %c0_1 = arith.constant 0 : index
    %c0_2 = arith.constant 0 : index
    %1 = vector.load %arg3[%c0_1, %c0_2] : memref<512x128xbf16, #tpu.memory_space<vmem>>, vector<512x128xbf16>
    %cst = arith.constant dense<0.000000e+00> : vector<34x128xf32>
    %2 = tpu.matmul %0, %1, %cst {dimension_numbers = #tpu.dot_dimension_numbers<[1], [0], [0], [1], [0, 0, 1, 1], [], []>} : vector<34x512xbf16>, vector<512x128xbf16>, vector<34x128xf32> -> vector<34x128xf32>
    %c0_3 = arith.constant 0 : index
    %c0_4 = arith.constant 0 : index
    %3 = vector.load %arg4[%c0_3, %c0_4] : memref<1x128xf32, #tpu.memory_space<vmem>>, vector<1x128xf32>
    %4 = vector.broadcast %3 : vector<1x128xf32> to vector<34x128xf32>
    %5 = arith.addf %2, %4 : vector<34x128xf32>
    %cst_5 = arith.constant 2.000000e+00 : f32
    %6 = vector.broadcast %cst_5 : f32 to vector<34x128xf32>
    %7 = arith.mulf %5, %6 : vector<34x128xf32>
    %8 = arith.truncf %7 : vector<34x128xf32> to vector<34x128xbf16>
    %c0_6 = arith.constant 0 : index
    %c0_7 = arith.constant 0 : index
    %9 = vector.load %arg5[%c0_6, %c0_7] : memref<34x128xbf16, #tpu.memory_space<vmem>>, vector<34x128xbf16>
    tpu.vector_store %arg5[%c0_6, %c0_7], %8 {strides = array<i32>} : memref<34x128xbf16, #tpu.memory_space<vmem>>, vector<34x128xbf16>,
    return
  }
  func.func @transform_0(%arg0: i32, %arg1: i32) -> (i32, i32) {
    %c0_i32 = arith.constant 0 : i32
    %c0_i32_0 = arith.constant 0 : i32
    return %arg1, %c0_i32 : i32, i32
  }
  func.func @transform_1(%arg0: i32, %arg1: i32) -> (i32, i32) {
    %c0_i32 = arith.constant 0 : i32
    %c0_i32_0 = arith.constant 0 : i32
    return %c0_i32, %arg0 : i32, i32
  }
  func.func @transform_2(%arg0: i32, %arg1: i32) -> (i32, i32) {
    %c0_i32 = arith.constant 0 : i32
    %c0_i32_0 = arith.constant 0 : i32
    return %c0_i32, %arg0 : i32, i32
  }
  func.func @transform_3(%arg0: i32, %arg1: i32) -> (i32, i32) {
    %c0_i32 = arith.constant 0 : i32
    return %arg1, %arg0 : i32, i32
  }
}

module attributes {stable_mosaic.version = 11 : i64} {
  func.func @_ln_linear_kernel(%arg0: i32, %arg1: i32, %arg2: memref<2x128xbf16, #tpu.memory_space<vmem>>, %arg3: memref<1x128xf32, #tpu.memory_space<vmem>>, %arg4: memref<1x128xf32, #tpu.memory_space<vmem>>, %arg5: memref<128x128xbf16, #tpu.memory_space<vmem>>, %arg6: memref<1x128xf32, #tpu.memory_space<vmem>>, %arg7: memref<2x128xf32, #tpu.memory_space<vmem>>, %arg8: memref<2x128xbf16, #tpu.memory_space<vmem>>) attributes {dimension_semantics = [#tpu.dimension_semantics<parallel>, #tpu.dimension_semantics<arbitrary>], iteration_bounds = array<i64: 1, 1>, scalar_prefetch = 0 : i64, scratch_operands = 1 : i64, tpu.core_type = #tpu.core_type<tc>, window_params = [{transform_indices = @transform_0, window_bounds = array<i64: 2, 128>}, {pipeline_mode = #tpu.pipeline_mode<synchronous>, transform_indices = @transform_1, window_bounds = array<i64: 1, 128>}, {pipeline_mode = #tpu.pipeline_mode<synchronous>, transform_indices = @transform_2, window_bounds = array<i64: 1, 128>}, {transform_indices = @transform_3, window_bounds = array<i64: 128, 128>}, {transform_indices = @transform_4, window_bounds = array<i64: 1, 128>}, {transform_indices = @transform_5, window_bounds = array<i64: 2, 128>}]} {
    %c0_i32 = arith.constant 0 : i32
    %0 = arith.cmpi eq, %arg1, %c0_i32 : i32
    %1 = arith.extui %0 : i1 to i32
    %c0_i32_0 = arith.constant 0 : i32
    %2 = arith.cmpi ne, %1, %c0_i32_0 : i32
    scf.if %2 {
      %c0_8 = arith.constant 0 : index
      %c0_9 = arith.constant 0 : index
      %10 = vector.load %arg2[%c0_8, %c0_9] : memref<2x128xbf16, #tpu.memory_space<vmem>>, vector<2x128xbf16>
      %11 = arith.extf %10 : vector<2x128xbf16> to vector<2x128xf32>
      %cst_10 = arith.constant dense<0.000000e+00> : vector<2xf32>
      %12 = vector.multi_reduction <add>, %11, %cst_10 [1] : vector<2x128xf32> to vector<2xf32>
      %13 = vector.shape_cast %12 : vector<2xf32> to vector<2x1xf32>
      %cst_11 = arith.constant 1.280000e+02 : f32
      %14 = vector.broadcast %cst_11 : f32 to vector<2x1xf32>
      %15 = arith.divf %13, %14 : vector<2x1xf32>
      %16 = vector.broadcast %15 : vector<2x1xf32> to vector<2x128xf32>
      %17 = arith.subf %11, %16 : vector<2x128xf32>
      %18 = arith.mulf %17, %17 : vector<2x128xf32>
      %cst_12 = arith.constant dense<0.000000e+00> : vector<2xf32>
      %19 = vector.multi_reduction <add>, %18, %cst_12 [1] : vector<2x128xf32> to vector<2xf32>
      %20 = vector.shape_cast %19 : vector<2xf32> to vector<2x1xf32>
      %cst_13 = arith.constant 1.280000e+02 : f32
      %21 = vector.broadcast %cst_13 : f32 to vector<2x1xf32>
      %22 = arith.divf %20, %21 : vector<2x1xf32>
      %cst_14 = arith.constant 9.99999974E-6 : f32
      %23 = vector.broadcast %cst_14 : f32 to vector<2x1xf32>
      %24 = arith.addf %22, %23 : vector<2x1xf32>
      %25 = math.rsqrt %24 : vector<2x1xf32>
      %26 = vector.broadcast %15 : vector<2x1xf32> to vector<2x128xf32>
      %27 = arith.subf %11, %26 : vector<2x128xf32>
      %28 = vector.broadcast %25 : vector<2x1xf32> to vector<2x128xf32>
      %29 = arith.mulf %27, %28 : vector<2x128xf32>
      %c0_15 = arith.constant 0 : index
      %c0_16 = arith.constant 0 : index
      %30 = vector.load %arg3[%c0_15, %c0_16] : memref<1x128xf32, #tpu.memory_space<vmem>>, vector<1x128xf32>
      %31 = vector.broadcast %30 : vector<1x128xf32> to vector<2x128xf32>
      %32 = arith.mulf %29, %31 : vector<2x128xf32>
      %c0_17 = arith.constant 0 : index
      %c0_18 = arith.constant 0 : index
      %33 = vector.load %arg4[%c0_17, %c0_18] : memref<1x128xf32, #tpu.memory_space<vmem>>, vector<1x128xf32>
      %34 = vector.broadcast %33 : vector<1x128xf32> to vector<2x128xf32>
      %35 = arith.addf %32, %34 : vector<2x128xf32>
      %36 = arith.truncf %35 : vector<2x128xf32> to vector<2x128xbf16>
      %c0_19 = arith.constant 0 : index
      %c0_20 = arith.constant 0 : index
      %37 = vector.load %arg8[%c0_19, %c0_20] : memref<2x128xbf16, #tpu.memory_space<vmem>>, vector<2x128xbf16>
      tpu.vector_store %arg8[%c0_19, %c0_20], %36 {strides = array<i32>} : memref<2x128xbf16, #tpu.memory_space<vmem>>, vector<2x128xbf16>,
    } else {
    }
    %c0 = arith.constant 0 : index
    %c0_1 = arith.constant 0 : index
    %3 = vector.load %arg8[%c0, %c0_1] : memref<2x128xbf16, #tpu.memory_space<vmem>>, vector<2x128xbf16>
    %c0_2 = arith.constant 0 : index
    %c0_3 = arith.constant 0 : index
    %4 = vector.load %arg5[%c0_2, %c0_3] : memref<128x128xbf16, #tpu.memory_space<vmem>>, vector<128x128xbf16>
    %cst = arith.constant dense<0.000000e+00> : vector<2x128xf32>
    %5 = tpu.matmul %3, %4, %cst {dimension_numbers = #tpu.dot_dimension_numbers<[1], [0], [0], [1], [0, 0, 1, 1], [], []>} : vector<2x128xbf16>, vector<128x128xbf16>, vector<2x128xf32> -> vector<2x128xf32>
    %c0_4 = arith.constant 0 : index
    %c0_5 = arith.constant 0 : index
    %6 = vector.load %arg6[%c0_4, %c0_5] : memref<1x128xf32, #tpu.memory_space<vmem>>, vector<1x128xf32>
    %7 = vector.broadcast %6 : vector<1x128xf32> to vector<2x128xf32>
    %8 = arith.addf %5, %7 : vector<2x128xf32>
    %c0_6 = arith.constant 0 : index
    %c0_7 = arith.constant 0 : index
    %9 = vector.load %arg7[%c0_6, %c0_7] : memref<2x128xf32, #tpu.memory_space<vmem>>, vector<2x128xf32>
    tpu.vector_store %arg7[%c0_6, %c0_7], %8 {strides = array<i32>} : memref<2x128xf32, #tpu.memory_space<vmem>>, vector<2x128xf32>,
    return
  }
  func.func @transform_0(%arg0: i32, %arg1: i32) -> (i32, i32) {
    %c0_i32 = arith.constant 0 : i32
    %c0_i32_0 = arith.constant 0 : i32
    return %arg0, %c0_i32 : i32, i32
  }
  func.func @transform_1(%arg0: i32, %arg1: i32) -> (i32, i32) {
    %c0_i32 = arith.constant 0 : i32
    %c0_i32_0 = arith.constant 0 : i32
    %c0_i32_1 = arith.constant 0 : i32
    return %c0_i32, %c0_i32_0 : i32, i32
  }
  func.func @transform_2(%arg0: i32, %arg1: i32) -> (i32, i32) {
    %c0_i32 = arith.constant 0 : i32
    %c0_i32_0 = arith.constant 0 : i32
    %c0_i32_1 = arith.constant 0 : i32
    return %c0_i32, %c0_i32_0 : i32, i32
  }
  func.func @transform_3(%arg0: i32, %arg1: i32) -> (i32, i32) {
    %c0_i32 = arith.constant 0 : i32
    %c0_i32_0 = arith.constant 0 : i32
    return %c0_i32, %arg1 : i32, i32
  }
  func.func @transform_4(%arg0: i32, %arg1: i32) -> (i32, i32) {
    %c0_i32 = arith.constant 0 : i32
    %c0_i32_0 = arith.constant 0 : i32
    return %c0_i32, %arg1 : i32, i32
  }
  func.func @transform_5(%arg0: i32, %arg1: i32) -> (i32, i32) {
    %c0_i32 = arith.constant 0 : i32
    return %arg0, %arg1 : i32, i32
  }
}

</mosaic_0001>

<bundles_post_ra>
// kernel: vit_forward.10
= control target key start
LH: loop header
LB: loop body
LE: loop exit
PB: predicated region body
PF: predicated region fallthrough
CT: control target
= control target key end

     0   :  { %s691_s24 = smov 0   ;;  %s769_s0 = inlined_call_operand.vmem [shape: bf16[2,16,192], index: 0, kind: input, shape index: {}]   ;;  %s770_s1 = inlined_call_operand.vmem [shape: bf16[192,128], index: 1, kind: input, shape index: {}]   ;;  %s771_s2 = inlined_call_operand.vmem [shape: f32[1,128], index: 2, kind: input, shape index: {}]   ;;  %s772_s3 = inlined_call_operand.vmem [shape: f32[1,128], index: 3, kind: input, shape index: {}]   ;;  %s773_s4 = inlined_call_operand.vmem [shape: f32[1,128], index: 4, kind: input, shape index: {}]   ;;  %s774_s5 = inlined_call_operand.vmem [shape: f32[1,1,128], index: 5, kind: input, shape index: {}]   ;;  %s775_s6 = inlined_call_operand.vmem [shape: f32[1,17,128], index: 6, kind: input, shape index: {}]   ;;  %s776_s7 = inlined_call_operand.vmem [shape: bf16[2,17,128], index: 7, kind: output, shape index: {}]  }
   0x1 LB: > { %s573_s25 = sadd.s32 4294967295, %s648_s24   ;;  %p577_p0 = scmp.ge.s32.totalorder %s648_s24, 1  ;;  %s648_s24 = sphi %s691_s24, %s17_s24  }
   0x2   : > { %p237_p1 = scmp.lt.s32.totalorder %s648_s24, 3 }
   0x4   : > { %p238_p2 = pnand %p577_p0, %p237_p1 }
   0x5   : > { %v623_v0 = vld [vmem:[%s770_s1] sm:$0xff] (!%p238_p2)   ;;  %v650_v1 = vmov (!%p238_p2), 0   ;;  %p269_p3 = scmp.lt.s32.totalorder (!%p238_p2), %s573_s25, 1  ;;  %v624_v2 = vld [vmem:[%s770_s1 + $0x8] sm:$0xff] (!%p238_p2)   ;;  %v625_v3 = vld [vmem:[%s770_s1 + $0x10] sm:$0xff] (!%p238_p2)   ;;  %vm394_vm0 = vcmask (!%p238_p2), 523264  }
   0x6   : > { %241 = sbr.rel (%p238_p2) target bundleno = 591 (0x24f), region = 48  ;;  %398 = vmatprep.subr.bf16.mxu0 (!%p238_p2), %v650_v1  ;;  %v626_v4 = vld [vmem:[%s770_s1 + $0x18] sm:$0xff] (!%p238_p2)   ;;  %v627_v6 = vld [vmem:[%s770_s1 + $0x20] sm:$0xff] (!%p238_p2)   ;;  %v628_v7 = vld [vmem:[%s770_s1 + $0x28] sm:$0xff] (!%p238_p2)   ;;  %vm483_vm1 = vcmask (!%p238_p2), 1040384  }
   0x7   : > { %399 = vmatpush1.bf16.msra.mxu0 (!%p238_p2), %v623_v0  ;;  %v629_v8 = vld [vmem:[%s770_s1 + $0x30] sm:$0xff] (!%p238_p2)   ;;  %v630_v9 = vld [vmem:[%s770_s1 + $0x38] sm:$0xff] (!%p238_p2)   ;;  %v631_v10 = vld [vmem:[%s770_s1 + $0x40] sm:$0xff] (!%p238_p2)   ;;  %vm513_vm2 = vsmask.f32 (!%p238_p2), 256 }
   0x8   : > { %400 = vmatprep.subr.bf16.mxu0 (!%p238_p2), %v650_v1  ;;  %v632_v11 = vld [vmem:[%s770_s1 + $0x48] sm:$0xff] (!%p238_p2)   ;;  %v633_v12 = vld [vmem:[%s770_s1 + $0x50] sm:$0xff] (!%p238_p2)   ;;  %v634_v13 = vld [vmem:[%s770_s1 + $0x58] sm:$0xff] (!%p238_p2)  }
   0x9   : > { %v581_v15 = vld [vmem:[%s771_s2] ss:$0 sm:$0xff] (!%p238_p2)  ;;  %v493_v48 = vld [vmem:[%s775_s6 + $0x10] sm:$0x1] (!%p238_p2)  ;;  %v492_v51 = vld [vmem:[%s775_s6 + $0x8] sm:$0xff] (!%p238_p2) }
   0xa   : > { %v597_v37 = vld [vmem:[%s772_s3] ss:$0 sm:$0xff] (!%p238_p2)  ;;  %vm514_vm3 = vmand (!%p238_p2), %vm483_vm1, %vm513_vm2 }
   0xb   : > { %401 = vmatpush1.bf16.msra.mxu0 (!%p238_p2), %v624_v2  ;;  %v598_v39 = vld [vmem:[%s773_s4] ss:$0 sm:$0xff] (!%p238_p2) }
   0xc   : > { %402 = vmatprep.subr.bf16.mxu0 (!%p238_p2), %v650_v1  ;;  %v480_v46 = vld [vmem:[%s774_s5] sm:$0x1] (!%p238_p2) }
   0xd   : > { %s778_s25 = smov (!%p269_p3, %s573_s25), 1  ;;  %v491_v49 = vld [vmem:[%s775_s6] sm:$0xff] }
   0xe   : > { %s604_s9 = sshll.u32 %s778_s25, 4  ;;  %s613_s16 = smul.u32 12, %s778_s25 }
   0xf   : > { %403 = vmatpush1.bf16.msra.mxu0 %v625_v3  ;;  %s273_s14 = scalar_lea.vmem %s769_s0, %s604_s9 }
  0x10   : > { %404 = vmatprep.subr.bf16.mxu0 %v650_v1  ;;  %v637_v5 = vld [vmem:[%s273_s14 + $0x4] ss:$8 sps:$4 sm:$0xff]   ;;  %v635_v14 = vld [vmem:[%s273_s14] ss:$8 sps:$4 sm:$0xff]   ;;  %s278_s23 = scalar_lea.vmem %s776_s7, %s613_s16 }
  0x11   : > { %596 = vmatprep.mubr.msk.bf16.mxu0 %vm394_vm0, %v637_v5  ;;  %v515_v55 = vld [vmem:[%s278_s23 + $0x8] sm:$0x1] }
  0x13   : > { %405 = vmatpush1.bf16.msra.mxu0 %v626_v4 }
  0x14   : > { %406 = vmatprep.subr.bf16.mxu0 %v650_v1 }
  0x17   : > { %407 = vmatpush1.bf16.msra.mxu0 %v627_v6 }
  0x18   : > { %408 = vmatprep.subr.bf16.mxu0 %v650_v1 }
  0x1b   : > { %409 = vmatpush1.bf16.msra.mxu0 %v628_v7 }
  0x1c   : > { %410 = vmatprep.subr.bf16.mxu0 %v650_v1 }
  0x1f   : > { %411 = vmatpush1.bf16.msra.mxu0 %v629_v8 }
  0x20   : > { %412 = vmatprep.subr.bf16.mxu0 %v650_v1 }
  0x23   : > { %413 = vmatpush1.bf16.msra.mxu0 %v630_v9 }
  0x24   : > { %414 = vmatprep.subr.bf16.mxu0 %v650_v1 }
  0x27   : > { %415 = vmatpush1.bf16.msra.mxu0 %v631_v10 }
  0x28   : > { %416 = vmatprep.subr.bf16.mxu0 %v650_v1 }
  0x2b   : > { %417 = vmatpush1.bf16.msra.mxu0 %v632_v11 }
  0x2c   : > { %418 = vmatprep.subr.bf16.mxu0 %v650_v1 }
  0x2f   : > { %419 = vmatpush1.bf16.msra.mxu0 %v633_v12 }
  0x30   : > { %420 = vmatprep.subr.bf16.mxu0 %v650_v1 }
  0x33   : > { %421 = vmatpush1.bf16.msra.mxu0 %v634_v13 }
  0x36   : > { %431 = vmatmul.mubr.bf16.vlgmr.msra.gmra.mrb[0].mxu0 %v635_v14 }
 0x109   : > { %v432_v16 = vpop.f32.mrb[0].mxu0 }
 0x10a   : > { %v433_v17 = vadd.f32 %v581_v15, %v432_v16  ;;  %v434_v18 = vpop.f32.mrb[1].mxu0 }
 0x10b   : > { %v435_v19 = vpop.f32.mrb[2].mxu0 }
 0x10c   : > { %v437_v20 = vpop.f32.mrb[3].mxu0  ;;  %439 = vadd.xlane.f32.xlu0 %v433_v17  ;;  %v436_v21 = vadd.f32 %v581_v15, %v435_v19 }
 0x110   : > { %441 = vadd.xlane.f32.xlu0 %v436_v21 }
 0x199   : > { %v440_v22 = vpop.xlane.xlu0 %439 }
 0x19a   : > { %v444_v23 = vmul.f32 0.0078125, %v440_v22 }
 0x19c   : > { %v446_v24 = vsub.f32 %v433_v17, %v444_v23 }
 0x19d   : > { %v442_v25 = vpop.xlane.xlu0 %441 }
 0x19e   : > { %v445_v26 = vmul.f32 0.0078125, %v442_v25  ;;  %v448_v27 = vmul.f32 %v446_v24, %v446_v24 }
 0x1a0   : > { %v447_v28 = vsub.f32 %v436_v21, %v445_v26  ;;  %450 = vadd.xlane.f32.xlu1 %v448_v27 }
 0x1a2   : > { %v449_v29 = vmul.f32 %v447_v28, %v447_v28 }
 0x1a4   : > { %452 = vadd.xlane.f32.xlu1 %v449_v29 }
 0x22d   : > { %v451_v30 = vpop.xlane.xlu1 %450 }
 0x22e   : > { %v454_v31 = vmul.f32 0.0078125, %v451_v30 }
 0x230   : > { %v456_v32 = vadd.f32 1e-05, %v454_v31 }
 0x231   : > { %v453_v33 = vpop.xlane.xlu1 %452 }
 0x232   : > { %638 = vrsqrt.f32 %v456_v32  ;;  %v455_v34 = vmul.f32 0.0078125, %v453_v33 }
 0x234   : > { %v457_v35 = vadd.f32 1e-05, %v455_v34 }
 0x236   : > { %640 = vrsqrt.f32 %v457_v35 }
 0x23c   : > { %v639_v36 = vpop.eup %638 }
 0x23d   : > { %v460_v38 = vmul.f32 %v639_v36, %v446_v24 }
 0x23f   : > { %v469_v40 = vmul.f32 %v597_v37, %v460_v38 }
 0x240   : > { %v641_v41 = vpop.eup %640 }
 0x241   : > { %v478_v42 = vadd.f32 %v598_v39, %v469_v40  ;;  %v461_v43 = vmul.f32 %v641_v41, %v447_v28 }
 0x243   : > { %v484_v44 = vrot.slane %v478_v42, 7  ;;  %v470_v45 = vmul.f32 %v597_v37, %v461_v43 }
 0x245   : > { %v479_v47 = vadd.f32 %v598_v39, %v470_v45  ;;  %v490_v50 = vsel %vm483_vm1, %v480_v46, %v484_v44 }
 0x246   : > { %v494_v56 = vadd.f32 %v491_v49, %v490_v50 }
 0x247   : > { %v485_v52 = vrot.slane %v479_v47, 7 }
 0x249   : > { %v486_v53 = vsel %vm483_vm1, %v484_v44, %v485_v52  ;;  %v496_v54 = vadd.f32 %v493_v48, %v485_v52 }
 0x24a   : > { %v495_v57 = vadd.f32 %v492_v51, %v486_v53 }
 0x24b   : > { %v607_v58 = vpack.c.bf16 %v496_v54, %v496_v54 }
 0x24c   : > { %v611_v59 = vpack.c.bf16 %v495_v57, %v494_v56 }
 0x24d   : > { %v516_v60 = vsel %vm514_vm3, %v607_v58, %v515_v55 }
 0x24e   : > { %612 = vst [vmem:[%s278_s23] sm:$0xff] %v611_v59   ;;  %517 = vst [vmem:[%s278_s23 + $0x8] sm:$0x1] %v516_v60 }
 0x24f PF: > { %s17_s24 = sadd.s32 1, %s648_s24  }
 0x250   : > { %p14_p4 = scmp.ge.s32.totalorder %s17_s24, 4  }
 0x252   :  { %16 = sbr.rel (!%p14_p4) target bundleno = 1 (0x1), region = 78 }

// kernel: vit_forward.11
= control target key start
LH: loop header
LB: loop body
LE: loop exit
PB: predicated region body
PF: predicated region fallthrough
CT: control target
= control target key end

     0   :  { %s915_s18 = smov 0   ;;  %s917_s19 = smov 0   ;;  %s998_s0 = inlined_call_operand.vmem [shape: bf16[34,128], index: 0, kind: input, shape index: {}]   ;;  %s999_s1 = inlined_call_operand.vmem [shape: f32[1,128], index: 1, kind: input, shape index: {}]   ;;  %s1000_s2 = inlined_call_operand.vmem [shape: f32[1,128], index: 2, kind: input, shape index: {}]   ;;  %s1001_s3 = inlined_call_operand.vmem [shape: bf16[4,128,96], index: 3, kind: input, shape index: {}]   ;;  %s1002_s4 = inlined_call_operand.vmem [shape: f32[4,1,96], index: 4, kind: input, shape index: {}]   ;;  %s1003_s5 = inlined_call_operand.vmem [shape: bf16[4,34,96], index: 5, kind: output, shape index: {}]  }
   0x1   :  { %s919_s20 = smov 0  }
   0x2 LB: > { %s24_s21 = sadd.s32 1, %s877_s19  ;;  %p694_p0 = scmp.ge.s32.totalorder %s881_s20, 1  ;;  %s881_s20 = sphi %s919_s20, %s15_s20   ;;  %s877_s19 = sphi %s917_s19, %s1005_s19   ;;  %s873_s18 = sphi %s915_s18, %s1004_s18  }
   0x3   : > { %p25_p1 = scmp.ge.s32.totalorder %s24_s21, 4  ;;  %p220_p2 = scmp.lt.s32.totalorder %s881_s20, 5 }
   0x5   : > { %s1007_s21 = smov (%p25_p1, %s24_s21), 0  ;;  %p221_p3 = pnand %p694_p0, %p220_p2 }
   0x6   : > { %p266_p4 = scmp.lt.s32.totalorder (!%p221_p3), %s873_s18, 3  ;;  %p698_p5 = scmp.ne.s32.totalorder (!%p221_p3), %s873_s18, 0 }
   0x7   : > { %224 = sbr.rel (%p221_p3) target bundleno = 599 (0x257), region = 40 }
   0xe   : > { %s933_s22 = scalar_select %p266_p4, %s873_s18, 3 }
   0xf   : > { %288 = sbr.rel (%p698_p5) target bundleno = 341 (0x155), region = 44  ;;  %v737_v0 = vld [vmem:[%s998_s0] sm:$0xff] (!%p698_p5)   ;;  %v754_v1 = vld [vmem:[%s998_s0 + $0x8] sm:$0xff] (!%p698_p5)   ;;  %v293_v2 = vld [vmem:[%s998_s0 + $0x10] sm:$0x1] (!%p698_p5)  ;;  %vm307_vm0 = vcmask (!%p698_p5), 1041408  }
  0x10   : > { %s725_s23 = sshll.u32 %s933_s22, 6  ;;  %s273_s26 = scalar_lea.vmem %s1002_s4, %s933_s22  ;;  %v739_v3 = vunpack.c.h.bf16 (!%p698_p5), %v737_v0  ;;  %v738_v4 = vunpack.c.l.bf16 (!%p698_p5), %v737_v0  ;;  %v298_v5 = vunpack.c.l.bf16 (!%p698_p5), %v293_v2  ;;  %v742_v6 = vunpack.c.l.bf16 (!%p698_p5), %v754_v1  ;;  %v699_v46 = vld [vmem:[%s999_s1] ss:$0 sm:$0xff] (!%p698_p5) }
  0x11   : > { %s943_s29 = scalar_lea.vmem %s1001_s3, %s725_s23  ;;  %s811_s30 = smul.u32 20, %s933_s22  ;;  %v743_v8 = vunpack.c.h.bf16 (!%p698_p5), %v754_v1  ;;  %v700_v49 = vld [vmem:[%s1000_s2] ss:$0 sm:$0xff] (!%p698_p5) }
  0x12   : > { %301 = vadd.xlane.f32.xlu1 (!%p698_p5), %v739_v3  ;;  %299 = vadd.xlane.f32.xlu0 (!%p698_p5), %v738_v4  ;;  %v308_v7 = vsel (!%p698_p5), %vm307_vm0, %v298_v5, 0.0 }
  0x13   : > { %s949_s8 = scalar_lea.vmem %s1003_s5, %s811_s30 }
  0x16   : > { %303 = vadd.xlane.f32.xlu1 %v742_v6  ;;  %309 = vadd.xlane.f32.xlu0 %v308_v7 }
  0x1a   : > { %305 = vadd.xlane.f32.xlu0 %v743_v8 }
  0x9f   : > { %v302_v9 = vpop.xlane.xlu1 %301  ;;  %v300_v10 = vpop.xlane.xlu0 %299 }
  0xa0   : > { %v313_v11 = vmul.f32 0.0078125, %v302_v9  ;;  %v312_v12 = vmul.f32 0.0078125, %v300_v10 }
  0xa2   : > { %v318_v13 = vsub.f32 %v739_v3, %v313_v11  ;;  %v317_v14 = vsub.f32 %v738_v4, %v312_v12 }
  0xa3   : > { %v304_v15 = vpop.xlane.xlu1 %303  ;;  %v310_v16 = vpop.xlane.xlu0 %309 }
  0xa4   : > { %v314_v17 = vmul.f32 0.0078125, %v304_v15  ;;  %v316_v18 = vmul.f32 0.0078125, %v310_v16  ;;  %v323_v19 = vmul.f32 %v318_v13, %v318_v13  ;;  %v322_v20 = vmul.f32 %v317_v14, %v317_v14 }
  0xa6   : > { %v319_v21 = vsub.f32 %v742_v6, %v314_v17  ;;  %v321_v22 = vsub.f32 %v298_v5, %v316_v18  ;;  %329 = vadd.xlane.f32.xlu0 %v323_v19  ;;  %327 = vadd.xlane.f32.xlu1 %v322_v20 }
  0xa7   : > { %v306_v23 = vpop.xlane.xlu0 %305 }
  0xa8   : > { %v315_v24 = vmul.f32 0.0078125, %v306_v23  ;;  %v324_v25 = vmul.f32 %v319_v21, %v319_v21  ;;  %v326_v26 = vmul.f32 %v321_v22, %v321_v22 }
  0xaa   : > { %v320_v27 = vsub.f32 %v743_v8, %v315_v24  ;;  %331 = vadd.xlane.f32.xlu1 %v324_v25  ;;  %v335_v29 = vsel %vm307_vm0, %v326_v26, 0.0 }
  0xac   : > { %v325_v28 = vmul.f32 %v320_v27, %v320_v27 }
  0xae   : > { %336 = vadd.xlane.f32.xlu1 %v335_v29  ;;  %333 = vadd.xlane.f32.xlu0 %v325_v28 }
 0x133   : > { %v328_v30 = vpop.xlane.xlu1 %327  ;;  %v330_v31 = vpop.xlane.xlu0 %329 }
 0x134   : > { %v338_v32 = vmul.f32 0.0078125, %v328_v30  ;;  %v339_v33 = vmul.f32 0.0078125, %v330_v31 }
 0x136   : > { %v343_v34 = vadd.f32 1e-05, %v338_v32  ;;  %v344_v35 = vadd.f32 1e-05, %v339_v33 }
 0x137   : > { %v332_v36 = vpop.xlane.xlu1 %331 }
 0x138   : > { %838 = vrsqrt.f32 %v343_v34  ;;  %v340_v37 = vmul.f32 0.0078125, %v332_v36 }
 0x139   : > { %840 = vrsqrt.f32 %v344_v35 }
 0x13a   : > { %v345_v38 = vadd.f32 1e-05, %v340_v37 }
 0x13b   : > { %v337_v39 = vpop.xlane.xlu1 %336  ;;  %v334_v40 = vpop.xlane.xlu0 %333 }
 0x13c   : > { %842 = vrsqrt.f32 %v345_v38  ;;  %v342_v41 = vmul.f32 0.0078125, %v337_v39  ;;  %v341_v42 = vmul.f32 0.0078125, %v334_v40 }
 0x13e   : > { %v347_v43 = vadd.f32 1e-05, %v342_v41  ;;  %v346_v44 = vadd.f32 1e-05, %v341_v42 }
 0x140   : > { %844 = vrsqrt.f32 %v347_v43 }
 0x141   : > { %846 = vrsqrt.f32 %v346_v44 }
 0x142   : > { %v839_v45 = vpop.eup %838 }
 0x143   : > { %v841_v47 = vpop.eup %840  ;;  %v353_v48 = vmul.f32 %v839_v45, %v317_v14 }
 0x144   : > { %v354_v50 = vmul.f32 %v841_v47, %v318_v13 }
 0x145   : > { %v365_v51 = vmul.f32 %v699_v46, %v353_v48 }
 0x146   : > { %v843_v52 = vpop.eup %842  ;;  %v366_v53 = vmul.f32 %v699_v46, %v354_v50 }
 0x147   : > { %v377_v54 = vadd.f32 %v700_v49, %v365_v51  ;;  %v355_v56 = vmul.f32 %v843_v52, %v319_v21 }
 0x148   : > { %v378_v55 = vadd.f32 %v700_v49, %v366_v53 }
 0x149   : > { %v367_v61 = vmul.f32 %v699_v46, %v355_v56 }
 0x14a   : > { %v845_v57 = vpop.eup %844  ;;  %v747_v58 = vpack.c.bf16 %v378_v55, %v377_v54 }
 0x14b   : > { %v847_v59 = vpop.eup %846  ;;  %v357_v60 = vmul.f32 %v845_v57, %v321_v22  ;;  %v379_v2 = vadd.f32 %v700_v49, %v367_v61 }
 0x14c   : > { %748 = vst [vmem:[#allocation2] sm:$0xff] %v747_v58   ;;  %v356_v62 = vmul.f32 %v847_v59, %v320_v27 }
 0x14d   : > { %v369_v63 = vmul.f32 %v699_v46, %v357_v60 }
 0x14e   : > { %v368_v0 = vmul.f32 %v699_v46, %v356_v62 }
 0x14f   : > { %v381_v1 = vadd.f32 %v700_v49, %v369_v63 }
 0x150   : > { %v380_v3 = vadd.f32 %v700_v49, %v368_v0 }
 0x151   : > { %v730_v4 = vpack.c.bf16 %v381_v1, %v381_v1 }
 0x152   : > { %v752_v5 = vpack.c.bf16 %v380_v3, %v379_v2 }
 0x153   : > { %407 = vst [vmem:[#allocation2 + $0x10] sm:$0x1] %v730_v4 }
 0x154   : > { %755 = vst [vmem:[#allocation2 + $0x8] sm:$0xff] %v752_v5  }
 0x155 PF: > { %v848_v6 = vld [vmem:[%s943_s29] sm:$0xff]   ;;  %v883_v7 = vmov 0.0   ;;  %v849_v8 = vld [vmem:[%s943_s29 + $0x8] sm:$0xff]   ;;  %vm884_vm1 = vmmov 0   ;;  %v850_v9 = vld [vmem:[%s943_s29 + $0x10] sm:$0xff]   ;;  %vm577_vm2 = vcmask 781312  }
 0x156   : > { %795 = vmatprep.subr.bf16.mxu1 %v883_v7  ;;  %767 = vmatprep.subr.bf16.mxu0 %v883_v7  ;;  %v851_v10 = vld [vmem:[%s943_s29 + $0x18] sm:$0xff]   ;;  %v852_v11 = vld [vmem:[%s943_s29 + $0x20] sm:$0xff]   ;;  %v853_v12 = vld [vmem:[%s943_s29 + $0x28] sm:$0xff]   ;;  %vm582_vm3 = vcmask 778240  }
 0x157   : > { %803 = vmatpush3.bf16.msra.mxu1 %v848_v6  ;;  %768 = vmatpush3.bf16.msra.mxu0 %v848_v6  ;;  %v854_v13 = vld [vmem:[%s943_s29 + $0x30] sm:$0xff]   ;;  %v855_v14 = vld [vmem:[%s943_s29 + $0x38] sm:$0xff]   ;;  %v857_v16 = vld [vmem:[#allocation2] sm:$0xff]  }
 0x158   : > { %796 = vmatprep.subr.bf16.mxu1 %v883_v7  ;;  %769 = vmatprep.subr.bf16.mxu0 %v883_v7  ;;  %v706_v18 = vld [vmem:[%s273_s26] ss:$0 sm:$0xff] }
 0x159   : > { %787 = vmatprep.mubr.msk.bf16.mxu1 %vm884_vm1, %v883_v7  ;;  %783 = vmatprep.mubr.msk.bf16.mxu0 %vm884_vm1, %v883_v7 }
 0x15a   : > { %v858_v17 = vld [vmem:[#allocation2 + $0x10] ss:$0 sps:$4 sm:$0x11]  }
 0x15b   : > { %804 = vmatpush3.bf16.msra.mxu1 %v849_v8  ;;  %770 = vmatpush3.bf16.msra.mxu0 %v849_v8  ;;  %v856_v15 = vld [vmem:[#allocation2 + $0x8] sm:$0xff]  }
 0x15c   : > { %797 = vmatprep.subr.bf16.mxu1 %v883_v7  ;;  %771 = vmatprep.subr.bf16.mxu0 %v883_v7 }
 0x15f   : > { %805 = vmatpush3.bf16.msra.mxu1 %v850_v9  ;;  %772 = vmatpush3.bf16.msra.mxu0 %v850_v9 }
 0x160   : > { %798 = vmatprep.subr.bf16.mxu1 %v883_v7  ;;  %773 = vmatprep.subr.bf16.mxu0 %v883_v7 }
 0x163   : > { %806 = vmatpush3.bf16.msra.mxu1 %v851_v10  ;;  %774 = vmatpush3.bf16.msra.mxu0 %v851_v10 }
 0x164   : > { %799 = vmatprep.subr.bf16.mxu1 %v883_v7  ;;  %775 = vmatprep.subr.bf16.mxu0 %v883_v7 }
 0x167   : > { %807 = vmatpush3.bf16.msra.mxu1 %v852_v11  ;;  %776 = vmatpush3.bf16.msra.mxu0 %v852_v11 }
 0x168   : > { %800 = vmatprep.subr.bf16.mxu1 %v883_v7  ;;  %777 = vmatprep.subr.bf16.mxu0 %v883_v7 }
 0x16b   : > { %808 = vmatpush3.bf16.msra.mxu1 %v853_v12  ;;  %778 = vmatpush3.bf16.msra.mxu0 %v853_v12 }
 0x16c   : > { %801 = vmatprep.subr.bf16.mxu1 %v883_v7  ;;  %779 = vmatprep.subr.bf16.mxu0 %v883_v7 }
 0x16f   : > { %809 = vmatpush3.bf16.msra.mxu1 %v854_v13  ;;  %780 = vmatpush3.bf16.msra.mxu0 %v854_v13 }
 0x170   : > { %802 = vmatprep.subr.bf16.mxu1 %v883_v7  ;;  %781 = vmatprep.subr.bf16.mxu0 %v883_v7 }
 0x173   : > { %810 = vmatpush3.bf16.msra.mxu1 %v855_v14  ;;  %782 = vmatpush3.bf16.msra.mxu0 %v855_v14 }
 0x176   : > { %788 = vmatmul.mubr.bf16.vlgmr.msra.gmra.mrb[0].mxu1 %v856_v15  ;;  %784 = vmatmul.mubr.bf16.vlgmr.msra.gmra.mrb[0].mxu0 %v857_v16 }
 0x177   : > { %791 = vmatprep.mubr.msk.bf16.mxu1 %vm884_vm1, %v883_v7 }
 0x17e   : > { %792 = vmatmul.mubr.bf16.gmra.mrb[4].mxu1 %v858_v17 }
 0x249   : > { %v542_v19 = vpop.f32.mrb[0].mxu1  ;;  %v534_v20 = vpop.f32.mrb[0].mxu0 }
 0x24a   : > { %v543_v21 = vadd.f32 %v706_v18, %v542_v19  ;;  %v789_v22 = vpop.f32.mrb[1].mxu1  ;;  %v535_v23 = vadd.f32 %v706_v18, %v534_v20  ;;  %v785_v24 = vpop.f32.mrb[1].mxu0 }
 0x24b   : > { %v545_v25 = vpop.f32.mrb[2].mxu1  ;;  %v537_v26 = vpop.f32.mrb[2].mxu0 }
 0x24c   : > { %v733_v27 = vpack.c.bf16 %v543_v21, %v543_v21  ;;  %v546_v28 = vadd.f32 %v706_v18, %v545_v25  ;;  %v731_v29 = vpack.c.bf16 %v535_v23, %v535_v23  ;;  %v790_v30 = vpop.f32.mrb[3].mxu1  ;;  %v538_v31 = vadd.f32 %v706_v18, %v537_v26  ;;  %v786_v32 = vpop.f32.mrb[3].mxu0 }
 0x24e   : > { %580 = vst.msk [vmem:[%s949_s8 + $0x8] sm:$0xf] %vm577_vm2, %v733_v27  ;;  %v734_v33 = vpack.c.bf16 %v546_v28, %v546_v28  ;;  %578 = vst.msk [vmem:[%s949_s8] sm:$0xf] %vm577_vm2, %v731_v29  ;;  %v732_v34 = vpack.c.bf16 %v538_v31, %v538_v31 }
 0x250   : > { %581 = vst.msk [vmem:[%s949_s8 + $0xc] sm:$0xf] %vm577_vm2, %v734_v33  ;;  %579 = vst.msk [vmem:[%s949_s8 + $0x4] sm:$0xf] %vm577_vm2, %v732_v34 }
 0x251   : > { %v550_v35 = vpop.f32.mrb[4].mxu1 }
 0x252   : > { %v551_v36 = vadd.f32 %v706_v18, %v550_v35  ;;  %v793_v37 = vpop.f32.mrb[5].mxu1 }
 0x253   : > { %v553_v38 = vpop.f32.mrb[6].mxu1 }
 0x254   : > { %v735_v39 = vpack.c.bf16 %v551_v36, %v551_v36  ;;  %v794_v40 = vpop.f32.mrb[7].mxu1 }
 0x256   : > { %583 = vst.msk [vmem:[%s949_s8 + $0x10] sm:$0x1] %vm582_vm3, %v735_v39 }
 0x257 PF: > { %s15_s20 = sadd.s32 1, %s881_s20   ;;  %s1004_s18 = smov %s877_s19 }
 0x258   : > { %p12_p6 = scmp.ge.s32.totalorder %s15_s20, 6   ;;  %s1005_s19 = smov %s1007_s21 }
 0x25a   :  { %14 = sbr.rel (!%p12_p6) target bundleno = 2 (0x2), region = 80 }

// kernel: vit_forward.12
= control target key start
LH: loop header
LB: loop body
LE: loop exit
PB: predicated region body
PF: predicated region fallthrough
CT: control target
= control target key end

     0   :  { %s813_s12 = smov 0   ;;  %s815_s13 = smov 0   ;;  %s903_s0 = inlined_call_operand.vmem [shape: bf16[4,2,17,96], index: 0, kind: input, shape index: {}]   ;;  %s904_s1 = inlined_call_operand.vmem [shape: bf16[4,32,128], index: 1, kind: input, shape index: {}]   ;;  %s905_s2 = inlined_call_operand.vmem [shape: f32[1,128], index: 2, kind: input, shape index: {}]   ;;  %s906_s3 = inlined_call_operand.vmem [shape: bf16[2,17,128], index: 3, kind: output, shape index: {}]  }
   0x1   :  { %s817_s14 = smov 0   ;;  %s819_s15 = smov 0  }
   0x2   :  { %s821_s16 = smov 0  }
   0x3 LB: > { %s22_s17 = sadd.s32 1, %s779_s14  ;;  %s25_s18 = sadd.s32 1, %s783_s15  ;;  %s787_s16 = sphi %s821_s16, %s13_s16   ;;  %s783_s15 = sphi %s819_s15, %s910_s15   ;;  %s779_s14 = sphi %s817_s14, %s909_s14   ;;  %s775_s13 = sphi %s815_s13, %s908_s13   ;;  %s771_s12 = sphi %s813_s12, %s907_s12  }
   0x4   : > { %p23_p0 = scmp.ge.s32.totalorder %s22_s17, 4  ;;  %p616_p1 = scmp.ge.s32.totalorder %s787_s16, 1 }
   0x5   : > { %p165_p2 = scmp.lt.s32.totalorder %s787_s16, 9 }
   0x6   : > { %s912_s17 = smov (%p23_p0, %s22_s17), 0  ;;  %s914_s18 = smov (!%p23_p0, %s25_s18), %s783_s15 }
   0x7   : > { %p166_p3 = pnand %p616_p1, %p165_p2  ;;  %p27_p4 = scmp.ge.s32.totalorder %s914_s18, 2 }
   0x8   : > { %p198_p5 = scmp.lt.s32.totalorder (!%p166_p3), %s771_s12, 3  ;;  %p200_p6 = scmp.lt.s32.totalorder (!%p166_p3), %s775_s13, 1 }
   0x9   : > { %s916_s18 = smov (%p27_p4, %s914_s18), 0  ;;  %169 = sbr.rel (%p166_p3) target bundleno = 986 (0x3da), region = 32 }
   0xa   : > { %p621_p7 = scmp.ne.s32.totalorder (!%p166_p3), %s771_s12, 0 }
  0x10   : > { %s199_s19 = scalar_select %p198_p5, %s771_s12, 3 }
  0x11   : > { %s918_s13 = smov (!%p200_p6, %s775_s13), 1  ;;  %221 = sbr.rel (%p621_p7) target bundleno = 24 (0x18), region = 36 }
  0x12   : > { %s687_s20 = smul.u32 6, %s199_s19  ;;  %s639_s21 = sshll.u32 %s199_s19, 4  ;;  %v789_v0 = vmov (!%p621_p7), 0.0  }
  0x13   : > { %s686_s22 = smul.u32 3, %s918_s13  ;;  %s850_s25 = scalar_lea.vmem %s904_s1, %s639_s21  ;;  %222 = vst [vmem:[#allocation2] sm:$0xff] (!%p621_p7), %v789_v0  ;;  %223 = vst [vmem:[#allocation2 + $0x8] sm:$0xff] (!%p621_p7), %v789_v0 }
  0x14   : > { %s688_s26 = smul.u32 12, %s918_s13  ;;  %224 = vst [vmem:[#allocation2 + $0x10] sm:$0x1] (!%p621_p7), %v789_v0 }
  0x15   : > { %s204_s27 = sadd.s32 %s687_s20, %s686_s22 }
  0x16   : > { %s617_s28 = sshll.u32 %s204_s27, 2  ;;  %s855_s4 = scalar_lea.vmem %s906_s3, %s688_s26 }
  0x17   : > { %s206_s7 = scalar_lea.vmem %s903_s0, %s617_s28 }
  0x18 PF: > { %v733_v1 = vld [vmem:[%s206_s7] sm:$0xff]   ;;  %v734_v2 = vld [vmem:[%s206_s7 + $0x8] ss:$0 sps:$4 sm:$0x11]   ;;  %vm240_vm0 = vcmask 261120   ;;  %s790_s8 = smov 96  }
  0x19   : > { %236 = vrot.lane.b32.xlu0 %v733_v1, %s790_s8  ;;  %664 = vmatprep.mubr.msk.bf16.mxu0 %vm240_vm0, %v733_v1  ;;  %s791_s9 = smov 64   ;;  %vm308_vm1 = vcmask 131072   ;;  %vm301_vm2 = vcmask 138240   ;;  %vm343_vm3 = vcmask 1040384   ;;  %v792_v23 = vmov 0   ;;  %v735_v36 = vld [vmem:[%s850_s25] sm:$0xff]  }
  0x1a   : > { %332 = vrot.lane.b32.xlu1 %v733_v1, %s791_s9  ;;  %v345_v24 = vsel %vm343_vm3, 65535, %v792_v23  ;;  %v736_v37 = vld [vmem:[%s850_s25 + $0x8] sm:$0xff]   ;;  %v403_v54 = vld [vmem:[#allocation2] sm:$0xff]  ;;  %p632_p8 = scmp.ne.s32.totalorder %s771_s12, 3 }
  0x1b   : > { %v405_v53 = vld [vmem:[#allocation2 + $0x10] sm:$0x1]  ;;  %v404_v58 = vld [vmem:[#allocation2 + $0x8] sm:$0xff]  ;;  %v633_v1 = vld [vmem:[%s905_s2] ss:$0 sm:$0xff] (!%p632_p8) }
  0x1c   : > { %vm520_vm4 = vsmask.f32 (!%p632_p8), 256 }
  0x1d   : > { %238 = vrot.lane.b32.xlu0 %v734_v2, %s790_s8  ;;  %vm521_vm5 = vmand (!%p632_p8), %vm343_vm3, %vm520_vm4 }
  0x8b   : > { %v237_v3 = vpop.permute.xlu0 %236 }
  0x8c   : > { %684 = vmatprep.subr.msk.bf16.mxu0 %vm240_vm0, %v237_v3  ;;  %v248_v4 = vsel %vm240_vm0, %v237_v3, 0  ;;  %v333_v7 = vpop.permute.xlu1 %332 }
  0x8d   : > { %661 = vmatpush3.bf16.xpose.msra.mxu0 %v248_v4  ;;  %668 = vmatprep.subr.bf16.mxu1 %v333_v7 }
  0x8e   : > { %669 = vmatpush3.bf16.msra.mxu1 %v333_v7 }
  0x8f   : > { %v239_v5 = vpop.permute.xlu0 %238 }
  0x90   : > { %685 = vmatprep.subr.msk.bf16.mxu0 %vm240_vm0, %v239_v5  ;;  %v251_v6 = vsel %vm240_vm0, %v239_v5, 0 }
  0x95   : > { %663 = vmatpush3.bf16.xpose.msra.mxu0 %v251_v6 }
  0x9c   : > { %665 = vmatmul.mubr.msk.bf16.vlgmr.msra.gmra.mrb[0].mxu0 %vm240_vm0, %v734_v2 }
 0x16f   : > { %v666_v8 = vpop.f32.mrb[0].mxu0 }
 0x170   : > { %v287_v9 = vpop.f32.mrb[1].mxu0  ;;  %v309_v10 = vsel %vm308_vm1, %v666_v8, -inf }
 0x171   : > { %310 = vmax.xlane.f32.xlu0 %v309_v10  ;;  %v667_v11 = vpop.f32.mrb[2].mxu0  ;;  %v302_v12 = vsel %vm301_vm2, %v287_v9, -inf  ;;  %v522_v10 = vld [vmem:[%s855_s4 + $0x8] sm:$0x1] (!%p632_p8) }
 0x172   : > { %303 = vmax.xlane.f32.xlu1 %v302_v12  ;;  %v290_v13 = vpop.f32.mrb[3].mxu0 }
 0x173   : > { %v305_v14 = vsel %vm301_vm2, %v290_v13, -inf }
 0x176   : > { %306 = vmax.xlane.f32.xlu1 %v305_v14 }
 0x187   : > { %334 = vrot.lane.b32.xlu1 %v734_v2, %s791_s9 }
 0x1fe   : > { %v311_v15 = vpop.xlane.xlu0 %310 }
 0x1ff   : > { %v314_v16 = vsub.f32 %v666_v8, %v311_v15  ;;  %v304_v17 = vpop.xlane.xlu1 %303 }
 0x200   : > { %v312_v18 = vsub.f32 %v287_v9, %v304_v17 }
 0x201   : > { %v319_v20 = vmul.f32 1.442695, %v314_v16 }
 0x202   : > { %v315_v19 = vmul.f32 1.442695, %v312_v18 }
 0x203   : > { %v307_v21 = vpop.xlane.xlu1 %306 }
 0x204   : > { %737 = vpow2.f32 %v315_v19  ;;  %v313_v22 = vsub.f32 %v290_v13, %v307_v21 }
 0x205   : > { %739 = vpow2.f32 %v319_v20 }
 0x206   : > { %v317_v25 = vmul.f32 1.442695, %v313_v22 }
 0x207   : > { %v335_v26 = vpop.permute.xlu1 %334 }
 0x208   : > { %741 = vpow2.f32 %v317_v25  ;;  %v347_v27 = vand.u32 %v345_v24, %v335_v26 }
 0x20a   : > { %670 = vmatprep.subr.bf16.mxu1 %v347_v27 }
 0x20b   : > { %671 = vmatpush3.bf16.msra.mxu1 %v347_v27 }
 0x20c   : > { %676 = vmatprep.subr.bf16.mxu1 %v735_v36 }
 0x20e   : > { %v738_v28 = vpop.eup %737 }
 0x20f   : > { %v321_v29 = vsel %vm301_vm2, %v738_v28, 0.0  ;;  %v740_v30 = vpop.eup %739 }
 0x210   : > { %322 = vadd.xlane.f32.xlu1 %v321_v29  ;;  %v331_v34 = vpack.c.bf16 %v740_v30, %v740_v30  ;;  %v327_v35 = vsel %vm308_vm1, %v740_v30, 0.0 }
 0x212   : > { %v742_v31 = vpop.eup %741 }
 0x213   : > { %v324_v32 = vsel %vm301_vm2, %v742_v31, 0.0  ;;  %v330_v33 = vpack.c.bf16 %v742_v31, %v738_v28 }
 0x214   : > { %325 = vadd.xlane.f32.xlu0 %v324_v32 }
 0x215   : > { %672 = vmatprep.mubr.msk.bf16.mxu1 %vm301_vm2, %v330_v33 }
 0x216   : > { %673 = vmatmul.mubr.msk.bf16.vlgmr.msra.gmra.mrb[0].mxu1 %vm301_vm2, %v331_v34 }
 0x217   : > { %677 = vmatpush3.bf16.msra.mxu1 %v735_v36 }
 0x218   : > { %328 = vadd.xlane.f32.xlu0 %v327_v35  ;;  %678 = vmatprep.subr.bf16.mxu1 %v736_v37 }
 0x21b   : > { %679 = vmatpush3.bf16.msra.mxu1 %v736_v37 }
 0x29d   : > { %v323_v39 = vpop.xlane.xlu1 %322 }
 0x29e   : > { %743 = vrcp.f32 %v323_v39 }
 0x2a1   : > { %v326_v38 = vpop.xlane.xlu0 %325 }
 0x2a5   : > { %v329_v40 = vpop.xlane.xlu0 %328 }
 0x2a6   : > { %745 = vrcp.f32 %v329_v40 }
 0x2a7   : > { %747 = vrcp.f32 %v326_v38 }
 0x2a8   : > { %v744_v42 = vpop.eup %743 }
 0x2b0   : > { %v746_v44 = vpop.eup %745 }
 0x2b1   : > { %v748_v46 = vpop.eup %747 }
 0x2e9   : > { %v674_v41 = vpop.f32.mrb[0].mxu1 }
 0x2ea   : > { %v383_v43 = vpop.f32.mrb[1].mxu1  ;;  %v402_v47 = vmul.f32 %v746_v44, %v674_v41 }
 0x2eb   : > { %v675_v45 = vpop.f32.mrb[2].mxu1  ;;  %v400_v49 = vmul.f32 %v744_v42, %v383_v43 }
 0x2ec   : > { %v386_v48 = vpop.f32.mrb[3].mxu1  ;;  %v407_v52 = vpack.c.bf16 %v402_v47, %v402_v47 }
 0x2ed   : > { %v401_v50 = vmul.f32 %v748_v46, %v386_v48 }
 0x2ef   : > { %v406_v51 = vpack.c.bf16 %v401_v50, %v400_v49 }
 0x2f1   : > { %680 = vmatprep.mubr.msk.bf16.mxu1 %vm240_vm0, %v406_v51 }
 0x2f2   : > { %681 = vmatmul.mubr.msk.bf16.vlgmr.msra.gmra.mrb[4].mxu1 %vm240_vm0, %v407_v52 }
 0x3c5   : > { %v682_v55 = vpop.f32.mrb[4].mxu1  ;;  %487 = sbr.rel (%p632_p8) target bundleno = 986 (0x3da), region = 40 }
 0x3c6   : > { %v480_v56 = vadd.f32 %v682_v55, %v405_v53  ;;  %v464_v57 = vpop.f32.mrb[5].mxu1 }
 0x3c7   : > { %v478_v59 = vadd.f32 %v464_v57, %v403_v54  ;;  %v683_v60 = vpop.f32.mrb[6].mxu1 }
 0x3c8   : > { %483 = vst [vmem:[#allocation2 + $0x10] sm:$0x1] %v480_v56  ;;  %v467_v61 = vpop.f32.mrb[7].mxu1 }
 0x3c9   : > { %481 = vst [vmem:[#allocation2] sm:$0xff] %v478_v59  ;;  %v479_v62 = vadd.f32 %v467_v61, %v404_v58 }
 0x3cb   : > { %482 = vst [vmem:[#allocation2 + $0x8] sm:$0xff] %v479_v62 }
 0x3cf   : > { %v490_v4 = vld [vmem:[#allocation2 + $0x10] sm:$0x1] }
 0x3d0   : > { %v488_v63 = vld [vmem:[#allocation2] sm:$0xff]  ;;  %v500_v5 = vadd.f32 %v633_v1, %v490_v4 }
 0x3d1   : > { %v498_v2 = vadd.f32 %v633_v1, %v488_v63 }
 0x3d2   : > { %v489_v0 = vld [vmem:[#allocation2 + $0x8] sm:$0xff]  ;;  %v503_v8 = vmul.f32 2.0, %v500_v5 }
 0x3d3   : > { %v499_v3 = vadd.f32 %v633_v1, %v489_v0  ;;  %v501_v6 = vmul.f32 2.0, %v498_v2 }
 0x3d4   : > { %v642_v11 = vpack.c.bf16 %v503_v8, %v503_v8 }
 0x3d5   : > { %v502_v7 = vmul.f32 2.0, %v499_v3 }
 0x3d6   : > { %v523_v12 = vsel %vm521_vm5, %v642_v11, %v522_v10 }
 0x3d7   : > { %v646_v9 = vpack.c.bf16 %v502_v7, %v501_v6  ;;  %524 = vst [vmem:[%s855_s4 + $0x8] sm:$0x1] %v523_v12 }
 0x3d9   : > { %647 = vst [vmem:[%s855_s4] sm:$0xff] %v646_v9  }
 0x3da PF: > { %s13_s16 = sadd.s32 1, %s787_s16   ;;  %s907_s12 = smov %s779_s14 }
 0x3db   : > { %p10_p9 = scmp.ge.s32.totalorder %s13_s16, 10   ;;  %s908_s13 = smov %s783_s15 }
 0x3dc   : > { %s909_s14 = smov %s912_s17  ;;  %s910_s15 = smov %s916_s18 }
 0x3dd   :  { %12 = sbr.rel (!%p10_p9) target bundleno = 3 (0x3), region = 73 }

// kernel: vit_forward.13
= control target key start
LH: loop header
LB: loop body
LE: loop exit
PB: predicated region body
PF: predicated region fallthrough
CT: control target
= control target key end

     0   :  { %vm43_vm0 = vcmask 1041408   ;;  %v1329_v62 = vmov 0   ;;  %s1960_s0 = inlined_call_operand.vmem [shape: bf16[34,128], index: 0, kind: input, shape index: {}]   ;;  %s1961_s3 = inlined_call_operand.vmem [shape: bf16[128,512], index: 3, kind: input, shape index: {}]   ;;  %s1962_s1 = inlined_call_operand.vmem [shape: f32[1,128], index: 1, kind: input, shape index: {}]   ;;  %s1963_s2 = inlined_call_operand.vmem [shape: f32[1,128], index: 2, kind: input, shape index: {}]   ;;  %s1964_s4 = inlined_call_operand.vmem [shape: f32[1,512], index: 4, kind: input, shape index: {}]   ;;  %s1965_s5 = inlined_call_operand.vmem [shape: bf16[34,512], index: 5, kind: output, shape index: {}]  }
   0x1   :  { %v1167_v0 = vld [vmem:[%s1960_s0] sm:$0xff]   ;;  %v1184_v1 = vld [vmem:[%s1960_s0 + $0x8] sm:$0xff]   ;;  %v29_v4 = vld [vmem:[%s1960_s0 + $0x10] sm:$0x1]  ;;  %411 = vmatprep.mubr.bf16.mxu0 %v1329_v62  ;;  %472 = vmatprep.mubr.bf16.mxu1 %v1329_v62 }
   0x2   :  { %v1168_v2 = vunpack.c.l.bf16 %v1167_v0  ;;  %v1172_v3 = vunpack.c.l.bf16 %v1184_v1  ;;  %v1169_v5 = vunpack.c.h.bf16 %v1167_v0  ;;  %v1173_v6 = vunpack.c.h.bf16 %v1184_v1  ;;  %v1188_v30 = vld [vmem:[%s1961_s3 + $0x4] ss:$16 sps:$4 sm:$0xff]   ;;  %v1190_v31 = vld [vmem:[%s1961_s3 + $0xc] ss:$16 sps:$4 sm:$0xff]   ;;  %v1192_v32 = vld [vmem:[%s1961_s3] ss:$16 sps:$4 sm:$0xff]  }
   0x3   :  { %v34_v7 = vunpack.c.l.bf16 %v29_v4  ;;  %379 = vmatprep.subr.bf16.mxu0 %v1188_v30  ;;  %v1193_v33 = vld [vmem:[%s1961_s3 + $0x8] ss:$16 sps:$4 sm:$0xff]   ;;  %440 = vmatprep.subr.bf16.mxu1 %v1190_v31  ;;  %v1194_v34 = vld [vmem:[%s1961_s3 + $0x24] ss:$16 sps:$4 sm:$0xff]   ;;  %v1196_v35 = vld [vmem:[%s1961_s3 + $0x2c] ss:$16 sps:$4 sm:$0xff]  }
   0x4   :  { %35 = vadd.xlane.f32.xlu0 %v1168_v2  ;;  %39 = vadd.xlane.f32.xlu1 %v1172_v3  ;;  %v1198_v36 = vld [vmem:[%s1961_s3 + $0x20] ss:$16 sps:$4 sm:$0xff]   ;;  %v1199_v37 = vld [vmem:[%s1961_s3 + $0x28] ss:$16 sps:$4 sm:$0xff]   ;;  %v1200_v38 = vld [vmem:[%s1961_s3 + $0x44] ss:$16 sps:$4 sm:$0xff]  }
   0x5   :  { %v44_v8 = vsel %vm43_vm0, %v34_v7, 0.0  ;;  %380 = vmatpush1.bf16.msra.mxu0 %v1192_v32  ;;  %441 = vmatpush1.bf16.msra.mxu1 %v1193_v33  ;;  %v1202_v39 = vld [vmem:[%s1961_s3 + $0x4c] ss:$16 sps:$4 sm:$0xff]   ;;  %v1204_v40 = vld [vmem:[%s1961_s3 + $0x40] ss:$16 sps:$4 sm:$0xff]  }
   0x6   :  { %381 = vmatprep.subr.bf16.mxu0 %v1194_v34  ;;  %442 = vmatprep.subr.bf16.mxu1 %v1196_v35  ;;  %v1205_v41 = vld [vmem:[%s1961_s3 + $0x48] ss:$16 sps:$4 sm:$0xff]   ;;  %v1206_v42 = vld [vmem:[%s1961_s3 + $0x64] ss:$16 sps:$4 sm:$0xff]   ;;  %v1208_v43 = vld [vmem:[%s1961_s3 + $0x6c] ss:$16 sps:$4 sm:$0xff]  }
   0x7   :  { %v1210_v44 = vld [vmem:[%s1961_s3 + $0x60] ss:$16 sps:$4 sm:$0xff]   ;;  %v1211_v45 = vld [vmem:[%s1961_s3 + $0x68] ss:$16 sps:$4 sm:$0xff]   ;;  %v1212_v46 = vld [vmem:[%s1961_s3 + $0x84] ss:$16 sps:$4 sm:$0xff]  }
   0x8   :  { %37 = vadd.xlane.f32.xlu0 %v1169_v5  ;;  %41 = vadd.xlane.f32.xlu1 %v1173_v6  ;;  %v1214_v47 = vld [vmem:[%s1961_s3 + $0x8c] ss:$16 sps:$4 sm:$0xff]   ;;  %v1216_v48 = vld [vmem:[%s1961_s3 + $0x80] ss:$16 sps:$4 sm:$0xff]   ;;  %v1217_v49 = vld [vmem:[%s1961_s3 + $0x88] ss:$16 sps:$4 sm:$0xff]  }
   0x9   :  { %382 = vmatpush1.bf16.msra.mxu0 %v1198_v36  ;;  %443 = vmatpush1.bf16.msra.mxu1 %v1199_v37  ;;  %v1218_v50 = vld [vmem:[%s1961_s3 + $0xa4] ss:$16 sps:$4 sm:$0xff]   ;;  %v1220_v51 = vld [vmem:[%s1961_s3 + $0xac] ss:$16 sps:$4 sm:$0xff]   ;;  %v1222_v52 = vld [vmem:[%s1961_s3 + $0xa0] ss:$16 sps:$4 sm:$0xff]  }
   0xa   :  { %383 = vmatprep.subr.bf16.mxu0 %v1200_v38  ;;  %444 = vmatprep.subr.bf16.mxu1 %v1202_v39  ;;  %v1223_v53 = vld [vmem:[%s1961_s3 + $0xa8] ss:$16 sps:$4 sm:$0xff]   ;;  %v1224_v54 = vld [vmem:[%s1961_s3 + $0xc4] ss:$16 sps:$4 sm:$0xff]   ;;  %v1226_v55 = vld [vmem:[%s1961_s3 + $0xcc] ss:$16 sps:$4 sm:$0xff]  }
   0xb   :  { %v1228_v56 = vld [vmem:[%s1961_s3 + $0xc0] ss:$16 sps:$4 sm:$0xff]   ;;  %v1229_v57 = vld [vmem:[%s1961_s3 + $0xc8] ss:$16 sps:$4 sm:$0xff]   ;;  %v1230_v58 = vld [vmem:[%s1961_s3 + $0xe4] ss:$16 sps:$4 sm:$0xff]  }
   0xc   :  { %45 = vadd.xlane.f32.xlu0 %v44_v8  ;;  %v1232_v59 = vld [vmem:[%s1961_s3 + $0xec] ss:$16 sps:$4 sm:$0xff]   ;;  %v1234_v60 = vld [vmem:[%s1961_s3 + $0xe0] ss:$16 sps:$4 sm:$0xff]   ;;  %v1235_v61 = vld [vmem:[%s1961_s3 + $0xe8] ss:$16 sps:$4 sm:$0xff]  }
   0xd   :  { %384 = vmatpush1.bf16.msra.mxu0 %v1204_v40  ;;  %445 = vmatpush1.bf16.msra.mxu1 %v1205_v41 }
   0xe   :  { %385 = vmatprep.subr.bf16.mxu0 %v1206_v42  ;;  %446 = vmatprep.subr.bf16.mxu1 %v1208_v43  ;;  %v183_v42 = vlaneseq }
  0x10   :  { %v184_v43 = vshrl.u32 %v183_v42, 7 }
  0x11   :  { %386 = vmatpush1.bf16.msra.mxu0 %v1210_v44  ;;  %447 = vmatpush1.bf16.msra.mxu1 %v1211_v45 }
  0x12   :  { %387 = vmatprep.subr.bf16.mxu0 %v1212_v46  ;;  %448 = vmatprep.subr.bf16.mxu1 %v1214_v47  ;;  %v185_v44 = vsub.s32 0, %v184_v43  ;;  %v193_v45 = vsub.s32 2, %v184_v43  ;;  %v181_v46 = vld [vmem:[%s1964_s4] sm:$0xf]  ;;  %v189_v47 = vsub.s32 1, %v184_v43 }
  0x15   :  { %388 = vmatpush1.bf16.msra.mxu0 %v1216_v48  ;;  %449 = vmatpush1.bf16.msra.mxu1 %v1217_v49  ;;  %v197_v48 = vsub.s32 3, %v184_v43  ;;  %v1508_v49 = vrot.slane %v181_v46, %v185_v44 }
  0x16   :  { %389 = vmatprep.subr.bf16.mxu0 %v1218_v50  ;;  %450 = vmatprep.subr.bf16.mxu1 %v1220_v51  ;;  %v1510_v50 = vrot.slane %v181_v46, %v193_v45  ;;  %v1512_v51 = vrot.slane %v181_v46, %v189_v47 }
  0x19   :  { %390 = vmatpush1.bf16.msra.mxu0 %v1222_v52  ;;  %451 = vmatpush1.bf16.msra.mxu1 %v1223_v53  ;;  %v1514_v52 = vrot.slane %v181_v46, %v197_v48 }
  0x1a   :  { %391 = vmatprep.subr.bf16.mxu0 %v1224_v54  ;;  %452 = vmatprep.subr.bf16.mxu1 %v1226_v55 }
  0x1d   :  { %392 = vmatpush1.bf16.msra.mxu0 %v1228_v56  ;;  %453 = vmatpush1.bf16.msra.mxu1 %v1229_v57 }
  0x1e   :  { %393 = vmatprep.subr.bf16.mxu0 %v1230_v58  ;;  %454 = vmatprep.subr.bf16.mxu1 %v1232_v59 }
  0x21   :  { %394 = vmatpush1.bf16.msra.mxu0 %v1234_v60  ;;  %455 = vmatpush1.bf16.msra.mxu1 %v1235_v61 }
  0x91   :  { %v36_v9 = vpop.xlane.xlu0 %35  ;;  %v40_v10 = vpop.xlane.xlu1 %39 }
  0x92   :  { %v48_v11 = vmul.f32 0.0078125, %v36_v9  ;;  %v50_v12 = vmul.f32 0.0078125, %v40_v10 }
  0x94   :  { %v1371_v13 = vsub.f32 %v1168_v2, %v48_v11  ;;  %v1373_v14 = vsub.f32 %v1172_v3, %v50_v12 }
  0x95   :  { %v38_v15 = vpop.xlane.xlu0 %37  ;;  %v42_v16 = vpop.xlane.xlu1 %41 }
  0x96   :  { %v49_v17 = vmul.f32 0.0078125, %v38_v15  ;;  %v58_v18 = vmul.f32 %v1371_v13, %v1371_v13  ;;  %v51_v19 = vmul.f32 0.0078125, %v42_v16  ;;  %v60_v22 = vmul.f32 %v1373_v14, %v1373_v14 }
  0x98   :  { %v1377_v20 = vsub.f32 %v1169_v5, %v49_v17  ;;  %63 = vadd.xlane.f32.xlu1 %v58_v18  ;;  %v1379_v21 = vsub.f32 %v1173_v6, %v51_v19  ;;  %v1099_v18 = vld [vmem:[%s1962_s1] ss:$0 sm:$0xff] }
  0x99   :  { %v46_v23 = vpop.xlane.xlu0 %45 }
  0x9a   :  { %v52_v24 = vmul.f32 0.0078125, %v46_v23  ;;  %v59_v25 = vmul.f32 %v1377_v20, %v1377_v20  ;;  %v61_v27 = vmul.f32 %v1379_v21, %v1379_v21 }
  0x9c   :  { %v1385_v26 = vsub.f32 %v34_v7, %v52_v24  ;;  %67 = vadd.xlane.f32.xlu1 %v60_v22  ;;  %65 = vadd.xlane.f32.xlu0 %v59_v25 }
  0x9e   :  { %v62_v28 = vmul.f32 %v1385_v26, %v1385_v26 }
  0xa0   :  { %69 = vadd.xlane.f32.xlu0 %v61_v27  ;;  %v71_v29 = vsel %vm43_vm0, %v62_v28, 0.0  ;;  %v1100_v27 = vld [vmem:[%s1963_s2] ss:$0 sm:$0xff] }
  0xa1   :  { %72 = vadd.xlane.f32.xlu1 %v71_v29 }
 0x125   :  { %v64_v63 = vpop.xlane.xlu1 %63 }
 0x126   :  { %v74_v0 = vmul.f32 0.0078125, %v64_v63 }
 0x128   :  { %v79_v1 = vadd.f32 1e-05, %v74_v0 }
 0x129   :  { %v68_v2 = vpop.xlane.xlu1 %67  ;;  %v66_v3 = vpop.xlane.xlu0 %65 }
 0x12a   :  { %1239 = vrsqrt.f32 %v79_v1  ;;  %v76_v4 = vmul.f32 0.0078125, %v68_v2  ;;  %v75_v5 = vmul.f32 0.0078125, %v66_v3 }
 0x12c   :  { %v81_v6 = vadd.f32 1e-05, %v76_v4  ;;  %v80_v7 = vadd.f32 1e-05, %v75_v5 }
 0x12d   :  { %v70_v8 = vpop.xlane.xlu0 %69 }
 0x12e   :  { %1241 = vrsqrt.f32 %v81_v6  ;;  %v77_v9 = vmul.f32 0.0078125, %v70_v8  ;;  %v73_v10 = vpop.xlane.xlu1 %72 }
 0x12f   :  { %1243 = vrsqrt.f32 %v80_v7  ;;  %v78_v11 = vmul.f32 0.0078125, %v73_v10 }
 0x130   :  { %v82_v12 = vadd.f32 1e-05, %v77_v9 }
 0x131   :  { %v83_v15 = vadd.f32 1e-05, %v78_v11 }
 0x132   :  { %1245 = vrsqrt.f32 %v82_v12 }
 0x133   :  { %1247 = vrsqrt.f32 %v83_v15 }
 0x134   :  { %v1240_v16 = vpop.eup %1239 }
 0x135   :  { %v89_v17 = vmul.f32 %v1240_v16, %v1371_v13 }
 0x137   :  { %v101_v24 = vmul.f32 %v1099_v18, %v89_v17 }
 0x138   :  { %v1242_v19 = vpop.eup %1241 }
 0x139   :  { %v1244_v22 = vpop.eup %1243  ;;  %v91_v23 = vmul.f32 %v1242_v19, %v1373_v14  ;;  %v113_v32 = vadd.f32 %v1100_v27, %v101_v24 }
 0x13a   :  { %v90_v25 = vmul.f32 %v1244_v22, %v1377_v20 }
 0x13b   :  { %v103_v31 = vmul.f32 %v1099_v18, %v91_v23 }
 0x13c   :  { %v1246_v28 = vpop.eup %1245  ;;  %v102_v29 = vmul.f32 %v1099_v18, %v90_v25 }
 0x13d   :  { %v1248_v30 = vpop.eup %1247  ;;  %v92_v13 = vmul.f32 %v1246_v28, %v1379_v21  ;;  %v115_v37 = vadd.f32 %v1100_v27, %v103_v31 }
 0x13e   :  { %v114_v33 = vadd.f32 %v1100_v27, %v102_v29  ;;  %v93_v34 = vmul.f32 %v1248_v30, %v1385_v26 }
 0x13f   :  { %v104_v35 = vmul.f32 %v1099_v18, %v92_v13 }
 0x140   :  { %v1177_v36 = vpack.c.bf16 %v114_v33, %v113_v32  ;;  %v105_v14 = vmul.f32 %v1099_v18, %v93_v34 }
 0x141   :  { %v116_v38 = vadd.f32 %v1100_v27, %v104_v35 }
 0x142   :  { %1178 = vst [vmem:[#allocation2] sm:$0xff] %v1177_v36   ;;  %v117_v20 = vadd.f32 %v1100_v27, %v105_v14 }
 0x143   :  { %v1182_v39 = vpack.c.bf16 %v116_v38, %v115_v37 }
 0x144   :  { %v1155_v40 = vpack.c.bf16 %v117_v20, %v117_v20 }
 0x145   :  { %1185 = vst [vmem:[#allocation2 + $0x8] sm:$0xff] %v1182_v39  }
 0x146   :  { %143 = vst [vmem:[#allocation2 + $0x10] sm:$0x1] %v1155_v40 }
 0x149   :  { %v1236_v41 = vld [vmem:[#allocation2] sm:$0xff]  }
 0x14a   :  { %412 = vmatmul.mubr.bf16.vlgmr.msra.gmra.mrb[0].mxu0 %v1236_v41  ;;  %473 = vmatmul.mubr.bf16.vlgmr.msra.gmra.mrb[0].mxu1 %v1236_v41  ;;  %v1966_v41 = vmov -1.0  }
 0x14b   :  { %421 = vmatprep.mubr.bf16.mxu0 %v1329_v62  ;;  %482 = vmatprep.mubr.bf16.mxu1 %v1329_v62 }
 0x14c   :  { %v1237_v21 = vld [vmem:[#allocation2 + $0x8] sm:$0xff]  }
 0x14d   :  { %v1238_v26 = vld [vmem:[#allocation2 + $0x10] ss:$0 sps:$4 sm:$0x11]  }
 0x152   :  { %422 = vmatmul.mubr.bf16.gmra.mrb[4].mxu0 %v1237_v21  ;;  %483 = vmatmul.mubr.bf16.gmra.mrb[4].mxu1 %v1237_v21 }
 0x153   :  { %431 = vmatprep.mubr.bf16.mxu0 %v1329_v62  ;;  %492 = vmatprep.mubr.bf16.mxu1 %v1329_v62 }
 0x15a   :  { %432 = vmatmul.mubr.bf16.gmra.mrb[8].mxu0 %v1238_v26  ;;  %493 = vmatmul.mubr.bf16.gmra.mrb[8].mxu1 %v1238_v26 }
 0x21d   :  { %v413_v53 = vpop.f32.mrb[0].mxu0  ;;  %v474_v54 = vpop.f32.mrb[0].mxu1 }
 0x21e   :  { %v414_v55 = vadd.f32 %v413_v53, %v1508_v49  ;;  %v475_v56 = vadd.f32 %v474_v54, %v1510_v50  ;;  %v415_v57 = vpop.f32.mrb[1].mxu0  ;;  %v476_v58 = vpop.f32.mrb[1].mxu1 }
 0x21f   :  { %v416_v59 = vadd.f32 %v415_v57, %v1512_v51  ;;  %v1520_v60 = vadd.f32 %v476_v58, %v1514_v52  ;;  %v417_v61 = vpop.f32.mrb[2].mxu0  ;;  %v478_v62 = vpop.f32.mrb[2].mxu1 }
 0x220   :  { %v521_v63 = vmul.f32 0.70710677, %v414_v55  ;;  %v523_v0 = vmul.f32 0.70710677, %v475_v56  ;;  %v419_v6 = vpop.f32.mrb[3].mxu0  ;;  %v480_v11 = vpop.f32.mrb[3].mxu1  ;;  %v1538_v27 = vadd.f32 %v417_v61, %v1508_v49  ;;  %v1552_v34 = vadd.f32 %v478_v62, %v1510_v50 }
 0x221   :  { %v1522_v1 = vmul.f32 0.70710677, %v416_v59  ;;  %v1526_v5 = vmul.f32 0.70710677, %v1520_v60  ;;  %v1544_v30 = vmul.f32 0.5, %v414_v55  ;;  %v1556_v36 = vmul.f32 0.5, %v475_v56 }
 0x222   :  { %v581_v2 = vand.u32 2147483647, %v521_v63  ;;  %v583_v3 = vand.u32 2147483647, %v523_v0  ;;  %vm541_vm1 = vcmp.ge.f32.partialorder %v521_v63, 0.0  ;;  %vm543_vm2 = vcmp.ge.f32.partialorder %v523_v0, 0.0 }
 0x223   :  { %v582_v4 = vand.u32 2147483647, %v1522_v1  ;;  %v584_v19 = vand.u32 2147483647, %v1526_v5  ;;  %v1549_v33 = vmul.f32 0.70710677, %v1538_v27  ;;  %v1561_v38 = vadd.f32 %v419_v6, %v1512_v51 }
 0x224   :  { %v601_v7 = vmul.f32 0.3275911, %v581_v2  ;;  %v841_v8 = vsub.f32 0.0, %v581_v2  ;;  %v603_v9 = vmul.f32 0.3275911, %v583_v3  ;;  %v843_v18 = vsub.f32 0.0, %v583_v3 }
 0x225   :  { %v602_v10 = vmul.f32 0.3275911, %v582_v4  ;;  %v1528_v16 = vpop.f32.mrb[4].mxu0  ;;  %v1530_v17 = vpop.f32.mrb[4].mxu1  ;;  %v604_v31 = vmul.f32 0.3275911, %v584_v19 }
 0x226   :  { %v621_v12 = vadd.f32 1.0, %v601_v7  ;;  %v623_v15 = vadd.f32 1.0, %v603_v9  ;;  %v1533_v22 = vpop.f32.mrb[5].mxu0  ;;  %v1535_v23 = vpop.f32.mrb[5].mxu1  ;;  %v861_v24 = vmul.f32 %v841_v8, %v581_v2  ;;  %v842_v32 = vsub.f32 0.0, %v582_v4 }
 0x227   :  { %v622_v25 = vadd.f32 1.0, %v602_v10  ;;  %v1540_v28 = vpop.f32.mrb[6].mxu0  ;;  %v1542_v29 = vpop.f32.mrb[6].mxu1  ;;  %v1558_v14 = vmul.f32 0.5, %v416_v59  ;;  %v624_v37 = vadd.f32 1.0, %v604_v31  ;;  %v863_v39 = vmul.f32 %v843_v18, %v583_v3 }
 0x228   :  { %1249 = vrcp.f32 %v621_v12  ;;  %v1546_v13 = vpop.f32.mrb[7].mxu0  ;;  %v1554_v35 = vpop.f32.mrb[7].mxu1  ;;  %v881_v20 = vmul.f32 1.442695, %v861_v24  ;;  %v585_v40 = vand.u32 2147483647, %v1549_v33  ;;  %v862_v45 = vmul.f32 %v842_v32, %v582_v4 }
 0x229   :  { %1251 = vrcp.f32 %v623_v15  ;;  %v1566_v21 = vsel %vm541_vm1, 1.0, %v1966_v41  ;;  %v1569_v26 = vsel %vm543_vm2, 1.0, %v1966_v41  ;;  %v844_v42 = vsub.f32 0.0, %v584_v19 }
 0x22a   :  { %1253 = vrcp.f32 %v622_v25  ;;  %v1572_v43 = vmul.f32 0.70710677, %v1552_v34  ;;  %v605_v46 = vmul.f32 0.3275911, %v585_v40  ;;  %v845_v47 = vsub.f32 0.0, %v585_v40 }
 0x22b   :  { %1255 = vrcp.f32 %v624_v37  ;;  %vm542_vm3 = vcmp.ge.f32.partialorder %v1522_v1, 0.0  ;;  %v1583_v55 = vmul.f32 0.70710677, %v1561_v38  ;;  %v885_v57 = vmul.f32 1.442695, %v863_v39 }
 0x22c   :  { %v587_v54 = vand.u32 2147483647, %v1572_v43  ;;  %1257 = vpow2.f32 %v881_v20  ;;  %v625_v58 = vadd.f32 1.0, %v605_v46  ;;  %v1588_v59 = vadd.f32 %v480_v11, %v1514_v52 }
 0x22d   :  { %v1574_v44 = vpop.f32.mrb[8].mxu0  ;;  %v1576_v48 = vpop.f32.mrb[8].mxu1  ;;  %v864_v63 = vmul.f32 %v844_v42, %v584_v19  ;;  %v586_v1 = vand.u32 2147483647, %v1583_v55  ;;  %v1594_v4 = vsel %vm542_vm3, 1.0, %v1966_v41  ;;  %v865_v7 = vmul.f32 %v845_v47, %v585_v40 }
 0x22e   :  { %1968 = vst [vmem:[#allocation3_spill] sm:$0xff] %v1574_v44  ;;  %1969 = vst [vmem:[#allocation4_spill] sm:$0xff] %v1576_v48  ;;  %v1578_v53 = vpop.f32.mrb[9].mxu0  ;;  %v1585_v56 = vpop.f32.mrb[9].mxu1  ;;  %v607_v0 = vmul.f32 0.3275911, %v587_v54  ;;  %1259 = vrcp.f32 %v625_v58 }
 0x22f   :  { %1970 = vst [vmem:[#allocation5_spill] sm:$0xff] %v1578_v53  ;;  %1971 = vst [vmem:[#allocation6_spill] sm:$0xff] %v1585_v56  ;;  %v437_v61 = vpop.f32.mrb[10].mxu0  ;;  %v498_v62 = vpop.f32.mrb[10].mxu1  ;;  %v847_v2 = vsub.f32 0.0, %v587_v54  ;;  %1261 = vpow2.f32 %v885_v57  ;;  %v846_v24 = vsub.f32 0.0, %v586_v1 }
 0x230   :  { %v883_v6 = vmul.f32 1.442695, %v862_v45  ;;  %v438_v8 = vpop.f32.mrb[11].mxu0  ;;  %v499_v9 = vpop.f32.mrb[11].mxu1  ;;  %v627_v12 = vadd.f32 1.0, %v607_v0  ;;  %vm544_vm4 = vcmp.ge.f32.partialorder %v1526_v5, 0.0 }
 0x231   :  { %v867_v15 = vmul.f32 %v847_v2, %v587_v54  ;;  %v606_v18 = vmul.f32 0.3275911, %v586_v1  ;;  %v1601_v25 = vmul.f32 0.70710677, %v1588_v59  ;;  %v887_v32 = vmul.f32 1.442695, %v864_v63 }
 0x232   :  { %v1591_v3 = vpop.eup %1249  ;;  %1263 = vrcp.f32 %v627_v12  ;;  %v889_v46 = vmul.f32 1.442695, %v865_v7  ;;  %v866_v58 = vmul.f32 %v846_v24, %v586_v1  ;;  %v1615_v7 = vadd.f32 %v1528_v16, %v1508_v49 }
 0x233   :  { %v1596_v10 = vpop.eup %1251  ;;  %v661_v11 = vmul.f32 1.0614054, %v1591_v3  ;;  %v626_v37 = vadd.f32 1.0, %v606_v18  ;;  %1265 = vpow2.f32 %v883_v6  ;;  %v588_v40 = vand.u32 2147483647, %v1601_v25 }
 0x234   :  { %v663_v19 = vmul.f32 1.0614054, %v1596_v10  ;;  %v1603_v20 = vpop.eup %1253  ;;  %v893_v47 = vmul.f32 1.442695, %v867_v15  ;;  %vm545_vm5 = vcmp.ge.f32.partialorder %v1549_v33, 0.0  ;;  %vm547_vm6 = vcmp.ge.f32.partialorder %v1572_v43, 0.0 }
 0x235   :  { %v681_v31 = vadd.f32 -1.4531521, %v661_v11  ;;  %v662_v45 = vmul.f32 1.0614054, %v1603_v20  ;;  %v1609_v54 = vpop.eup %1255  ;;  %1267 = vrcp.f32 %v626_v37  ;;  %v608_v61 = vmul.f32 0.3275911, %v588_v40 }
 0x236   :  { %v683_v39 = vadd.f32 -1.4531521, %v663_v19  ;;  %v664_v0 = vmul.f32 1.0614054, %v1609_v54  ;;  %1269 = vpow2.f32 %v887_v32  ;;  %v1258_v2 = vpop.eup %1257  ;;  %v848_v9 = vsub.f32 0.0, %v588_v40 }
 0x237   :  { %v701_v42 = vmul.f32 %v1591_v3, %v681_v31  ;;  %v682_v63 = vadd.f32 -1.4531521, %v662_v45  ;;  %v628_v8 = vadd.f32 1.0, %v608_v61  ;;  %1271 = vpow2.f32 %v889_v46 }
 0x238   :  { %v703_v57 = vmul.f32 %v1596_v10, %v683_v39  ;;  %v684_v15 = vadd.f32 -1.4531521, %v664_v0  ;;  %v1619_v1 = vpop.eup %1259  ;;  %v891_v19 = vmul.f32 1.442695, %v866_v58  ;;  %v868_v24 = vmul.f32 %v848_v9, %v588_v40 }
 0x239   :  { %v721_v62 = vadd.f32 1.4214138, %v701_v42  ;;  %v702_v12 = vmul.f32 %v1603_v20, %v682_v63  ;;  %1273 = vrcp.f32 %v628_v8  ;;  %v665_v16 = vmul.f32 1.0614054, %v1619_v1  ;;  %v1262_v39 = vpop.eup %1261 }
 0x23a   :  { %v723_v6 = vadd.f32 1.4214138, %v703_v57  ;;  %v704_v37 = vmul.f32 %v1609_v54, %v684_v15  ;;  %v1627_v45 = vsel %vm544_vm4, 1.0, %v1966_v41  ;;  %1275 = vpow2.f32 %v893_v47 }
 0x23b   :  { %v741_v11 = vmul.f32 %v1591_v3, %v721_v62  ;;  %v722_v32 = vadd.f32 1.4214138, %v702_v12  ;;  %v1630_v46 = vmul.f32 0.70710677, %v1615_v7  ;;  %v685_v62 = vadd.f32 -1.4531521, %v665_v16 }
 0x23c   :  { %v743_v18 = vmul.f32 %v1596_v10, %v723_v6  ;;  %v1632_v57 = vpop.eup %1263  ;;  %v724_v61 = vadd.f32 1.4214138, %v704_v37  ;;  %1277 = vpow2.f32 %v891_v19  ;;  %v895_v5 = vmul.f32 1.442695, %v868_v24 }
 0x23d   :  { %v761_v31 = vadd.f32 -0.28449672, %v741_v11  ;;  %v742_v58 = vmul.f32 %v1603_v20, %v722_v32  ;;  %v1266_v63 = vpop.eup %1265  ;;  %v667_v6 = vmul.f32 1.0614054, %v1632_v57  ;;  %v705_v11 = vmul.f32 %v1619_v1, %v685_v62 }
 0x23e   :  { %v763_v42 = vadd.f32 -0.28449672, %v743_v18  ;;  %v744_v9 = vmul.f32 %v1609_v54, %v724_v61  ;;  %v1647_v32 = vadd.f32 %v1530_v17, %v1510_v50  ;;  %1279 = vpow2.f32 %v895_v5 }
 0x23f   :  { %v781_v40 = vmul.f32 %v1591_v3, %v761_v31  ;;  %v762_v47 = vadd.f32 -0.28449672, %v742_v58  ;;  %v1640_v12 = vpop.eup %1267  ;;  %v687_v18 = vadd.f32 -1.4531521, %v667_v6  ;;  %v1643_v31 = vand.u32 2147483647, %v1630_v46 }
 0x240   :  { %v783_v0 = vmul.f32 %v1596_v10, %v763_v42  ;;  %v1270_v37 = vpop.eup %1269  ;;  %v764_v16 = vadd.f32 -0.28449672, %v744_v9  ;;  %v725_v42 = vadd.f32 1.4214138, %v705_v11  ;;  %v666_v61 = vmul.f32 1.0614054, %v1640_v12 }
 0x241   :  { %v801_v8 = vadd.f32 0.2548296, %v781_v40  ;;  %v782_v24 = vmul.f32 %v1603_v20, %v762_v47  ;;  %v707_v58 = vmul.f32 %v1632_v57, %v687_v18  ;;  %v609_v62 = vmul.f32 0.3275911, %v1643_v31 }
 0x242   :  { %v803_v15 = vadd.f32 0.2548296, %v783_v0  ;;  %v1272_v0 = vpop.eup %1271  ;;  %v784_v17 = vmul.f32 %v1609_v54, %v764_v16  ;;  %v745_v56 = vmul.f32 %v1619_v1, %v725_v42  ;;  %v686_v9 = vadd.f32 -1.4531521, %v666_v61 }
 0x243   :  { %v821_v19 = vmul.f32 %v1591_v3, %v801_v8  ;;  %v802_v41 = vadd.f32 0.2548296, %v782_v24  ;;  %v1657_v3 = vpop.eup %1273  ;;  %v727_v47 = vadd.f32 1.4214138, %v707_v58  ;;  %v629_v11 = vadd.f32 1.0, %v609_v62 }
 0x244   :  { %v823_v40 = vmul.f32 %v1596_v10, %v803_v15  ;;  %v804_v18 = vadd.f32 0.2548296, %v784_v17  ;;  %v765_v53 = vadd.f32 -0.28449672, %v745_v56  ;;  %v1276_v48 = vpop.eup %1275  ;;  %v706_v24 = vmul.f32 %v1640_v12, %v686_v9 }
 0x245   :  { %v921_v6 = vmul.f32 %v1258_v2, %v821_v19  ;;  %v822_v15 = vmul.f32 %v1603_v20, %v802_v41  ;;  %v747_v19 = vmul.f32 %v1632_v57, %v727_v47  ;;  %v668_v16 = vmul.f32 1.0614054, %v1657_v3 }
 0x246   :  { %v923_v8 = vmul.f32 %v1262_v39, %v823_v40  ;;  %v824_v40 = vmul.f32 %v1609_v54, %v804_v18  ;;  %v785_v58 = vmul.f32 %v1619_v1, %v765_v53  ;;  %v1278_v41 = vpop.eup %1277  ;;  %v726_v56 = vadd.f32 1.4214138, %v706_v24 }
 0x247   :  { %v941_v10 = vsub.f32 1.0, %v921_v6  ;;  %v922_v42 = vmul.f32 %v1266_v63, %v822_v15  ;;  %v767_v61 = vadd.f32 -0.28449672, %v747_v19  ;;  %v688_v62 = vadd.f32 -1.4531521, %v668_v16 }
 0x248   :  { %v943_v2 = vsub.f32 1.0, %v923_v8  ;;  %v924_v8 = vmul.f32 %v1270_v37, %v824_v40  ;;  %v805_v47 = vadd.f32 0.2548296, %v785_v58  ;;  %v746_v44 = vmul.f32 %v1640_v12, %v726_v56 }
 0x249   :  { %v961_v39 = vmul.f32 %v941_v10, %v1566_v21  ;;  %v942_v17 = vsub.f32 1.0, %v922_v42  ;;  %v787_v9 = vmul.f32 %v1632_v57, %v767_v61  ;;  %v708_v21 = vmul.f32 %v1657_v3, %v688_v62 }
 0x24a   :  { %v963_v20 = vmul.f32 %v943_v2, %v1569_v26  ;;  %v944_v63 = vsub.f32 1.0, %v924_v8  ;;  %v825_v26 = vmul.f32 %v1619_v1, %v805_v47  ;;  %v766_v18 = vadd.f32 -0.28449672, %v746_v44 }
 0x24b   :  { %v981_v6 = vadd.f32 1.0, %v961_v39  ;;  %v962_v53 = vmul.f32 %v942_v17, %v1594_v4  ;;  %v807_v15 = vadd.f32 0.2548296, %v787_v9  ;;  %v728_v2 = vadd.f32 1.4214138, %v708_v21 }
 0x24c   :  { %v983_v54 = vadd.f32 1.0, %v963_v20  ;;  %v964_v19 = vmul.f32 %v944_v63, %v1627_v45  ;;  %v925_v24 = vmul.f32 %v1272_v0, %v825_v26  ;;  %1281 = vrcp.f32 %v629_v11 }
 0x24d   :  { %v1001_v10 = vmul.f32 %v981_v6, %v1544_v30  ;;  %v982_v37 = vadd.f32 1.0, %v962_v53  ;;  %v504_v16 = vmul.f32 0.5, %v1520_v60  ;;  %v827_v5 = vmul.f32 %v1632_v57, %v807_v15  ;;  %v1280_v6 = vpop.eup %1279 }
 0x24e   :  { %v786_v39 = vmul.f32 %v1640_v12, %v766_v18  ;;  %v748_v4 = vmul.f32 %v1657_v3, %v728_v2  ;;  %v1003_v1 = vmul.f32 %v983_v54, %v1556_v36  ;;  %v984_v42 = vadd.f32 1.0, %v964_v19 }
 0x24f   :  { %v1002_v30 = vmul.f32 %v982_v37, %v1558_v14  ;;  %v945_v44 = vsub.f32 1.0, %v925_v24  ;;  %v1972_v40 = vmov -1.0   ;;  %v927_v0 = vmul.f32 %v1276_v48, %v827_v5 }
 0x250   :  { %v565_v45 = vsel %vm545_vm5, 1.0, %v1972_v40  ;;  %v806_v11 = vadd.f32 0.2548296, %v786_v39  ;;  %v768_v58 = vadd.f32 -0.28449672, %v748_v4  ;;  %v1004_v20 = vmul.f32 %v984_v42, %v504_v16 }
 0x251   :  { %v1156_v60 = vpack.c.bf16 %v1002_v30, %v1001_v10  ;;  %v965_v57 = vmul.f32 %v945_v44, %v565_v45  ;;  %v1685_v61 = vmul.f32 0.70710677, %v1647_v32  ;;  %v947_v36 = vsub.f32 1.0, %v927_v0 }
 0x252   :  { %v826_v14 = vmul.f32 %v1640_v12, %v806_v11  ;;  %v788_v56 = vmul.f32 %v1657_v3, %v768_v58  ;;  %v1157_v33 = vpack.c.bf16 %v1004_v20, %v1003_v1  ;;  %v1696_v62 = vadd.f32 %v1533_v22, %v1512_v51 }
 0x253   :  { %1085 = vst [vmem:[%s1965_s5] sm:$0xff] %v1156_v60  ;;  %v591_v48 = vand.u32 2147483647, %v1685_v61  ;;  %v505_v17 = vmul.f32 0.5, %v1538_v27  ;;  %vm546_vm7 = vcmp.ge.f32.partialorder %v1583_v55, 0.0  ;;  %v985_v8 = vadd.f32 1.0, %v965_v57 }
 0x254   :  { %v926_v43 = vmul.f32 %v1278_v41, %v826_v14  ;;  %v808_v12 = vadd.f32 0.2548296, %v788_v56  ;;  %1086 = vst [vmem:[%s1965_s5 + $0x8] sm:$0xff] %v1157_v33  ;;  %v567_v47 = vsel %vm547_vm6, 1.0, %v1972_v40  ;;  %v849_v9 = vsub.f32 0.0, %v1643_v31 }
 0x255   :  { %v611_v21 = vmul.f32 0.3275911, %v591_v48  ;;  %v967_v54 = vmul.f32 %v947_v36, %v567_v47  ;;  %v506_v22 = vmul.f32 0.5, %v1561_v38  ;;  %v566_v55 = vsel %vm546_vm7, 1.0, %v1972_v40 }
 0x256   :  { %v946_v53 = vsub.f32 1.0, %v926_v43  ;;  %v828_v27 = vmul.f32 %v1657_v3, %v808_v12  ;;  %v1707_v63 = vpop.eup %1281  ;;  %vm548_vm8 = vcmp.ge.f32.partialorder %v1601_v25, 0.0  ;;  %v1712_v26 = vmul.f32 0.70710677, %v1696_v62 }
 0x257   :  { %v631_v41 = vadd.f32 1.0, %v611_v21  ;;  %v669_v18 = vmul.f32 1.0614054, %v1707_v63  ;;  %v1717_v38 = vadd.f32 %v1535_v23, %v1514_v52  ;;  %v1005_v2 = vmul.f32 %v985_v8, %v505_v17 }
 0x258   :  { %v966_v10 = vmul.f32 %v946_v53, %v566_v55  ;;  %v928_v15 = vmul.f32 %v1280_v6, %v828_v27  ;;  %v869_v3 = vmul.f32 %v849_v9, %v1643_v31  ;;  %v590_v37 = vand.u32 2147483647, %v1712_v26 }
 0x259   :  { %1283 = vrcp.f32 %v631_v41  ;;  %v987_v19 = vadd.f32 1.0, %v967_v54  ;;  %v689_v5 = vadd.f32 -1.4531521, %v669_v18  ;;  %v507_v39 = vmul.f32 0.5, %v1552_v34 }
 0x25a   :  { %v986_v24 = vadd.f32 1.0, %v966_v10  ;;  %v948_v16 = vsub.f32 1.0, %v928_v15  ;;  %v568_v4 = vsel %vm548_vm8, 1.0, %v1972_v40  ;;  %v610_v1 = vmul.f32 0.3275911, %v590_v37 }
 0x25b   :  { %v709_v42 = vmul.f32 %v1707_v63, %v689_v5  ;;  %v1727_v31 = vmul.f32 0.70710677, %v1717_v38  ;;  %v508_v44 = vmul.f32 0.5, %v1588_v59  ;;  %v897_v45 = vmul.f32 1.442695, %v869_v3 }
 0x25c   :  { %v1006_v30 = vmul.f32 %v986_v24, %v506_v22  ;;  %v968_v23 = vmul.f32 %v948_v16, %v568_v4  ;;  %v630_v0 = vadd.f32 1.0, %v610_v1  ;;  %v1732_v11 = vadd.f32 %v1540_v28, %v1508_v49 }
 0x25d   :  { %v1007_v34 = vmul.f32 %v987_v19, %v507_v39  ;;  %v729_v60 = vadd.f32 1.4214138, %v709_v42  ;;  %v851_v20 = vsub.f32 0.0, %v591_v48  ;;  %v592_v57 = vand.u32 2147483647, %v1727_v31 }
 0x25e   :  { %v1158_v58 = vpack.c.bf16 %v1006_v30, %v1005_v2  ;;  %v988_v25 = vadd.f32 1.0, %v968_v23  ;;  %1285 = vrcp.f32 %v630_v0  ;;  %v1737_v36 = vadd.f32 %v1542_v29, %v1510_v50 }
 0x25f   :  { %v749_v28 = vmul.f32 %v1707_v63, %v729_v60  ;;  %v1744_v14 = vmul.f32 0.70710677, %v1732_v11  ;;  %v612_v56 = vmul.f32 0.3275911, %v592_v57  ;;  %1287 = vpow2.f32 %v897_v45 }
 0x260   :  { %1087 = vst [vmem:[%s1965_s5 + $0x10] sm:$0xff] %v1158_v58  ;;  %v1008_v59 = vmul.f32 %v988_v25, %v508_v44  ;;  %v871_v29 = vmul.f32 %v851_v20, %v591_v48  ;;  %v1752_v8 = vmul.f32 0.70710677, %v1737_v36  ;;  %v850_v21 = vsub.f32 0.0, %v590_v37 }
 0x261   :  { %v769_v6 = vadd.f32 -0.28449672, %v749_v28  ;;  %v1747_v17 = vand.u32 2147483647, %v1744_v14  ;;  %v632_v12 = vadd.f32 1.0, %v612_v56  ;;  %v1762_v48 = vmul.f32 0.5, %v1615_v7 }
 0x262   :  { %v1159_v33 = vpack.c.bf16 %v1008_v59, %v1007_v34  ;;  %v595_v22 = vand.u32 2147483647, %v1752_v8  ;;  %vm549_vm9 = vcmp.ge.f32.partialorder %v1630_v46, 0.0  ;;  %vm551_vm10 = vcmp.ge.f32.partialorder %v1685_v61, 0.0 }
 0x263   :  { %v1749_v43 = vpop.eup %1283  ;;  %v789_v47 = vmul.f32 %v1707_v63, %v769_v6  ;;  %v613_v54 = vmul.f32 0.3275911, %v1747_v17  ;;  %1289 = vrcp.f32 %v632_v12  ;;  %v901_v41 = vmul.f32 1.442695, %v871_v29 }
 0x264   :  { %1088 = vst [vmem:[%s1965_s5 + $0x18] sm:$0xff] %v1159_v33  ;;  %v671_v9 = vmul.f32 1.0614054, %v1749_v43  ;;  %v615_v10 = vmul.f32 0.3275911, %v595_v22  ;;  %v870_v18 = vmul.f32 %v850_v21, %v590_v37  ;;  %v852_v2 = vsub.f32 0.0, %v592_v57 }
 0x265   :  { %v809_v53 = vadd.f32 0.2548296, %v789_v47  ;;  %v633_v55 = vadd.f32 1.0, %v613_v54  ;;  %v1772_v24 = vadd.f32 %v1546_v13, %v1512_v51  ;;  %v1776_v46 = vadd.f32 %v1554_v35, %v1514_v52 }
 0x266   :  { %v691_v27 = vadd.f32 -1.4531521, %v671_v9  ;;  %v635_v7 = vadd.f32 1.0, %v615_v10  ;;  %v569_v16 = vsel %vm549_vm9, 1.0, %v1972_v40  ;;  %v1780_v5 = vmul.f32 0.5, %v1647_v32 }
 0x267   :  { %1291 = vrcp.f32 %v633_v55  ;;  %v829_v19 = vmul.f32 %v1707_v63, %v809_v53  ;;  %v1786_v63 = vsel %vm551_vm10, 1.0, %v1972_v40  ;;  %vm550_vm11 = vcmp.ge.f32.partialorder %v1712_v26, 0.0 }
 0x268   :  { %v711_v15 = vmul.f32 %v1749_v43, %v691_v27  ;;  %v1767_v3 = vpop.eup %1285  ;;  %1293 = vrcp.f32 %v635_v7  ;;  %v1790_v13 = vmul.f32 0.70710677, %v1772_v24  ;;  %v899_v1 = vmul.f32 1.442695, %v870_v18 }
 0x269   :  { %v670_v39 = vmul.f32 1.0614054, %v1767_v3  ;;  %v1288_v35 = vpop.eup %1287  ;;  %1295 = vpow2.f32 %v901_v41  ;;  %v872_v23 = vmul.f32 %v852_v2, %v592_v57  ;;  %v1797_v61 = vmul.f32 0.70710677, %v1776_v46 }
 0x26a   :  { %v731_v37 = vadd.f32 1.4214138, %v711_v15  ;;  %v929_v30 = vmul.f32 %v1288_v35, %v829_v19  ;;  %v1794_v42 = vand.u32 2147483647, %v1790_v13  ;;  %v1800_v45 = vmul.f32 0.5, %v1696_v62  ;;  %v1973_v19 = vld [vmem:[#allocation3_spill] sm:$0xff] }
 0x26b   :  { %v690_v32 = vadd.f32 -1.4531521, %v670_v39  ;;  %v853_v34 = vsub.f32 0.0, %v1747_v17  ;;  %v1809_v25 = vsel %vm550_vm11, 1.0, %v1972_v40  ;;  %v855_v60 = vsub.f32 0.0, %v595_v22 }
 0x26c   :  { %v751_v4 = vmul.f32 %v1749_v43, %v731_v37  ;;  %v614_v20 = vmul.f32 0.3275911, %v1794_v42  ;;  %v1813_v57 = vand.u32 2147483647, %v1797_v61  ;;  %1297 = vpow2.f32 %v899_v1 }
 0x26d   :  { %v710_v0 = vmul.f32 %v1767_v3, %v690_v32  ;;  %v1804_v58 = vpop.eup %1289  ;;  %v949_v56 = vsub.f32 1.0, %v929_v30  ;;  %v903_v33 = vmul.f32 1.442695, %v872_v23  ;;  %v873_v21 = vmul.f32 %v853_v34, %v1747_v17 }
 0x26e   :  { %v771_v44 = vadd.f32 -0.28449672, %v751_v4  ;;  %v672_v28 = vmul.f32 1.0614054, %v1804_v58  ;;  %v634_v6 = vadd.f32 1.0, %v614_v20  ;;  %v875_v53 = vmul.f32 %v855_v60, %v595_v22 }
 0x26f   :  { %v730_v59 = vadd.f32 1.4214138, %v710_v0  ;;  %v616_v29 = vmul.f32 0.3275911, %v1813_v57  ;;  %vm552_vm12 = vcmp.ge.f32.partialorder %v1727_v31, 0.0  ;;  %v969_v18 = vmul.f32 %v949_v56, %v569_v16 }
 0x270   :  { %v791_v62 = vmul.f32 %v1749_v43, %v771_v44  ;;  %v692_v9 = vadd.f32 -1.4531521, %v672_v28  ;;  %1299 = vrcp.f32 %v634_v6  ;;  %v1830_v17 = vadd.f32 %v1973_v19, %v1508_v49 }
 0x271   :  { %v1818_v26 = vpop.eup %1291  ;;  %v750_v47 = vmul.f32 %v1767_v3, %v730_v59  ;;  %v636_v27 = vadd.f32 1.0, %v616_v29  ;;  %1301 = vpow2.f32 %v903_v33  ;;  %v905_v39 = vmul.f32 1.442695, %v873_v21 }
 0x272   :  { %v811_v12 = vadd.f32 0.2548296, %v791_v62  ;;  %v673_v54 = vmul.f32 1.0614054, %v1818_v26  ;;  %v712_v10 = vmul.f32 %v1804_v58, %v692_v9  ;;  %v1826_v15 = vpop.eup %1293  ;;  %v909_v32 = vmul.f32 1.442695, %v875_v53 }
 0x273   :  { %v770_v41 = vadd.f32 -0.28449672, %v750_v47  ;;  %v1296_v7 = vpop.eup %1295  ;;  %1303 = vrcp.f32 %v636_v27  ;;  %v854_v23 = vsub.f32 0.0, %v1794_v42  ;;  %v989_v49 = vadd.f32 1.0, %v969_v18 }
 0x274   :  { %v831_v55 = vmul.f32 %v1749_v43, %v811_v12  ;;  %v693_v2 = vadd.f32 -1.4531521, %v673_v54  ;;  %v732_v37 = vadd.f32 1.4214138, %v712_v10  ;;  %v675_v43 = vmul.f32 1.0614054, %v1826_v15 }
 0x275   :  { %v790_v22 = vmul.f32 %v1767_v3, %v770_v41  ;;  %v572_v44 = vsel %vm552_vm12, 1.0, %v1972_v40  ;;  %v1841_v34 = vmul.f32 0.70710677, %v1830_v17  ;;  %1305 = vpow2.f32 %v905_v39  ;;  %v1974_v41 = vld [vmem:[#allocation4_spill] sm:$0xff] }
 0x276   :  { %v931_v35 = vmul.f32 %v1296_v7, %v831_v55  ;;  %v713_v4 = vmul.f32 %v1818_v26, %v693_v2  ;;  %v752_v16 = vmul.f32 %v1804_v58, %v732_v37  ;;  %v695_v30 = vadd.f32 -1.4531521, %v675_v43  ;;  %v1298_v60 = vpop.eup %1297 }
 0x277   :  { %v810_v1 = vadd.f32 0.2548296, %v790_v22  ;;  %1307 = vpow2.f32 %v909_v32  ;;  %v1847_v33 = vand.u32 2147483647, %v1841_v34  ;;  %v874_v12 = vmul.f32 %v854_v23, %v1794_v42 }
 0x278   :  { %v733_v0 = vadd.f32 1.4214138, %v713_v4  ;;  %v772_v62 = vadd.f32 -0.28449672, %v752_v16  ;;  %v715_v59 = vmul.f32 %v1826_v15, %v695_v30  ;;  %v951_v28 = vsub.f32 1.0, %v931_v35 }
 0x279   :  { %v830_v20 = vmul.f32 %v1767_v3, %v810_v1  ;;  %v1009_v3 = vmul.f32 %v989_v49, %v1762_v48  ;;  %v856_v21 = vsub.f32 0.0, %v1813_v57  ;;  %v617_v54 = vmul.f32 0.3275911, %v1847_v33 }
 0x27a   :  { %v753_v56 = vmul.f32 %v1818_v26, %v733_v0  ;;  %v792_v6 = vmul.f32 %v1804_v58, %v772_v62  ;;  %v735_v29 = vadd.f32 1.4214138, %v715_v59  ;;  %v1851_v47 = vpop.eup %1299  ;;  %v1859_v10 = vadd.f32 %v1974_v41, %v1510_v50 }
 0x27b   :  { %v930_v31 = vmul.f32 %v1298_v60, %v830_v20  ;;  %v1302_v18 = vpop.eup %1301  ;;  %v971_v42 = vmul.f32 %v951_v28, %v1786_v63  ;;  %v674_v48 = vmul.f32 1.0614054, %v1851_v47  ;;  %v637_v19 = vadd.f32 1.0, %v617_v54 }
 0x27c   :  { %v773_v9 = vadd.f32 -0.28449672, %v753_v56  ;;  %v812_v27 = vadd.f32 0.2548296, %v792_v6  ;;  %v755_v55 = vmul.f32 %v1826_v15, %v735_v29  ;;  %v907_v39 = vmul.f32 1.442695, %v874_v12 }
 0x27d   :  { %v950_v53 = vsub.f32 1.0, %v930_v31  ;;  %v1866_v43 = vpop.eup %1303  ;;  %v694_v4 = vadd.f32 -1.4531521, %v674_v48  ;;  %v876_v50 = vmul.f32 %v856_v21, %v1813_v57  ;;  %1309 = vrcp.f32 %v637_v19  ;;  %v1975_v21 = vld [vmem:[#allocation5_spill] sm:$0xff] }
 0x27e   :  { %v793_v2 = vmul.f32 %v1818_v26, %v773_v9  ;;  %v832_v22 = vmul.f32 %v1804_v58, %v812_v27  ;;  %v775_v37 = vadd.f32 -0.28449672, %v755_v55  ;;  %v676_v16 = vmul.f32 1.0614054, %v1866_v43 }
 0x27f   :  { %v970_v7 = vmul.f32 %v950_v53, %v1809_v25  ;;  %v991_v30 = vadd.f32 1.0, %v971_v42  ;;  %v714_v58 = vmul.f32 %v1851_v47, %v694_v4  ;;  %v1874_v23 = vmul.f32 0.70710677, %v1859_v10  ;;  %v1306_v49 = vpop.eup %1305 }
 0x280   :  { %v813_v35 = vadd.f32 0.2548296, %v793_v2  ;;  %v932_v63 = vmul.f32 %v1302_v18, %v832_v22  ;;  %v795_v1 = vmul.f32 %v1826_v15, %v775_v37  ;;  %v696_v20 = vadd.f32 -1.4531521, %v676_v16 }
 0x281   :  { %v990_v32 = vadd.f32 1.0, %v970_v7  ;;  %v1308_v62 = vpop.eup %1307  ;;  %v734_v59 = vadd.f32 1.4214138, %v714_v58  ;;  %1311 = vpow2.f32 %v907_v39  ;;  %v911_v28 = vmul.f32 1.442695, %v876_v50 }
 0x282   :  { %v833_v25 = vmul.f32 %v1818_v26, %v813_v35  ;;  %v952_v60 = vsub.f32 1.0, %v932_v63  ;;  %v815_v57 = vadd.f32 0.2548296, %v795_v1  ;;  %v1878_v56 = vand.u32 2147483647, %v1874_v23  ;;  %v1976_v1 = vld [vmem:[#allocation6_spill] sm:$0xff] }
 0x283   :  { %v1010_v0 = vmul.f32 %v990_v32, %v1800_v45  ;;  %v716_v29 = vmul.f32 %v1866_v43, %v696_v20  ;;  %v754_v9 = vmul.f32 %v1851_v47, %v734_v59  ;;  %v1886_v54 = vadd.f32 %v1975_v21, %v1512_v51 }
 0x284   :  { %v972_v26 = vmul.f32 %v952_v60, %v572_v44  ;;  %v835_v6 = vmul.f32 %v1826_v15, %v815_v57  ;;  %v933_v12 = vmul.f32 %v1306_v49, %v833_v25  ;;  %v619_v45 = vmul.f32 0.3275911, %v1878_v56 }
 0x285   :  { %v1160_v31 = vpack.c.bf16 %v1010_v0, %v1009_v3  ;;  %v1011_v53 = vmul.f32 %v991_v30, %v1780_v5  ;;  %v512_v44 = vmul.f32 0.5, %v1717_v38  ;;  %v736_v3 = vadd.f32 1.4214138, %v716_v29 }
 0x286   :  { %v992_v15 = vadd.f32 1.0, %v972_v26  ;;  %v774_v27 = vadd.f32 -0.28449672, %v754_v9  ;;  %1313 = vpow2.f32 %v911_v28  ;;  %v639_v55 = vadd.f32 1.0, %v619_v45 }
 0x287   :  { %1089 = vst [vmem:[%s1965_s5 + $0x20] sm:$0xff] %v1160_v31  ;;  %vm553_vm13 = vcmp.ge.f32.partialorder %v1744_v14, 0.0  ;;  %v935_v18 = vmul.f32 %v1308_v62, %v835_v6  ;;  %v756_v51 = vmul.f32 %v1866_v43, %v736_v3  ;;  %v1895_v42 = vpop.eup %1309  ;;  %v953_v5 = vsub.f32 1.0, %v933_v12 }
 0x288   :  { %v1012_v41 = vmul.f32 %v992_v15, %v512_v44  ;;  %v794_v2 = vmul.f32 %v1851_v47, %v774_v27  ;;  %1315 = vrcp.f32 %v639_v55  ;;  %v1899_v48 = vmul.f32 0.70710677, %v1886_v54 }
 0x289   :  { %v776_v19 = vadd.f32 -0.28449672, %v756_v51  ;;  %v677_v7 = vmul.f32 1.0614054, %v1895_v42  ;;  %vm555_vm14 = vcmp.ge.f32.partialorder %v1752_v8, 0.0  ;;  %v573_v14 = vsel %vm553_vm13, 1.0, %v1972_v40 }
 0x28a   :  { %v1161_v38 = vpack.c.bf16 %v1012_v41, %v1011_v53  ;;  %v814_v22 = vadd.f32 0.2548296, %v794_v2  ;;  %v955_v37 = vsub.f32 1.0, %v935_v18  ;;  %v973_v50 = vmul.f32 %v953_v5, %v573_v14 }
 0x28b   :  { %v796_v39 = vmul.f32 %v1866_v43, %v776_v19  ;;  %v697_v35 = vadd.f32 -1.4531521, %v677_v7  ;;  %v1312_v4 = vpop.eup %1311  ;;  %v598_v63 = vand.u32 2147483647, %v1899_v48  ;;  %v1912_v8 = vadd.f32 %v1976_v1, %v1514_v52 }
 0x28c   :  { %1090 = vst [vmem:[%s1965_s5 + $0x28] sm:$0xff] %v1161_v38  ;;  %v834_v32 = vmul.f32 %v1851_v47, %v814_v22  ;;  %v513_v16 = vmul.f32 0.5, %v1732_v11  ;;  %v575_v30 = vsel %vm555_vm14, 1.0, %v1972_v40  ;;  %vm554_vm15 = vcmp.ge.f32.partialorder %v1790_v13, 0.0 }
 0x28d   :  { %v816_v25 = vadd.f32 0.2548296, %v796_v39  ;;  %v717_v58 = vmul.f32 %v1895_v42, %v697_v35  ;;  %v857_v0 = vsub.f32 0.0, %v1847_v33  ;;  %v618_v60 = vmul.f32 0.3275911, %v598_v63 }
 0x28e   :  { %v934_v49 = vmul.f32 %v1312_v4, %v834_v32  ;;  %v975_v47 = vmul.f32 %v955_v37, %v575_v30  ;;  %v1921_v52 = vmul.f32 0.70710677, %v1912_v8  ;;  %v993_v11 = vadd.f32 1.0, %v973_v50 }
 0x28f   :  { %v836_v57 = vmul.f32 %v1866_v43, %v816_v25  ;;  %v737_v20 = vadd.f32 1.4214138, %v717_v58  ;;  %vm556_vm0 = vcmp.ge.f32.partialorder %v1797_v61, 0.0  ;;  %v638_v28 = vadd.f32 1.0, %v618_v60 }
 0x290   :  { %v1314_v62 = vpop.eup %1313  ;;  %v954_v59 = vsub.f32 1.0, %v934_v49  ;;  %v574_v31 = vsel %vm554_vm15, 1.0, %v1972_v40  ;;  %v600_v6 = vand.u32 2147483647, %v1921_v52  ;;  %v514_v43 = vmul.f32 0.5, %v1772_v24 }
 0x291   :  { %v936_v13 = vmul.f32 %v1314_v62, %v836_v57  ;;  %v757_v26 = vmul.f32 %v1895_v42, %v737_v20  ;;  %v877_v9 = vmul.f32 %v857_v0, %v1847_v33  ;;  %1317 = vrcp.f32 %v638_v28 }
 0x292   :  { %v1316_v29 = vpop.eup %1315  ;;  %v974_v12 = vmul.f32 %v954_v59, %v574_v31  ;;  %v995_v45 = vadd.f32 1.0, %v975_v47  ;;  %v576_v21 = vsel %vm556_vm0, 1.0, %v1972_v40  ;;  %v1013_v44 = vmul.f32 %v993_v11, %v513_v16 }
 0x293   :  { %v956_v53 = vsub.f32 1.0, %v936_v13  ;;  %v679_v61 = vmul.f32 1.0614054, %v1316_v29  ;;  %v859_v3 = vsub.f32 0.0, %v1878_v56  ;;  %v620_v27 = vmul.f32 0.3275911, %v600_v6 }
 0x294   :  { %v994_v15 = vadd.f32 1.0, %v974_v12  ;;  %v515_v55 = vmul.f32 0.5, %v1737_v36  ;;  %v777_v18 = vadd.f32 -0.28449672, %v757_v26  ;;  %v913_v5 = vmul.f32 1.442695, %v877_v9 }
 0x295   :  { %v976_v41 = vmul.f32 %v956_v53, %v576_v21  ;;  %v699_v51 = vadd.f32 -1.4531521, %v679_v61  ;;  %v640_v2 = vadd.f32 1.0, %v620_v27  ;;  %v516_v38 = vmul.f32 0.5, %v1776_v46 }
 0x296   :  { %v1014_v24 = vmul.f32 %v994_v15, %v514_v43  ;;  %v1015_v33 = vmul.f32 %v995_v45, %v515_v55  ;;  %v879_v14 = vmul.f32 %v859_v3, %v1878_v56  ;;  %v858_v37 = vsub.f32 0.0, %v598_v63 }
 0x297   :  { %v996_v19 = vadd.f32 1.0, %v976_v41  ;;  %v719_v7 = vmul.f32 %v1316_v29, %v699_v51  ;;  %1319 = vrcp.f32 %v640_v2  ;;  %v797_v35 = vmul.f32 %v1895_v42, %v777_v18 }
 0x298   :  { %v1162_v22 = vpack.c.bf16 %v1014_v24, %v1013_v44  ;;  %1321 = vpow2.f32 %v913_v5  ;;  %v917_v46 = vmul.f32 1.442695, %v879_v14  ;;  %v878_v1 = vmul.f32 %v858_v37, %v598_v63 }
 0x299   :  { %v1016_v39 = vmul.f32 %v996_v19, %v516_v38  ;;  %v739_v36 = vadd.f32 1.4214138, %v719_v7  ;;  %v817_v56 = vadd.f32 0.2548296, %v797_v35  ;;  %v860_v25 = vsub.f32 0.0, %v600_v6 }
 0x29a   :  { %1091 = vst [vmem:[%s1965_s5 + $0x30] sm:$0xff] %v1162_v22  ;;  %1323 = vpow2.f32 %v917_v46  ;;  %v915_v0 = vmul.f32 1.442695, %v878_v1  ;;  %vm557_vm1 = vcmp.ge.f32.partialorder %v1841_v34, 0.0  ;;  %vm559_vm2 = vcmp.ge.f32.partialorder %v1874_v23, 0.0 }
 0x29b   :  { %v1163_v4 = vpack.c.bf16 %v1016_v39, %v1015_v33  ;;  %v759_v50 = vmul.f32 %v1316_v29, %v739_v36  ;;  %v1318_v32 = vpop.eup %1317  ;;  %v837_v60 = vmul.f32 %v1895_v42, %v817_v56  ;;  %v880_v20 = vmul.f32 %v860_v25, %v600_v6 }
 0x29c   :  { %v678_v30 = vmul.f32 1.0614054, %v1318_v32  ;;  %1325 = vpow2.f32 %v915_v0  ;;  %v577_v15 = vsel %vm557_vm1, 1.0, %v1972_v40  ;;  %vm558_vm3 = vcmp.ge.f32.partialorder %v1899_v48, 0.0 }
 0x29d   :  { %1092 = vst [vmem:[%s1965_s5 + $0x38] sm:$0xff] %v1163_v4  ;;  %v779_v16 = vadd.f32 -0.28449672, %v759_v50  ;;  %v919_v26 = vmul.f32 1.442695, %v880_v20  ;;  %v579_v2 = vsel %vm559_vm2, 1.0, %v1972_v40 }
 0x29e   :  { %v698_v49 = vadd.f32 -1.4531521, %v678_v30  ;;  %v578_v33 = vsel %vm558_vm3, 1.0, %v1972_v40  ;;  %v517_v38 = vmul.f32 0.5, %v1830_v17  ;;  %v518_v23 = vmul.f32 0.5, %v1886_v54 }
 0x29f   :  { %v799_v58 = vmul.f32 %v1316_v29, %v779_v16  ;;  %1327 = vpow2.f32 %v919_v26  ;;  %vm560_vm4 = vcmp.ge.f32.partialorder %v1921_v52, 0.0  ;;  %v520_v54 = vmul.f32 0.5, %v1912_v8 }
 0x2a0   :  { %v718_v47 = vmul.f32 %v1318_v32, %v698_v49  ;;  %v580_v50 = vsel %vm560_vm4, 1.0, %v1972_v40 }
 0x2a1   :  { %v1320_v57 = vpop.eup %1319  ;;  %v819_v62 = vadd.f32 0.2548296, %v799_v58 }
 0x2a2   :  { %v738_v11 = vadd.f32 1.4214138, %v718_v47  ;;  %v680_v63 = vmul.f32 1.0614054, %v1320_v57  ;;  %v1322_v59 = vpop.eup %1321 }
 0x2a3   :  { %v937_v28 = vmul.f32 %v1322_v59, %v837_v60  ;;  %v839_v43 = vmul.f32 %v1316_v29, %v819_v62 }
 0x2a4   :  { %v758_v31 = vmul.f32 %v1318_v32, %v738_v11  ;;  %v700_v13 = vadd.f32 -1.4531521, %v680_v63  ;;  %v1324_v53 = vpop.eup %1323 }
 0x2a5   :  { %v957_v45 = vsub.f32 1.0, %v937_v28  ;;  %v939_v6 = vmul.f32 %v1324_v53, %v839_v43 }
 0x2a6   :  { %v778_v12 = vadd.f32 -0.28449672, %v758_v31  ;;  %v720_v9 = vmul.f32 %v1320_v57, %v700_v13  ;;  %v1326_v41 = vpop.eup %1325 }
 0x2a7   :  { %v977_v3 = vmul.f32 %v957_v45, %v577_v15  ;;  %v959_v29 = vsub.f32 1.0, %v939_v6 }
 0x2a8   :  { %v798_v21 = vmul.f32 %v1318_v32, %v778_v12  ;;  %v740_v42 = vadd.f32 1.4214138, %v720_v9 }
 0x2a9   :  { %v997_v51 = vadd.f32 1.0, %v977_v3  ;;  %v979_v19 = vmul.f32 %v959_v29, %v579_v2  ;;  %v1328_v14 = vpop.eup %1327 }
 0x2aa   :  { %v818_v61 = vadd.f32 0.2548296, %v798_v21  ;;  %v760_v44 = vmul.f32 %v1320_v57, %v740_v42 }
 0x2ab   :  { %v1017_v37 = vmul.f32 %v997_v51, %v517_v38  ;;  %v999_v35 = vadd.f32 1.0, %v979_v19 }
 0x2ac   :  { %v838_v27 = vmul.f32 %v1318_v32, %v818_v61  ;;  %v780_v55 = vadd.f32 -0.28449672, %v760_v44  ;;  %v519_v32 = vmul.f32 0.5, %v1859_v10 }
 0x2ae   :  { %v938_v34 = vmul.f32 %v1326_v41, %v838_v27  ;;  %v800_v18 = vmul.f32 %v1320_v57, %v780_v55  ;;  %v1019_v1 = vmul.f32 %v999_v35, %v519_v32 }
 0x2b0   :  { %v958_v24 = vsub.f32 1.0, %v938_v34  ;;  %v820_v5 = vadd.f32 0.2548296, %v800_v18 }
 0x2b2   :  { %v978_v7 = vmul.f32 %v958_v24, %v578_v33  ;;  %v840_v22 = vmul.f32 %v1320_v57, %v820_v5 }
 0x2b4   :  { %v998_v39 = vadd.f32 1.0, %v978_v7  ;;  %v940_v48 = vmul.f32 %v1328_v14, %v840_v22 }
 0x2b6   :  { %v1018_v36 = vmul.f32 %v998_v39, %v518_v23  ;;  %v960_v4 = vsub.f32 1.0, %v940_v48 }
 0x2b8   :  { %v1164_v46 = vpack.c.bf16 %v1018_v36, %v1017_v37  ;;  %v980_v17 = vmul.f32 %v960_v4, %v580_v50 }
 0x2ba   :  { %1093 = vst [vmem:[%s1965_s5 + $0x40] sm:$0x11] %v1164_v46  ;;  %v1000_v56 = vadd.f32 1.0, %v980_v17 }
 0x2bc   :  { %v1020_v16 = vmul.f32 %v1000_v56, %v520_v54 }
 0x2be   :  { %v1165_v52 = vpack.c.bf16 %v1020_v16, %v1019_v1 }
 0x2c0   :  { %1094 = vst [vmem:[%s1965_s5 + $0x48] sm:$0x11] %v1165_v52 }

// kernel: vit_forward.14
= control target key start
LH: loop header
LB: loop body
LE: loop exit
PB: predicated region body
PF: predicated region fallthrough
CT: control target
= control target key end

     0   :  { %s829_s1 = inlined_call_operand.vmem [shape: bf16[512,128], index: 1, kind: input, shape index: {}]   ;;  %s830_s0 = inlined_call_operand.vmem [shape: bf16[34,512], index: 0, kind: input, shape index: {}]   ;;  %s831_s2 = inlined_call_operand.vmem [shape: f32[1,128], index: 2, kind: input, shape index: {}]   ;;  %s832_s3 = inlined_call_operand.vmem [shape: bf16[34,128], index: 3, kind: output, shape index: {}]  }
   0x1   :  { %v623_v0 = vld [vmem:[%s829_s1 + $0x40] sm:$0xff]   ;;  %v627_v4 = vld [vmem:[%s829_s1 + $0x48] sm:$0xff]   ;;  %v631_v8 = vld [vmem:[%s829_s1 + $0x50] sm:$0xff]  }
   0x2   :  { %v624_v1 = vld [vmem:[%s829_s1 + $0xc0] sm:$0xff]   ;;  %555 = vmatprep.subr.bf16.mxu0 %v623_v0  ;;  %v628_v5 = vld [vmem:[%s829_s1 + $0xc8] sm:$0xff]   ;;  %v632_v9 = vld [vmem:[%s829_s1 + $0xd0] sm:$0xff]  }
   0x3   :  { %v625_v2 = vld [vmem:[%s829_s1] sm:$0xff]   ;;  %589 = vmatprep.subr.bf16.mxu1 %v624_v1  ;;  %v629_v6 = vld [vmem:[%s829_s1 + $0x8] sm:$0xff]   ;;  %v633_v10 = vld [vmem:[%s829_s1 + $0x10] sm:$0xff]  }
   0x4   :  { %v626_v3 = vld [vmem:[%s829_s1 + $0x80] sm:$0xff]   ;;  %556 = vmatpush3.bf16.msra.mxu0 %v625_v2  ;;  %v630_v7 = vld [vmem:[%s829_s1 + $0x88] sm:$0xff]   ;;  %v634_v11 = vld [vmem:[%s829_s1 + $0x90] sm:$0xff]  }
   0x5   :  { %590 = vmatpush3.bf16.msra.mxu1 %v626_v3  ;;  %557 = vmatprep.subr.bf16.mxu0 %v627_v4  ;;  %v635_v12 = vld [vmem:[%s829_s1 + $0x58] sm:$0xff]   ;;  %v639_v16 = vld [vmem:[%s829_s1 + $0x60] sm:$0xff]   ;;  %v643_v20 = vld [vmem:[%s829_s1 + $0x68] sm:$0xff]  }
   0x6   :  { %591 = vmatprep.subr.bf16.mxu1 %v628_v5  ;;  %v636_v13 = vld [vmem:[%s829_s1 + $0xd8] sm:$0xff]   ;;  %v640_v17 = vld [vmem:[%s829_s1 + $0xe0] sm:$0xff]   ;;  %v644_v21 = vld [vmem:[%s829_s1 + $0xe8] sm:$0xff]  }
   0x7   :  { %v637_v14 = vld [vmem:[%s829_s1 + $0x18] sm:$0xff]   ;;  %v641_v18 = vld [vmem:[%s829_s1 + $0x20] sm:$0xff]   ;;  %v645_v22 = vld [vmem:[%s829_s1 + $0x28] sm:$0xff]  }
   0x8   :  { %558 = vmatpush3.bf16.msra.mxu0 %v629_v6  ;;  %v638_v15 = vld [vmem:[%s829_s1 + $0x98] sm:$0xff]   ;;  %v642_v19 = vld [vmem:[%s829_s1 + $0xa0] sm:$0xff]   ;;  %v646_v23 = vld [vmem:[%s829_s1 + $0xa8] sm:$0xff]  }
   0x9   :  { %592 = vmatpush3.bf16.msra.mxu1 %v630_v7  ;;  %559 = vmatprep.subr.bf16.mxu0 %v631_v8  ;;  %v647_v24 = vld [vmem:[%s829_s1 + $0x70] sm:$0xff]   ;;  %v651_v28 = vld [vmem:[%s829_s1 + $0x78] sm:$0xff]   ;;  %v23_v38 = vld [vmem:[%s830_s0 + $0x40] sm:$0x11] }
   0xa   :  { %593 = vmatprep.subr.bf16.mxu1 %v632_v9  ;;  %v648_v25 = vld [vmem:[%s829_s1 + $0xf0] sm:$0xff]   ;;  %v652_v29 = vld [vmem:[%s829_s1 + $0xf8] sm:$0xff]   ;;  %v24_v39 = vld [vmem:[%s830_s0 + $0x48] sm:$0x11]  ;;  %v499_v42 = vcombine.high %v23_v38, %v23_v38  ;;  %v498_v44 = vcombine.low %v23_v38, %v23_v38 }
   0xb   :  { %v649_v26 = vld [vmem:[%s829_s1 + $0x30] sm:$0xff]   ;;  %v653_v30 = vld [vmem:[%s829_s1 + $0x38] sm:$0xff]   ;;  %v501_v43 = vcombine.high %v24_v39, %v24_v39  ;;  %v500_v45 = vcombine.low %v24_v39, %v24_v39  ;;  %v489_v48 = vld [vmem:[%s831_s2] ss:$0 sm:$0xff] }
   0xc   :  { %560 = vmatpush3.bf16.msra.mxu0 %v633_v10  ;;  %v650_v27 = vld [vmem:[%s829_s1 + $0xb0] sm:$0xff]   ;;  %v654_v31 = vld [vmem:[%s829_s1 + $0xb8] sm:$0xff]  }
   0xd   :  { %594 = vmatpush3.bf16.msra.mxu1 %v634_v11  ;;  %561 = vmatprep.subr.bf16.mxu0 %v635_v12  ;;  %v655_v32 = vld [vmem:[%s830_s0] ss:$16 sps:$4 sm:$0xff]   ;;  %v657_v33 = vld [vmem:[%s830_s0 + $0x4] ss:$16 sps:$4 sm:$0xff]   ;;  %v658_v34 = vld [vmem:[%s830_s0 + $0x8] ss:$16 sps:$4 sm:$0xff]  }
   0xe   :  { %595 = vmatprep.subr.bf16.mxu1 %v636_v13  ;;  %v660_v35 = vld [vmem:[%s830_s0 + $0xc] ss:$16 sps:$4 sm:$0xff]   ;;  %374 = vmatprep.mubr.bf16.mxu0 %v657_v33  ;;  %v661_v36 = vld [vmem:[%s830_s0 + $0x24] ss:$16 sps:$4 sm:$0xff]   ;;  %v665_v40 = vld [vmem:[%s830_s0 + $0x20] ss:$16 sps:$4 sm:$0xff]  }
   0xf   :  { %430 = vmatprep.mubr.bf16.mxu1 %v660_v35  ;;  %v663_v37 = vld [vmem:[%s830_s0 + $0x2c] ss:$16 sps:$4 sm:$0xff]   ;;  %v666_v41 = vld [vmem:[%s830_s0 + $0x28] ss:$16 sps:$4 sm:$0xff]  }
  0x10   :  { %562 = vmatpush3.bf16.msra.mxu0 %v637_v14 }
  0x11   :  { %596 = vmatpush3.bf16.msra.mxu1 %v638_v15  ;;  %563 = vmatprep.subr.bf16.mxu0 %v639_v16 }
  0x12   :  { %597 = vmatprep.subr.bf16.mxu1 %v640_v17 }
  0x14   :  { %564 = vmatpush3.bf16.msra.mxu0 %v641_v18 }
  0x15   :  { %598 = vmatpush3.bf16.msra.mxu1 %v642_v19  ;;  %565 = vmatprep.subr.bf16.mxu0 %v643_v20 }
  0x16   :  { %599 = vmatprep.subr.bf16.mxu1 %v644_v21 }
  0x18   :  { %566 = vmatpush3.bf16.msra.mxu0 %v645_v22 }
  0x19   :  { %600 = vmatpush3.bf16.msra.mxu1 %v646_v23  ;;  %567 = vmatprep.subr.bf16.mxu0 %v647_v24 }
  0x1a   :  { %601 = vmatprep.subr.bf16.mxu1 %v648_v25 }
  0x1c   :  { %568 = vmatpush3.bf16.msra.mxu0 %v649_v26 }
  0x1d   :  { %602 = vmatpush3.bf16.msra.mxu1 %v650_v27  ;;  %569 = vmatprep.subr.bf16.mxu0 %v651_v28 }
  0x1e   :  { %603 = vmatprep.subr.bf16.mxu1 %v652_v29 }
  0x20   :  { %570 = vmatpush3.bf16.msra.mxu0 %v653_v30 }
  0x21   :  { %604 = vmatpush3.bf16.msra.mxu1 %v654_v31 }
  0x23   :  { %375 = vmatmul.mubr.bf16.vlgmr.msra.gmra.mrb[0].mxu0 %v655_v32 }
  0x24   :  { %431 = vmatmul.mubr.bf16.vlgmr.msra.gmra.mrb[0].mxu1 %v658_v34  ;;  %382 = vmatprep.mubr.bf16.mxu0 %v661_v36 }
  0x25   :  { %438 = vmatprep.mubr.bf16.mxu1 %v663_v37 }
  0x2b   :  { %383 = vmatmul.mubr.bf16.gmra.mrb[4].mxu0 %v665_v40 }
  0x2c   :  { %439 = vmatmul.mubr.bf16.gmra.mrb[4].mxu1 %v666_v41  ;;  %390 = vmatprep.mubr.bf16.mxu0 %v499_v42 }
  0x2d   :  { %446 = vmatprep.mubr.bf16.mxu1 %v501_v43 }
  0x33   :  { %391 = vmatmul.mubr.bf16.gmra.mrb[8].mxu0 %v498_v44 }
  0x34   :  { %447 = vmatmul.mubr.bf16.gmra.mrb[8].mxu1 %v500_v45 }
  0xf6   :  { %v571_v46 = vpop.f32.mrb[0].mxu0 }
  0xf7   :  { %v605_v47 = vpop.f32.mrb[0].mxu1  ;;  %v572_v49 = vpop.f32.mrb[1].mxu0 }
  0xf8   :  { %v573_v50 = vadd.f32 %v572_v49, %v571_v46  ;;  %v606_v51 = vpop.f32.mrb[1].mxu1  ;;  %v574_v52 = vpop.f32.mrb[2].mxu0 }
  0xf9   :  { %v607_v53 = vadd.f32 %v606_v51, %v605_v47  ;;  %v608_v54 = vpop.f32.mrb[2].mxu1  ;;  %v575_v55 = vpop.f32.mrb[3].mxu0 }
  0xfa   :  { %v377_v56 = vadd.f32 %v573_v50, %v489_v48  ;;  %v576_v57 = vadd.f32 %v575_v55, %v574_v52  ;;  %v609_v58 = vpop.f32.mrb[3].mxu1 }
  0xfb   :  { %v610_v59 = vadd.f32 %v609_v58, %v608_v54 }
  0xfc   :  { %v433_v60 = vadd.f32 %v607_v53, %v377_v56  ;;  %v380_v61 = vadd.f32 %v576_v57, %v489_v48 }
  0xfe   :  { %v436_v62 = vadd.f32 %v610_v59, %v380_v61  ;;  %v577_v63 = vpop.f32.mrb[4].mxu0  ;;  %v454_v2 = vmul.f32 2.0, %v433_v60 }
  0xff   :  { %v611_v0 = vpop.f32.mrb[4].mxu1  ;;  %v578_v1 = vpop.f32.mrb[5].mxu0 }
 0x100   :  { %v455_v3 = vmul.f32 2.0, %v436_v62  ;;  %v579_v4 = vadd.f32 %v578_v1, %v577_v63  ;;  %v612_v5 = vpop.f32.mrb[5].mxu1  ;;  %v580_v6 = vpop.f32.mrb[6].mxu0 }
 0x101   :  { %v613_v7 = vadd.f32 %v612_v5, %v611_v0  ;;  %v614_v8 = vpop.f32.mrb[6].mxu1  ;;  %v581_v9 = vpop.f32.mrb[7].mxu0 }
 0x102   :  { %v547_v10 = vpack.c.bf16 %v455_v3, %v454_v2  ;;  %v385_v11 = vadd.f32 %v579_v4, %v489_v48  ;;  %v582_v12 = vadd.f32 %v581_v9, %v580_v6  ;;  %v615_v13 = vpop.f32.mrb[7].mxu1 }
 0x103   :  { %v616_v14 = vadd.f32 %v615_v13, %v614_v8 }
 0x104   :  { %548 = vst [vmem:[%s832_s3] sm:$0xff] %v547_v10   ;;  %v441_v15 = vadd.f32 %v613_v7, %v385_v11  ;;  %v388_v16 = vadd.f32 %v582_v12, %v489_v48 }
 0x106   :  { %v444_v17 = vadd.f32 %v616_v14, %v388_v16  ;;  %v583_v18 = vpop.f32.mrb[8].mxu0  ;;  %v456_v21 = vmul.f32 2.0, %v441_v15 }
 0x107   :  { %v617_v19 = vpop.f32.mrb[8].mxu1  ;;  %v584_v20 = vpop.f32.mrb[9].mxu0 }
 0x108   :  { %v457_v22 = vmul.f32 2.0, %v444_v17  ;;  %v585_v23 = vadd.f32 %v584_v20, %v583_v18  ;;  %v618_v24 = vpop.f32.mrb[9].mxu1  ;;  %v586_v25 = vpop.f32.mrb[10].mxu0 }
 0x109   :  { %v619_v26 = vadd.f32 %v618_v24, %v617_v19  ;;  %v620_v27 = vpop.f32.mrb[10].mxu1  ;;  %v587_v28 = vpop.f32.mrb[11].mxu0 }
 0x10a   :  { %v552_v29 = vpack.c.bf16 %v457_v22, %v456_v21  ;;  %v393_v30 = vadd.f32 %v585_v23, %v489_v48  ;;  %v621_v31 = vpop.f32.mrb[11].mxu1 }
 0x10c   :  { %554 = vst [vmem:[%s832_s3 + $0x8] sm:$0xff] %v552_v29   ;;  %v449_v32 = vadd.f32 %v619_v26, %v393_v30 }
 0x10e   :  { %v458_v33 = vmul.f32 2.0, %v449_v32 }
 0x110   :  { %v543_v34 = vpack.c.bf16 %v458_v33, %v458_v33 }
 0x112   :  { %484 = vst [vmem:[%s832_s3 + $0x10] sm:$0x1] %v543_v34 }

// kernel: vit_forward.19
= control target key start
LH: loop header
LB: loop body
LE: loop exit
PB: predicated region body
PF: predicated region fallthrough
CT: control target
= control target key end

     0   :  { %vm28_vm0 = vcmask 1041408   ;;  %s346_s0 = inlined_call_operand.vmem [shape: bf16[2,128], index: 0, kind: input, shape index: {}]   ;;  %s347_s1 = inlined_call_operand.vmem [shape: f32[1,128], index: 1, kind: input, shape index: {}]   ;;  %s348_s2 = inlined_call_operand.vmem [shape: f32[1,128], index: 2, kind: input, shape index: {}]   ;;  %s349_s3 = inlined_call_operand.vmem [shape: bf16[128,128], index: 3, kind: input, shape index: {}]   ;;  %s350_s4 = inlined_call_operand.vmem [shape: f32[1,128], index: 4, kind: input, shape index: {}]   ;;  %s351_s5 = inlined_call_operand.hbm [shape: f32[2,128], index: 5, kind: output, shape index: {}]  }
   0x1   :  { %v26_v0 = vld [vmem:[%s346_s0] sm:$0x1] }
   0x2   :  { %v27_v1 = vunpack.c.l.bf16 %v26_v0 }
   0x4   :  { %v29_v2 = vsel %vm28_vm0, %v27_v1, 0.0 }
   0x5   :  { %30 = vadd.xlane.f32.xlu0 %v29_v2 }
   0x6   :  { %10 = vsyncpa [#allocation4], 0  ;;  %v265_v3 = vmov 0.0   ;;  %v231_v9 = vld [vmem:[%s349_s3] sm:$0xff]   ;;  %v232_v10 = vld [vmem:[%s349_s3 + $0x8] sm:$0xff]   ;;  %vm266_vm1 = vmmov 0  }
   0x7   :  { %208 = vmatprep.subr.bf16.mxu0 %v265_v3  ;;  %v233_v11 = vld [vmem:[%s349_s3 + $0x10] sm:$0xff]   ;;  %v234_v12 = vld [vmem:[%s349_s3 + $0x18] sm:$0xff]   ;;  %v235_v13 = vld [vmem:[%s349_s3 + $0x20] sm:$0xff]   ;;  %224 = vmatprep.mubr.msk.bf16.mxu0 %vm266_vm1, %v265_v3  ;;  %s267_s15 = smov [#allocation3]  }
   0x8   :  { %209 = vmatpush3.bf16.msra.mxu0 %v231_v9  ;;  %v236_v14 = vld [vmem:[%s349_s3 + $0x28] sm:$0xff]   ;;  %v237_v15 = vld [vmem:[%s349_s3 + $0x30] sm:$0xff]   ;;  %v238_v16 = vld [vmem:[%s349_s3 + $0x38] sm:$0xff]   ;;  %s180_s16 = sshll.u32 %s267_s15, 4  ;;  %s181_s16 = int_to_ptr.vmem [resolvable:$true] %s180_s16 }
   0x9   :  { %210 = vmatprep.subr.bf16.mxu0 %v265_v3  ;;  %v188_v21 = vld [vmem:[%s347_s1] ss:$0 sm:$0xff]  ;;  %s241_s1 = scalar_lea.vmem %s181_s16, 32  ;;  %p246_p1 = scmp.lt.s32.totalorder %s181_s16, %s181_s16 }
   0xa   :  { %v189_v23 = vld [vmem:[%s348_s2] ss:$0 sm:$0xff]  ;;  %p242_p0 = scmp.ne.s32.totalorder %s181_s16, %s241_s1  ;;  %p247_p2 = scmp.lt.s32.totalorder %s241_s1, %s241_s1 }
   0xb   :  { %v190_v28 = vld [vmem:[%s350_s4] ss:$0 sm:$0xff] }
   0xc   :  { %211 = vmatpush3.bf16.msra.mxu0 %v232_v10  ;;  %p248_p3 = por %p247_p2, %p246_p1 }
   0xd   :  { %212 = vmatprep.subr.bf16.mxu0 %v265_v3 }
   0xe   :  { %p249_p4 = pnand %p248_p3, %p242_p0 }
  0x10   :  { %213 = vmatpush3.bf16.msra.mxu0 %v233_v11 }
  0x11   :  { %214 = vmatprep.subr.bf16.mxu0 %v265_v3 }
  0x14   :  { %215 = vmatpush3.bf16.msra.mxu0 %v234_v12 }
  0x15   :  { %216 = vmatprep.subr.bf16.mxu0 %v265_v3 }
  0x18   :  { %217 = vmatpush3.bf16.msra.mxu0 %v235_v13 }
  0x19   :  { %218 = vmatprep.subr.bf16.mxu0 %v265_v3 }
  0x1c   :  { %219 = vmatpush3.bf16.msra.mxu0 %v236_v14 }
  0x1d   :  { %220 = vmatprep.subr.bf16.mxu0 %v265_v3 }
  0x20   :  { %221 = vmatpush3.bf16.msra.mxu0 %v237_v15 }
  0x21   :  { %222 = vmatprep.subr.bf16.mxu0 %v265_v3 }
  0x24   :  { %223 = vmatpush3.bf16.msra.mxu0 %v238_v16 }
  0x92   :  { %v31_v4 = vpop.xlane.xlu0 %30 }
  0x93   :  { %v33_v5 = vmul.f32 0.0078125, %v31_v4 }
  0x95   :  { %v34_v6 = vsub.f32 %v27_v1, %v33_v5 }
  0x97   :  { %v35_v7 = vmul.f32 %v34_v6, %v34_v6 }
  0x99   :  { %v36_v8 = vsel %vm28_vm0, %v35_v7, 0.0 }
  0x9a   :  { %37 = vadd.xlane.f32.xlu0 %v36_v8 }
 0x127   :  { %v38_v17 = vpop.xlane.xlu0 %37 }
 0x128   :  { %v39_v18 = vmul.f32 0.0078125, %v38_v17 }
 0x12a   :  { %v40_v19 = vadd.f32 1e-05, %v39_v18 }
 0x12c   :  { %239 = vrsqrt.f32 %v40_v19 }
 0x136   :  { %v240_v20 = vpop.eup %239 }
 0x137   :  { %v42_v22 = vmul.f32 %v240_v20, %v34_v6 }
 0x139   :  { %v50_v24 = vmul.f32 %v188_v21, %v42_v22 }
 0x13b   :  { %v58_v25 = vadd.f32 %v189_v23, %v50_v24 }
 0x13d   :  { %v59_v26 = vpack.c.bf16 %v58_v25, %v58_v25 }
 0x13f   :  { %60 = vst [vmem:[#allocation2] sm:$0x1] %v59_v26 }
 0x146   :  { %v61_v27 = vld [vmem:[#allocation2] sm:$0x1] }
 0x147   :  { %225 = vmatmul.mubr.bf16.vlgmr.msra.gmra.mrb[0].mxu0 %v61_v27 }
 0x21a   :  { %v167_v29 = vpop.f32.mrb[0].mxu0 }
 0x21b   :  { %v168_v30 = vadd.f32 %v190_v28, %v167_v29  ;;  %v226_v31 = vpop.f32.mrb[1].mxu0 }
 0x21c   :  { %v170_v32 = vpop.f32.mrb[2].mxu0 }
 0x21d   :  { %173 = vst [vmem:[#allocation3] sm:$0x3] %v168_v30  ;;  %v227_v33 = vpop.f32.mrb[3].mxu0 }
 0x21e   :  { %252 = shalt.err (!%p249_p4)
}
 0x21f   :  { %s253_s4 = scalar_lea.hbm %s351_s5, 32 }
 0x220   :  { %p254_p5 = scmp.ne.s32.totalorder %s351_s5, %s253_s4  ;;  %p257_p6 = scmp.lt.u32.totalorder %s253_s4, %s351_s5 }
 0x222   :  { %p259_p7 = pnand %p257_p6, %p254_p5 }
 0x224   :  { %262 = shalt.err (!%p259_p7)
}
 0x225   :  { %183 = dma.vmem_to_hbm [thread:$0]  %s181_s16, 32, %s351_s5, [#allocation4]  }
 0x226   :  { %263 = dma.done.wait [#allocation4], 32  }
 0x227   :  { %264 = vsyncadd [#allocation4], 4294967264 }
 0x228   :  { %187 = vsyncpa [#allocation4], 1 }

</bundles_post_ra>
